<compile_context>
chip_gen: v7x
topology: tpu7x:2x2x1
jax: 0.10.0
libtpu: 0.0.40
codegen_flags: <defaults>
</compile_context>

<pallas_src>
import numpy as np
import jax
import jax.numpy as jnp
from jax.experimental import pallas as pl
from jax.experimental.pallas import tpu as pltpu

EMB_DIM = 768
SEQ_LEN = 8
CODE_DIM = EMB_DIM // SEQ_LEN            # 96
FSQ_LEVELS = (8, 5, 5, 5)                # 4-d FSQ codebook per token
N_LEVELS = len(FSQ_LEVELS)               # 4
N_CODES = SEQ_LEN * N_LEVELS             # 32 code lanes for the whole sequence
FSQ_PAD = 128                            # pad code lanes 32 -> 128 (lane-dense)
_EPS = 1e-3

# --- FSQ constants (host-side numpy; folded into packed weights / passed in) --
_levels = np.asarray(FSQ_LEVELS, dtype=np.float32)
_HALF_L = ((_levels - 1.0) * (1.0 + _EPS) / 2.0).astype(np.float32)     # (4,)
_OFFSET = np.where(_levels % 2 == 0, 0.5, 0.0).astype(np.float32)       # (4,)
_SHIFT = np.arctanh(_OFFSET / _HALF_L).astype(np.float32)               # (4,)
_HALF_WIDTH = (_levels // 2).astype(np.float32)                         # (4,)


# ---------------------------------------------------------------------------
# Fused Pallas kernel: encoder MLP -> FSQ -> decoder MLP on one row tile.
#   4 MXU matmuls per tile: 768x768, 768x128, 128x768, 768x768
#   (bf16 MXU inputs, f32 accumulation; all elementwise/FSQ math in f32).
# ---------------------------------------------------------------------------
def _fused_kernel(x_ref,
                  ew1_ref, eb1_ref,
                  wef_ref, bef_ref, half_l_ref, offset_ref,
                  wfd_ref, bfd_ref,
                  dw2_ref, db2_ref,
                  o_ref):
    bf16 = jnp.bfloat16
    x = x_ref[...]                                                   # (TM,768) bf16

    # encoder layer 1: relu(x @ W1 + b1)
    h = jnp.dot(x, ew1_ref[...], preferred_element_type=jnp.float32) + eb1_ref[...]
    h = jnp.maximum(h, 0.0)

    # folded (encoder layer 2 @ FSQ project_in); bias carries the arctanh shift
    u = jnp.dot(h.astype(bf16), wef_ref[...],
                preferred_element_type=jnp.float32) + bef_ref[...]   # (TM,128)

    # FSQ bound + quantize (round_ste forward); 1/half_width folded into wfd
    bounded = jnp.tanh(u) * half_l_ref[...] - offset_ref[...]
    quantized = jnp.round(bounded)                                   # small ints

    # folded (FSQ project_out @ decoder layer 1): relu(q @ W + b)
    h2 = jnp.dot(quantized.astype(bf16), wfd_ref[...],
                 preferred_element_type=jnp.float32) + bfd_ref[...]  # (TM,768)
    h2 = jnp.maximum(h2, 0.0)

    # decoder layer 2
    y = jnp.dot(h2.astype(bf16), dw2_ref[...],
                preferred_element_type=jnp.float32) + db2_ref[...]

    o_ref[...] = y.astype(o_ref.dtype)


# ---------------------------------------------------------------------------
# Host-side packing: block-diagonal FSQ, constant folding (f32), bf16 cast last
# ---------------------------------------------------------------------------
def _pack_params(params):
    ew1, eb1, ew2, eb2 = params["enc"]
    dw1, db1, dw2, db2 = params["dec"]
    fwi, fbi, fwo, fbo = params["fsq"]        # (96,4) (1,4) (4,96) (1,96)

    pad = FSQ_PAD - N_CODES
    f32 = jnp.float32

    # block-diagonal FSQ projections over the 8 sequence positions
    wi_bd = jax.scipy.linalg.block_diag(*([fwi.astype(f32)] * SEQ_LEN))   # (768,32)
    wo_scaled = fwo.astype(f32) / jnp.asarray(_HALF_WIDTH)[:, None]       # fold 1/hw
    wo_bd = jax.scipy.linalg.block_diag(*([wo_scaled] * SEQ_LEN))         # (32,768)
    wi_bd = jnp.pad(wi_bd, ((0, 0), (0, pad)))                            # (768,128)
    wo_bd = jnp.pad(wo_bd, ((0, pad), (0, 0)))                            # (128,768)

    bi_bd = jnp.pad(jnp.tile(fbi.astype(f32) + jnp.asarray(_SHIFT)[None, :],
                             (1, SEQ_LEN)), ((0, 0), (0, pad)))           # (1,128)
    bo_bd = jnp.tile(fbo.astype(f32), (1, SEQ_LEN))                       # (1,768)

    # fold encoder layer-2 into FSQ project_in (f32 products, bf16 cast last)
    w_ef = ew2.astype(f32) @ wi_bd                                        # (768,128)
    b_ef = eb2.astype(f32) @ wi_bd + bi_bd                                # (1,128)
    # fold FSQ project_out into decoder layer-1
    w_fd = wo_bd @ dw1.astype(f32)                                        # (128,768)
    b_fd = bo_bd @ dw1.astype(f32) + db1.astype(f32)                      # (1,768)

    half_l = jnp.pad(jnp.tile(jnp.asarray(_HALF_L)[None, :], (1, SEQ_LEN)),
                     ((0, 0), (0, pad)), constant_values=1.0)             # (1,128)
    offset = jnp.pad(jnp.tile(jnp.asarray(_OFFSET)[None, :], (1, SEQ_LEN)),
                     ((0, 0), (0, pad)))                                  # (1,128)

    bf16 = jnp.bfloat16
    return dict(
        ew1=ew1.astype(bf16), eb1=eb1,
        w_ef=w_ef.astype(bf16), b_ef=b_ef, half_l=half_l, offset=offset,
        w_fd=w_fd.astype(bf16), b_fd=b_fd,
        dw2=dw2.astype(bf16), db2=db2,
    )


_ARG_ORDER = ("ew1", "eb1", "w_ef", "b_ef", "half_l", "offset",
              "w_fd", "b_fd", "dw2", "db2")


def _round_up(x, m):
    return (x + m - 1) // m * m


def fused_autoencoder(x, packed):
    """x: (B, 768) gathered item embeddings -> (B, 768) reconstruction (f32)."""
    b = x.shape[0]
    pb = _round_up(max(b, 8), 8)          # pad only to a sublane multiple

    # row tile: <=512 rows; >=2 tiles whenever pb>=16 so both v7x TCs are used
    if pb < 16:
        tm = pb
    elif pb <= 1024:
        tm = _round_up(pl.cdiv(pb, 2), 8)
    else:
        tm = 512
    grid = pl.cdiv(pb, tm)                # ragged last tile handled by Pallas

    x = x.astype(jnp.bfloat16)            # bit-identical for the first MXU op
    if pb != b:
        x = jnp.pad(x, ((0, pb - b), (0, 0)))

    args = [packed[k] for k in _ARG_ORDER]

    weight_bytes = sum(int(np.prod(a.shape)) * a.dtype.itemsize for a in args)
    cost = pl.CostEstimate(
        flops=4 * pb * EMB_DIM * (EMB_DIM + FSQ_PAD),
        transcendentals=pb * FSQ_PAD,
        bytes_accessed=weight_bytes + pb * EMB_DIM * (2 + 4))

    in_specs = ([pl.BlockSpec((tm, EMB_DIM), lambda i: (i, 0))]
                + [pl.BlockSpec(a.shape, lambda i: (0, 0)) for a in args])

    out = pl.pallas_call(
        _fused_kernel,
        out_shape=jax.ShapeDtypeStruct((pb, EMB_DIM), jnp.float32),
        grid=(grid,),
        in_specs=in_specs,
        out_specs=pl.BlockSpec((tm, EMB_DIM), lambda i: (i, 0)),
        compiler_params=pltpu.CompilerParams(
            dimension_semantics=("parallel",),     # v7x: split row tiles over 2 TCs
            vmem_limit_bytes=32 * 1024 * 1024),    # fits v5e/v6e/v7x after the fold
        cost_estimate=cost,
    )(x, *args)
    return out[:b]


# ---------------------------------------------------------------------------
# AutoEncoder.forward equivalent
# ---------------------------------------------------------------------------
def autoencoder_forward(packed, item_embeddings, batch_ids):
    # TODO(synk): gather could be fused via scalar-prefetched ids + DMA gather.
    emb = jnp.take(item_embeddings, batch_ids, axis=0)        # (B, 768)
    return fused_autoencoder(emb, packed)                     # (B, 768) f32


# ---------------------------------------------------------------------------
# Deterministic parameter init (PyTorch-Linear-style uniform fan-in bounds)
# ---------------------------------------------------------------------------
def _linear_init(key, fan_in, fan_out):
    bound = 1.0 / np.sqrt(fan_in)
    kw, kb = jax.random.split(key)
    w = jax.random.uniform(kw, (fan_in, fan_out), jnp.float32, -bound, bound)
    b = jax.random.uniform(kb, (1, fan_out), jnp.float32, -bound, bound)
    return w, b


def init_params(key):
    ks = jax.random.split(key, 6)
    enc = _linear_init(ks[0], EMB_DIM, EMB_DIM) + _linear_init(ks[1], EMB_DIM, EMB_DIM)
    dec = _linear_init(ks[2], EMB_DIM, EMB_DIM) + _linear_init(ks[3], EMB_DIM, EMB_DIM)
    fsq = _linear_init(ks[4], CODE_DIM, N_LEVELS) + _linear_init(ks[5], N_LEVELS, CODE_DIM)
    return {"enc": enc, "dec": dec, "fsq": fsq}


if __name__ == "__main__":
    key = jax.random.PRNGKey(0)
    k_emb, k_par, k_ids = jax.random.split(key, 3)

    num_items = 50
    batch = 2
    item_embeddings = jax.random.normal(k_emb, (num_items, EMB_DIM), jnp.float32)
    params = init_params(k_par)
    packed = _pack_params(params)
    batch_ids = jax.random.randint(k_ids, (batch,), 0, num_items)

    dec = jax.jit(autoencoder_forward)(packed, item_embeddings, batch_ids)
    dec = jax.block_until_ready(dec)

    assert dec.shape == (batch, EMB_DIM)
    assert dec.dtype == jnp.float32
    assert bool(jnp.all(jnp.isfinite(dec)))
    print("KERNEL_OK")
</pallas_src>

<mosaic_0001>
module attributes {stable_mosaic.version = 11 : i64} {
  func.func @_fused_kernel(%arg0: i32, %arg1: memref<8x768xbf16, #tpu.memory_space<vmem>>, %arg2: memref<768x768xbf16, #tpu.memory_space<vmem>>, %arg3: memref<1x768xf32, #tpu.memory_space<vmem>>, %arg4: memref<768x128xbf16, #tpu.memory_space<vmem>>, %arg5: memref<1x128xf32, #tpu.memory_space<vmem>>, %arg6: memref<1x128xf32, #tpu.memory_space<vmem>>, %arg7: memref<1x128xf32, #tpu.memory_space<vmem>>, %arg8: memref<128x768xbf16, #tpu.memory_space<vmem>>, %arg9: memref<1x768xf32, #tpu.memory_space<vmem>>, %arg10: memref<768x768xbf16, #tpu.memory_space<vmem>>, %arg11: memref<1x768xf32, #tpu.memory_space<vmem>>, %arg12: memref<8x768xf32, #tpu.memory_space<vmem>>) attributes {dimension_semantics = [#tpu.dimension_semantics<parallel>], iteration_bounds = array<i64: 1>, scalar_prefetch = 0 : i64, scratch_operands = 0 : i64, tpu.core_type = #tpu.core_type<tc>, window_params = [{transform_indices = @transform_0, window_bounds = array<i64: 8, 768>}, {pipeline_mode = #tpu.pipeline_mode<synchronous>, transform_indices = @transform_1, window_bounds = array<i64: 768, 768>}, {pipeline_mode = #tpu.pipeline_mode<synchronous>, transform_indices = @transform_2, window_bounds = array<i64: 1, 768>}, {pipeline_mode = #tpu.pipeline_mode<synchronous>, transform_indices = @transform_3, window_bounds = array<i64: 768, 128>}, {pipeline_mode = #tpu.pipeline_mode<synchronous>, transform_indices = @transform_4, window_bounds = array<i64: 1, 128>}, {pipeline_mode = #tpu.pipeline_mode<synchronous>, transform_indices = @transform_5, window_bounds = array<i64: 1, 128>}, {pipeline_mode = #tpu.pipeline_mode<synchronous>, transform_indices = @transform_6, window_bounds = array<i64: 1, 128>}, {pipeline_mode = #tpu.pipeline_mode<synchronous>, transform_indices = @transform_7, window_bounds = array<i64: 128, 768>}, {pipeline_mode = #tpu.pipeline_mode<synchronous>, transform_indices = @transform_8, window_bounds = array<i64: 1, 768>}, {pipeline_mode = #tpu.pipeline_mode<synchronous>, transform_indices = @transform_9, window_bounds = array<i64: 768, 768>}, {pipeline_mode = #tpu.pipeline_mode<synchronous>, transform_indices = @transform_10, window_bounds = array<i64: 1, 768>}, {transform_indices = @transform_11, window_bounds = array<i64: 8, 768>}]} {
    %c0 = arith.constant 0 : index
    %c0_0 = arith.constant 0 : index
    %0 = vector.load %arg1[%c0, %c0_0] : memref<8x768xbf16, #tpu.memory_space<vmem>>, vector<8x768xbf16>
    %c0_1 = arith.constant 0 : index
    %c0_2 = arith.constant 0 : index
    %1 = vector.load %arg2[%c0_1, %c0_2] : memref<768x768xbf16, #tpu.memory_space<vmem>>, vector<768x768xbf16>
    %cst = arith.constant dense<0.000000e+00> : vector<8x768xf32>
    %2 = tpu.matmul %0, %1, %cst {dimension_numbers = #tpu.dot_dimension_numbers<[1], [0], [0], [1], [0, 0, 1, 1], [], []>} : vector<8x768xbf16>, vector<768x768xbf16>, vector<8x768xf32> -> vector<8x768xf32>
    %c0_3 = arith.constant 0 : index
    %c0_4 = arith.constant 0 : index
    %3 = vector.load %arg3[%c0_3, %c0_4] : memref<1x768xf32, #tpu.memory_space<vmem>>, vector<1x768xf32>
    %4 = vector.broadcast %3 : vector<1x768xf32> to vector<8x768xf32>
    %5 = arith.addf %2, %4 : vector<8x768xf32>
    %cst_5 = arith.constant 0.000000e+00 : f32
    %6 = vector.broadcast %cst_5 : f32 to vector<8x768xf32>
    %7 = arith.maximumf %5, %6 : vector<8x768xf32>
    %8 = arith.truncf %7 : vector<8x768xf32> to vector<8x768xbf16>
    %c0_6 = arith.constant 0 : index
    %c0_7 = arith.constant 0 : index
    %9 = vector.load %arg4[%c0_6, %c0_7] : memref<768x128xbf16, #tpu.memory_space<vmem>>, vector<768x128xbf16>
    %cst_8 = arith.constant dense<0.000000e+00> : vector<8x128xf32>
    %10 = tpu.matmul %8, %9, %cst_8 {dimension_numbers = #tpu.dot_dimension_numbers<[1], [0], [0], [1], [0, 0, 1, 1], [], []>} : vector<8x768xbf16>, vector<768x128xbf16>, vector<8x128xf32> -> vector<8x128xf32>
    %c0_9 = arith.constant 0 : index
    %c0_10 = arith.constant 0 : index
    %11 = vector.load %arg5[%c0_9, %c0_10] : memref<1x128xf32, #tpu.memory_space<vmem>>, vector<1x128xf32>
    %12 = vector.broadcast %11 : vector<1x128xf32> to vector<8x128xf32>
    %13 = arith.addf %10, %12 : vector<8x128xf32>
    %14 = math.tanh %13 : vector<8x128xf32>
    %c0_11 = arith.constant 0 : index
    %c0_12 = arith.constant 0 : index
    %15 = vector.load %arg6[%c0_11, %c0_12] : memref<1x128xf32, #tpu.memory_space<vmem>>, vector<1x128xf32>
    %16 = vector.broadcast %15 : vector<1x128xf32> to vector<8x128xf32>
    %17 = arith.mulf %14, %16 : vector<8x128xf32>
    %c0_13 = arith.constant 0 : index
    %c0_14 = arith.constant 0 : index
    %18 = vector.load %arg7[%c0_13, %c0_14] : memref<1x128xf32, #tpu.memory_space<vmem>>, vector<1x128xf32>
    %19 = vector.broadcast %18 : vector<1x128xf32> to vector<8x128xf32>
    %20 = arith.subf %17, %19 : vector<8x128xf32>
    %21 = math.roundeven %20 : vector<8x128xf32>
    %22 = arith.truncf %21 : vector<8x128xf32> to vector<8x128xbf16>
    %c0_15 = arith.constant 0 : index
    %c0_16 = arith.constant 0 : index
    %23 = vector.load %arg8[%c0_15, %c0_16] : memref<128x768xbf16, #tpu.memory_space<vmem>>, vector<128x768xbf16>
    %cst_17 = arith.constant dense<0.000000e+00> : vector<8x768xf32>
    %24 = tpu.matmul %22, %23, %cst_17 {dimension_numbers = #tpu.dot_dimension_numbers<[1], [0], [0], [1], [0, 0, 1, 1], [], []>} : vector<8x128xbf16>, vector<128x768xbf16>, vector<8x768xf32> -> vector<8x768xf32>
    %c0_18 = arith.constant 0 : index
    %c0_19 = arith.constant 0 : index
    %25 = vector.load %arg9[%c0_18, %c0_19] : memref<1x768xf32, #tpu.memory_space<vmem>>, vector<1x768xf32>
    %26 = vector.broadcast %25 : vector<1x768xf32> to vector<8x768xf32>
    %27 = arith.addf %24, %26 : vector<8x768xf32>
    %cst_20 = arith.constant 0.000000e+00 : f32
    %28 = vector.broadcast %cst_20 : f32 to vector<8x768xf32>
    %29 = arith.maximumf %27, %28 : vector<8x768xf32>
    %30 = arith.truncf %29 : vector<8x768xf32> to vector<8x768xbf16>
    %c0_21 = arith.constant 0 : index
    %c0_22 = arith.constant 0 : index
    %31 = vector.load %arg10[%c0_21, %c0_22] : memref<768x768xbf16, #tpu.memory_space<vmem>>, vector<768x768xbf16>
    %cst_23 = arith.constant dense<0.000000e+00> : vector<8x768xf32>
    %32 = tpu.matmul %30, %31, %cst_23 {dimension_numbers = #tpu.dot_dimension_numbers<[1], [0], [0], [1], [0, 0, 1, 1], [], []>} : vector<8x768xbf16>, vector<768x768xbf16>, vector<8x768xf32> -> vector<8x768xf32>
    %c0_24 = arith.constant 0 : index
    %c0_25 = arith.constant 0 : index
    %33 = vector.load %arg11[%c0_24, %c0_25] : memref<1x768xf32, #tpu.memory_space<vmem>>, vector<1x768xf32>
    %34 = vector.broadcast %33 : vector<1x768xf32> to vector<8x768xf32>
    %35 = arith.addf %32, %34 : vector<8x768xf32>
    %c0_26 = arith.constant 0 : index
    %c0_27 = arith.constant 0 : index
    %36 = vector.load %arg12[%c0_26, %c0_27] : memref<8x768xf32, #tpu.memory_space<vmem>>, vector<8x768xf32>
    tpu.vector_store %arg12[%c0_26, %c0_27], %35 {strides = array<i32>} : memref<8x768xf32, #tpu.memory_space<vmem>>, vector<8x768xf32>,
    return
  }
  func.func @transform_0(%arg0: i32) -> (i32, i32) {
    %c0_i32 = arith.constant 0 : i32
    %c0_i32_0 = arith.constant 0 : i32
    return %arg0, %c0_i32 : i32, i32
  }
  func.func @transform_1(%arg0: i32) -> (i32, i32) {
    %c0_i32 = arith.constant 0 : i32
    %c0_i32_0 = arith.constant 0 : i32
    %c0_i32_1 = arith.constant 0 : i32
    return %c0_i32, %c0_i32_0 : i32, i32
  }
  func.func @transform_2(%arg0: i32) -> (i32, i32) {
    %c0_i32 = arith.constant 0 : i32
    %c0_i32_0 = arith.constant 0 : i32
    %c0_i32_1 = arith.constant 0 : i32
    return %c0_i32, %c0_i32_0 : i32, i32
  }
  func.func @transform_3(%arg0: i32) -> (i32, i32) {
    %c0_i32 = arith.constant 0 : i32
    %c0_i32_0 = arith.constant 0 : i32
    %c0_i32_1 = arith.constant 0 : i32
    return %c0_i32, %c0_i32_0 : i32, i32
  }
  func.func @transform_4(%arg0: i32) -> (i32, i32) {
    %c0_i32 = arith.constant 0 : i32
    %c0_i32_0 = arith.constant 0 : i32
    %c0_i32_1 = arith.constant 0 : i32
    return %c0_i32, %c0_i32_0 : i32, i32
  }
  func.func @transform_5(%arg0: i32) -> (i32, i32) {
    %c0_i32 = arith.constant 0 : i32
    %c0_i32_0 = arith.constant 0 : i32
    %c0_i32_1 = arith.constant 0 : i32
    return %c0_i32, %c0_i32_0 : i32, i32
  }
  func.func @transform_6(%arg0: i32) -> (i32, i32) {
    %c0_i32 = arith.constant 0 : i32
    %c0_i32_0 = arith.constant 0 : i32
    %c0_i32_1 = arith.constant 0 : i32
    return %c0_i32, %c0_i32_0 : i32, i32
  }
  func.func @transform_7(%arg0: i32) -> (i32, i32) {
    %c0_i32 = arith.constant 0 : i32
    %c0_i32_0 = arith.constant 0 : i32
    %c0_i32_1 = arith.constant 0 : i32
    return %c0_i32, %c0_i32_0 : i32, i32
  }
  func.func @transform_8(%arg0: i32) -> (i32, i32) {
    %c0_i32 = arith.constant 0 : i32
    %c0_i32_0 = arith.constant 0 : i32
    %c0_i32_1 = arith.constant 0 : i32
    return %c0_i32, %c0_i32_0 : i32, i32
  }
  func.func @transform_9(%arg0: i32) -> (i32, i32) {
    %c0_i32 = arith.constant 0 : i32
    %c0_i32_0 = arith.constant 0 : i32
    %c0_i32_1 = arith.constant 0 : i32
    return %c0_i32, %c0_i32_0 : i32, i32
  }
  func.func @transform_10(%arg0: i32) -> (i32, i32) {
    %c0_i32 = arith.constant 0 : i32
    %c0_i32_0 = arith.constant 0 : i32
    %c0_i32_1 = arith.constant 0 : i32
    return %c0_i32, %c0_i32_0 : i32, i32
  }
  func.func @transform_11(%arg0: i32) -> (i32, i32) {
    %c0_i32 = arith.constant 0 : i32
    %c0_i32_0 = arith.constant 0 : i32
    return %arg0, %c0_i32 : i32, i32
  }
}

</mosaic_0001>

<bundles_post_ra>
// kernel: autoencoder_forward.1
= control target key start
LH: loop header
LB: loop body
LE: loop exit
PB: predicated region body
PF: predicated region fallthrough
CT: control target
= control target key end

     0   :  { %16 = vsyncpa [#allocation3], 0  ;;  %s7875_s0 = inlined_call_operand.vmem [shape: bf16[8,768], index: 0, kind: input, shape index: {}]   ;;  %s7876_s1 = inlined_call_operand.hbm [shape: bf16[768,768], index: 1, kind: input, shape index: {}]   ;;  %s7877_s2 = inlined_call_operand.hbm [shape: f32[1,768], index: 2, kind: input, shape index: {}]   ;;  %s7878_s3 = inlined_call_operand.hbm [shape: bf16[768,128], index: 3, kind: input, shape index: {}]   ;;  %s7879_s4 = inlined_call_operand.hbm [shape: f32[1,128], index: 4, kind: input, shape index: {}]   ;;  %s7880_s5 = inlined_call_operand.hbm [shape: f32[1,128], index: 5, kind: input, shape index: {}]   ;;  %s7881_s6 = inlined_call_operand.hbm [shape: f32[1,128], index: 6, kind: input, shape index: {}]   ;;  %s7882_s7 = inlined_call_operand.hbm [shape: bf16[128,768], index: 7, kind: input, shape index: {}]   ;;  %s7883_s8 = inlined_call_operand.hbm [shape: f32[1,768], index: 8, kind: input, shape index: {}]   ;;  %s7884_s9 = inlined_call_operand.hbm [shape: bf16[768,768], index: 9, kind: input, shape index: {}]   ;;  %s7885_s10 = inlined_call_operand.hbm [shape: f32[1,768], index: 10, kind: input, shape index: {}]   ;;  %s7886_s11 = inlined_call_operand.vmem [shape: f32[8,768], index: 11, kind: output, shape index: {}]  }
   0x1   :  { %17 = vsyncpa [#allocation5], 0 }
   0x2   :  { %18 = vsyncpa [#allocation8], 0 }
   0x3   :  { %19 = vsyncpa [#allocation11], 0 }
   0x4   :  { %20 = vsyncpa [#allocation14], 0 }
   0x5   :  { %21 = vsyncpa [#allocation17], 0  ;;  %s7503_s17 = smov [#allocation4]   ;;  %s7504_s19 = smov [#allocation7]  }
   0x6   :  { %s42_s18 = sshll.u32 %s7503_s17, 4  ;;  %s64_s20 = sshll.u32 %s7504_s19, 4  ;;  %s43_s18 = int_to_ptr.vmem [resolvable:$true] %s42_s18  ;;  %s65_s20 = int_to_ptr.vmem [resolvable:$true] %s64_s20 }
   0x7   :  { %s7271_s23 = scalar_lea.hbm %s7877_s2, 96 }
   0x8   :  { %p7272_p0 = scmp.ne.s32.totalorder %s7877_s2, %s7271_s23  ;;  %p7275_p1 = scmp.lt.u32.totalorder %s7271_s23, %s7877_s2 }
   0xa   :  { %p7277_p2 = pnand %p7275_p1, %p7272_p0 }
   0xc   :  { %7280 = shalt.err (!%p7277_p2)
}
   0xd   :  { %s7281_s28 = scalar_lea.vmem %s43_s18, 96  ;;  %p7286_p4 = scmp.lt.s32.totalorder %s43_s18, %s43_s18 }
   0xe   :  { %p7282_p3 = scmp.ne.s32.totalorder %s43_s18, %s7281_s28  ;;  %p7287_p5 = scmp.lt.s32.totalorder %s7281_s28, %s7281_s28 }
  0x10   :  { %p7288_p6 = por %p7287_p5, %p7286_p4 }
  0x12   :  { %p7289_p7 = pnand %p7288_p6, %p7282_p3 }
  0x14   :  { %7292 = shalt.err (!%p7289_p7)
}
  0x15   :  { %45 = dma.hbm_to_vmem [thread:$0]  %s7877_s2, 96, %s43_s18, [#allocation5]  }
  0x16   :  { %s7293_s14 = scalar_lea.hbm %s7879_s4, 16 }
  0x17   :  { %p7294_p8 = scmp.ne.s32.totalorder %s7879_s4, %s7293_s14  ;;  %p7297_p9 = scmp.lt.u32.totalorder %s7293_s14, %s7879_s4 }
  0x19   :  { %p7299_p10 = pnand %p7297_p9, %p7294_p8 }
  0x1b   :  { %7302 = shalt.err (!%p7299_p10)
}
  0x1c   :  { %s7303_s21 = scalar_lea.vmem %s65_s20, 16  ;;  %s7307_s22 = scalar_lea.vmem %s65_s20, 32 }
  0x1d   :  { %p7304_p11 = scmp.ne.s32.totalorder %s65_s20, %s7303_s21  ;;  %p7308_p12 = scmp.lt.s32.totalorder %s65_s20, %s65_s20 }
  0x1e   :  { %p7309_p13 = scmp.lt.s32.totalorder %s7307_s22, %s7303_s21 }
  0x20   :  { %p7310_p0 = por %p7309_p13, %p7308_p12 }
  0x22   :  { %p7311_p1 = pnand %p7310_p0, %p7304_p11 }
  0x24   :  { %7314 = shalt.err (!%p7311_p1)
}
  0x25   :  { %67 = dma.hbm_to_vmem [thread:$0]  %s7879_s4, 16, %s65_s20, [#allocation8]  }
  0x26   :  { %s7505_s23 = smov [#allocation10]   ;;  %s7506_s25 = smov [#allocation13]  }
  0x27   :  { %s84_s24 = sshll.u32 %s7505_s23, 4  ;;  %s106_s26 = sshll.u32 %s7506_s25, 4  ;;  %s85_s24 = int_to_ptr.vmem [resolvable:$true] %s84_s24  ;;  %s107_s26 = int_to_ptr.vmem [resolvable:$true] %s106_s26 }
  0x28   :  { %s7315_s29 = scalar_lea.hbm %s7881_s6, 16 }
  0x29   :  { %p7316_p2 = scmp.ne.s32.totalorder %s7881_s6, %s7315_s29  ;;  %p7319_p3 = scmp.lt.u32.totalorder %s7315_s29, %s7881_s6 }
  0x2b   :  { %p7321_p4 = pnand %p7319_p3, %p7316_p2 }
  0x2d   :  { %7324 = shalt.err (!%p7321_p4)
}
  0x2e   :  { %s7325_s4 = scalar_lea.vmem %s85_s24, 16  ;;  %s7329_s20 = scalar_lea.vmem %s85_s24, 32 }
  0x2f   :  { %p7326_p5 = scmp.ne.s32.totalorder %s85_s24, %s7325_s4  ;;  %p7330_p6 = scmp.lt.s32.totalorder %s85_s24, %s85_s24 }
  0x30   :  { %p7331_p7 = scmp.lt.s32.totalorder %s7329_s20, %s7325_s4 }
  0x32   :  { %p7332_p8 = por %p7331_p7, %p7330_p6 }
  0x34   :  { %p7333_p9 = pnand %p7332_p8, %p7326_p5 }
  0x36   :  { %7336 = shalt.err (!%p7333_p9)
}
  0x37   :  { %87 = dma.hbm_to_vmem [thread:$0]  %s7881_s6, 16, %s85_s24, [#allocation11]  }
  0x38   :  { %s7337_s21 = scalar_lea.hbm %s7883_s8, 96 }
  0x39   :  { %p7338_p10 = scmp.ne.s32.totalorder %s7883_s8, %s7337_s21  ;;  %p7341_p11 = scmp.lt.u32.totalorder %s7337_s21, %s7883_s8 }
  0x3b   :  { %p7343_p12 = pnand %p7341_p11, %p7338_p10 }
  0x3d   :  { %7346 = shalt.err (!%p7343_p12)
}
  0x3e   :  { %s7347_s25 = scalar_lea.vmem %s107_s26, 96  ;;  %p7352_p0 = scmp.lt.s32.totalorder %s107_s26, %s107_s26 }
  0x3f   :  { %p7348_p13 = scmp.ne.s32.totalorder %s107_s26, %s7347_s25  ;;  %p7353_p1 = scmp.lt.s32.totalorder %s7347_s25, %s7347_s25 }
  0x41   :  { %p7354_p2 = por %p7353_p1, %p7352_p0 }
  0x43   :  { %p7355_p3 = pnand %p7354_p2, %p7348_p13 }
  0x45   :  { %7358 = shalt.err (!%p7355_p3)
}
  0x46   :  { %109 = dma.hbm_to_vmem [thread:$0]  %s7883_s8, 96, %s107_s26, [#allocation14]  }
  0x47   :  { %s7507_s27 = smov [#allocation2]   ;;  %s7359_s12 = scalar_lea.hbm %s7876_s1, 36864 }
  0x48   :  { %s29_s28 = sshll.u32 %s7507_s27, 4  ;;  %p7360_p4 = scmp.ne.s32.totalorder %s7876_s1, %s7359_s12  ;;  %s30_s28 = int_to_ptr.vmem [resolvable:$true] %s29_s28 }
  0x49   :  { %p7363_p5 = scmp.lt.u32.totalorder %s7359_s12, %s7876_s1 }
  0x4b   :  { %p7365_p6 = pnand %p7363_p5, %p7360_p4 }
  0x4d   :  { %7368 = shalt.err (!%p7365_p6)
}
  0x4e   :  { %s7369_s15 = scalar_lea.vmem %s30_s28, 36864  ;;  %p7374_p8 = scmp.lt.s32.totalorder %s30_s28, %s30_s28 }
  0x4f   :  { %p7370_p7 = scmp.ne.s32.totalorder %s30_s28, %s7369_s15  ;;  %p7375_p9 = scmp.lt.s32.totalorder %s7369_s15, %s7369_s15 }
  0x51   :  { %p7376_p10 = por %p7375_p9, %p7374_p8 }
  0x53   :  { %p7377_p11 = pnand %p7376_p10, %p7370_p7 }
  0x55   :  { %7380 = shalt.err (!%p7377_p11)
}
  0x56   :  { %s7508_s8 = smov 384   ;;  %s7509_s26 = smov 24  }
  0x57   :  { %35 = dma.hbm_to_vmem [thread:$0]  %s7876_s1, 36864, %s30_s28, [#allocation3], %s7508_s8, %s7508_s8, %s7509_s26  }
  0x58   :  { %s7510_s19 = smov [#allocation6]   ;;  %s7381_s18 = scalar_lea.hbm %s7878_s3, 6144 }
  0x59   :  { %s51_s21 = sshll.u32 %s7510_s19, 4  ;;  %p7382_p12 = scmp.ne.s32.totalorder %s7878_s3, %s7381_s18  ;;  %s52_s21 = int_to_ptr.vmem [resolvable:$true] %s51_s21 }
  0x5a   :  { %p7385_p13 = scmp.lt.u32.totalorder %s7381_s18, %s7878_s3 }
  0x5c   :  { %p7387_p0 = pnand %p7385_p13, %p7382_p12 }
  0x5e   :  { %7390 = shalt.err (!%p7387_p0)
}
  0x5f   :  { %s7391_s27 = scalar_lea.vmem %s52_s21, 6144  ;;  %p7396_p2 = scmp.lt.s32.totalorder %s52_s21, %s52_s21 }
  0x60   :  { %p7392_p1 = scmp.ne.s32.totalorder %s52_s21, %s7391_s27  ;;  %p7397_p3 = scmp.lt.s32.totalorder %s7391_s27, %s7391_s27 }
  0x62   :  { %p7398_p4 = por %p7397_p3, %p7396_p2 }
  0x64   :  { %p7399_p5 = pnand %p7398_p4, %p7392_p1 }
  0x66   :  { %7402 = shalt.err (!%p7399_p5)
}
  0x67   :  { %s7511_s1 = smov 64   ;;  %s7512_s28 = smov 4  }
  0x68   :  { %57 = dma.hbm_to_vmem [thread:$0]  %s7878_s3, 6144, %s52_s21, [#allocation5], %s7511_s1, %s7511_s1, %s7512_s28  }
  0x69   :  { %s7513_s12 = smov [#allocation9]   ;;  %s7514_s14 = smov [#allocation12]  }
  0x6a   :  { %s74_s13 = sshll.u32 %s7513_s12, 4  ;;  %s93_s4 = sshll.u32 %s7514_s14, 4  ;;  %s75_s13 = int_to_ptr.vmem [resolvable:$true] %s74_s13  ;;  %s7653_s4 = int_to_ptr.vmem [resolvable:$true] %s93_s4 }
  0x6b   :  { %s7403_s16 = scalar_lea.hbm %s7880_s5, 16 }
  0x6c   :  { %p7404_p6 = scmp.ne.s32.totalorder %s7880_s5, %s7403_s16  ;;  %p7407_p7 = scmp.lt.u32.totalorder %s7403_s16, %s7880_s5 }
  0x6e   :  { %p7409_p8 = pnand %p7407_p7, %p7404_p6 }
  0x70   :  { %7412 = shalt.err (!%p7409_p8)
}
  0x71   :  { %s7413_s3 = scalar_lea.vmem %s75_s13, 16  ;;  %s7417_s21 = scalar_lea.vmem %s75_s13, 32 }
  0x72   :  { %p7414_p9 = scmp.ne.s32.totalorder %s75_s13, %s7413_s3  ;;  %p7418_p10 = scmp.lt.s32.totalorder %s75_s13, %s75_s13 }
  0x73   :  { %p7419_p11 = scmp.lt.s32.totalorder %s7417_s21, %s7413_s3 }
  0x75   :  { %p7420_p12 = por %p7419_p11, %p7418_p10 }
  0x77   :  { %p7421_p13 = pnand %p7420_p12, %p7414_p9 }
  0x79   :  { %7424 = shalt.err (!%p7421_p13)
}
  0x7a   :  { %77 = dma.hbm_to_vmem [thread:$0]  %s7880_s5, 16, %s75_s13, [#allocation8]  }
  0x7b   :  { %s7425_s24 = scalar_lea.hbm %s7882_s7, 6144 }
  0x7c   :  { %p7426_p0 = scmp.ne.s32.totalorder %s7882_s7, %s7425_s24  ;;  %p7429_p1 = scmp.lt.u32.totalorder %s7425_s24, %s7882_s7 }
  0x7e   :  { %p7431_p2 = pnand %p7429_p1, %p7426_p0 }
  0x80   :  { %7434 = shalt.err (!%p7431_p2)
}
  0x81   :  { %s7435_s30 = scalar_lea.vmem %s7653_s4, 6144  ;;  %p7440_p4 = scmp.lt.s32.totalorder %s7653_s4, %s7653_s4 }
  0x82   :  { %p7436_p3 = scmp.ne.s32.totalorder %s7653_s4, %s7435_s30  ;;  %p7441_p5 = scmp.lt.s32.totalorder %s7435_s30, %s7435_s30 }
  0x84   :  { %p7442_p6 = por %p7441_p5, %p7440_p4 }
  0x86   :  { %p7443_p7 = pnand %p7442_p6, %p7436_p3 }
  0x88   :  { %7446 = shalt.err (!%p7443_p7)
}
  0x89   :  { %99 = dma.hbm_to_vmem [thread:$0]  %s7882_s7, 6144, %s7653_s4, [#allocation11], %s7508_s8, %s7508_s8, %s7509_s26  }
  0x8a   :  { %s7515_s13 = smov [#allocation15]   ;;  %s7516_s20 = smov [#allocation16]  }
  0x8b   :  { %s115_s14 = sshll.u32 %s7515_s13, 4  ;;  %s128_s15 = sshll.u32 %s7516_s20, 4  ;;  %s116_s14 = int_to_ptr.vmem [resolvable:$true] %s115_s14  ;;  %s129_s15 = int_to_ptr.vmem [resolvable:$true] %s128_s15 }
  0x8c   :  { %s7447_s19 = scalar_lea.hbm %s7884_s9, 36864 }
  0x8d   :  { %p7448_p8 = scmp.ne.s32.totalorder %s7884_s9, %s7447_s19  ;;  %p7451_p9 = scmp.lt.u32.totalorder %s7447_s19, %s7884_s9 }
  0x8f   :  { %p7453_p10 = pnand %p7451_p9, %p7448_p8 }
  0x91   :  { %7456 = shalt.err (!%p7453_p10)
}
  0x92   :  { %s7457_s7 = scalar_lea.vmem %s116_s14, 36864  ;;  %p7462_p12 = scmp.lt.s32.totalorder %s116_s14, %s116_s14 }
  0x93   :  { %p7458_p11 = scmp.ne.s32.totalorder %s116_s14, %s7457_s7  ;;  %p7463_p13 = scmp.lt.s32.totalorder %s7457_s7, %s7457_s7 }
  0x95   :  { %p7464_p0 = por %p7463_p13, %p7462_p12 }
  0x97   :  { %p7465_p1 = pnand %p7464_p0, %p7458_p11 }
  0x99   :  { %7468 = shalt.err (!%p7465_p1)
}
  0x9a   :  { %121 = dma.hbm_to_vmem [thread:$0]  %s7884_s9, 36864, %s116_s14, [#allocation14], %s7508_s8, %s7508_s8, %s7509_s26  }
  0x9b   :  { %s7469_s6 = scalar_lea.hbm %s7885_s10, 96 }
  0x9c   :  { %p7470_p2 = scmp.ne.s32.totalorder %s7885_s10, %s7469_s6  ;;  %p7473_p3 = scmp.lt.u32.totalorder %s7469_s6, %s7885_s10 }
  0x9e   :  { %p7475_p4 = pnand %p7473_p3, %p7470_p2 }
  0xa0   :  { %7478 = shalt.err (!%p7475_p4)
}
  0xa1   :  { %s7479_s29 = scalar_lea.vmem %s129_s15, 96  ;;  %p7484_p6 = scmp.lt.s32.totalorder %s129_s15, %s129_s15 }
  0xa2   :  { %p7480_p5 = scmp.ne.s32.totalorder %s129_s15, %s7479_s29  ;;  %p7485_p7 = scmp.lt.s32.totalorder %s7479_s29, %s7479_s29 }
  0xa4   :  { %p7486_p8 = por %p7485_p7, %p7484_p6 }
  0xa6   :  { %p7487_p9 = pnand %p7486_p8, %p7480_p5 }
  0xa8   :  { %7490 = shalt.err (!%p7487_p9)
}
  0xa9   :  { %131 = dma.hbm_to_vmem [thread:$0]  %s7885_s10, 96, %s129_s15, [#allocation17]  }
  0xaa   :  { %7491 = dma.done.wait [#allocation3], 36864  }
  0xab   :  { %7492 = vsyncadd [#allocation3], 4294930432 }
  0xac   :  { %7493 = dma.done.wait [#allocation5], 6240  }
  0xad   :  { %7494 = vsyncadd [#allocation5], 4294961056 }
  0xae   :  { %7495 = dma.done.wait [#allocation8], 32  }
  0xaf   :  { %7496 = vsyncadd [#allocation8], 4294967264 }
  0xb0   :  { %7497 = dma.done.wait [#allocation11], 6160  }
  0xb1   :  { %7498 = vsyncadd [#allocation11], 4294961136 }
  0xb2   :  { %7499 = dma.done.wait [#allocation14], 36960  }
  0xb3   :  { %7500 = vsyncadd [#allocation14], 4294930336 }
  0xb4   :  { %7501 = dma.done.wait [#allocation17], 96  }
  0xb5   :  { %7502 = vsyncadd [#allocation17], 4294967200  ;;  %v6279_v0 = vld [vmem:[#allocation2 + $0x4] ss:$24 sps:$4 sm:$0xff]   ;;  %v6283_v2 = vld [vmem:[#allocation2] ss:$24 sps:$4 sm:$0xff]  }
  0xb6   :  { %v6281_v1 = vld [vmem:[#allocation2 + $0x304] ss:$24 sps:$4 sm:$0xff]   ;;  %1947 = vmatprep.subr.bf16.mxu1 %v6279_v0  ;;  %v6284_v3 = vld [vmem:[#allocation2 + $0x300] ss:$24 sps:$4 sm:$0xff]   ;;  %v6285_v4 = vld [vmem:[#allocation2 + $0x34] ss:$24 sps:$4 sm:$0xff]  }
  0xb7   :  { %1988 = vmatprep.subr.bf16.mxu0 %v6281_v1  ;;  %1948 = vmatpush1.bf16.msra.mxu1 %v6283_v2  ;;  %v6287_v5 = vld [vmem:[#allocation2 + $0x334] ss:$24 sps:$4 sm:$0xff]   ;;  %v6289_v6 = vld [vmem:[#allocation2 + $0x30] ss:$24 sps:$4 sm:$0xff]   ;;  %v6291_v8 = vld [vmem:[#allocation2 + $0x64] ss:$24 sps:$4 sm:$0xff]  }
  0xb8   :  { %1989 = vmatpush1.bf16.msra.mxu0 %v6284_v3  ;;  %1949 = vmatprep.subr.bf16.mxu1 %v6285_v4  ;;  %v6290_v7 = vld [vmem:[#allocation2 + $0x330] ss:$24 sps:$4 sm:$0xff]   ;;  %v6293_v9 = vld [vmem:[#allocation2 + $0x364] ss:$24 sps:$4 sm:$0xff]   ;;  %v6295_v10 = vld [vmem:[#allocation2 + $0x60] ss:$24 sps:$4 sm:$0xff]  }
  0xb9   :  { %1990 = vmatprep.subr.bf16.mxu0 %v6287_v5  ;;  %v6296_v11 = vld [vmem:[#allocation2 + $0x360] ss:$24 sps:$4 sm:$0xff]   ;;  %v6297_v12 = vld [vmem:[#allocation2 + $0x94] ss:$24 sps:$4 sm:$0xff]   ;;  %v6301_v14 = vld [vmem:[#allocation2 + $0x90] ss:$24 sps:$4 sm:$0xff]  }
  0xba   :  { %v6299_v13 = vld [vmem:[#allocation2 + $0x394] ss:$24 sps:$4 sm:$0xff]   ;;  %v6302_v15 = vld [vmem:[#allocation2 + $0x390] ss:$24 sps:$4 sm:$0xff]   ;;  %v6303_v16 = vld [vmem:[#allocation2 + $0xc4] ss:$24 sps:$4 sm:$0xff]  }
  0xbb   :  { %1950 = vmatpush1.bf16.msra.mxu1 %v6289_v6  ;;  %v6305_v17 = vld [vmem:[#allocation2 + $0x3c4] ss:$24 sps:$4 sm:$0xff]   ;;  %v6307_v18 = vld [vmem:[#allocation2 + $0xc0] ss:$24 sps:$4 sm:$0xff]   ;;  %v6309_v20 = vld [vmem:[#allocation2 + $0xf4] ss:$24 sps:$4 sm:$0xff]  }
  0xbc   :  { %1991 = vmatpush1.bf16.msra.mxu0 %v6290_v7  ;;  %1951 = vmatprep.subr.bf16.mxu1 %v6291_v8  ;;  %v6308_v19 = vld [vmem:[#allocation2 + $0x3c0] ss:$24 sps:$4 sm:$0xff]   ;;  %v6311_v21 = vld [vmem:[#allocation2 + $0x3f4] ss:$24 sps:$4 sm:$0xff]   ;;  %v6313_v22 = vld [vmem:[#allocation2 + $0xf0] ss:$24 sps:$4 sm:$0xff]  }
  0xbd   :  { %1992 = vmatprep.subr.bf16.mxu0 %v6293_v9  ;;  %v6314_v23 = vld [vmem:[#allocation2 + $0x3f0] ss:$24 sps:$4 sm:$0xff]   ;;  %v6315_v24 = vld [vmem:[#allocation2 + $0x124] ss:$24 sps:$4 sm:$0xff]   ;;  %v6319_v26 = vld [vmem:[#allocation2 + $0x120] ss:$24 sps:$4 sm:$0xff]  }
  0xbe   :  { %v6317_v25 = vld [vmem:[#allocation2 + $0x424] ss:$24 sps:$4 sm:$0xff]   ;;  %v6320_v27 = vld [vmem:[#allocation2 + $0x420] ss:$24 sps:$4 sm:$0xff]   ;;  %v6321_v28 = vld [vmem:[#allocation2 + $0x154] ss:$24 sps:$4 sm:$0xff]  }
  0xbf   :  { %1952 = vmatpush1.bf16.msra.mxu1 %v6295_v10  ;;  %v6323_v29 = vld [vmem:[#allocation2 + $0x454] ss:$24 sps:$4 sm:$0xff]   ;;  %v6325_v30 = vld [vmem:[#allocation2 + $0x150] ss:$24 sps:$4 sm:$0xff]   ;;  %v6327_v32 = vld [vmem:[#allocation2 + $0x184] ss:$24 sps:$4 sm:$0xff]  }
  0xc0   :  { %1993 = vmatpush1.bf16.msra.mxu0 %v6296_v11  ;;  %1953 = vmatprep.subr.bf16.mxu1 %v6297_v12  ;;  %v6326_v31 = vld [vmem:[#allocation2 + $0x450] ss:$24 sps:$4 sm:$0xff]   ;;  %v6329_v33 = vld [vmem:[#allocation2 + $0x484] ss:$24 sps:$4 sm:$0xff]   ;;  %v6331_v34 = vld [vmem:[#allocation2 + $0x180] ss:$24 sps:$4 sm:$0xff]  }
  0xc1   :  { %1994 = vmatprep.subr.bf16.mxu0 %v6299_v13  ;;  %v6332_v35 = vld [vmem:[#allocation2 + $0x480] ss:$24 sps:$4 sm:$0xff]   ;;  %v6333_v36 = vld [vmem:[#allocation2 + $0x1b4] ss:$24 sps:$4 sm:$0xff]   ;;  %v6337_v38 = vld [vmem:[#allocation2 + $0x1b0] ss:$24 sps:$4 sm:$0xff]  }
  0xc2   :  { %v6335_v37 = vld [vmem:[#allocation2 + $0x4b4] ss:$24 sps:$4 sm:$0xff]   ;;  %v6338_v39 = vld [vmem:[#allocation2 + $0x4b0] ss:$24 sps:$4 sm:$0xff]   ;;  %v6339_v40 = vld [vmem:[#allocation2 + $0x1e4] ss:$24 sps:$4 sm:$0xff]  }
  0xc3   :  { %1954 = vmatpush1.bf16.msra.mxu1 %v6301_v14  ;;  %v6341_v41 = vld [vmem:[#allocation2 + $0x4e4] ss:$24 sps:$4 sm:$0xff]   ;;  %v6343_v42 = vld [vmem:[#allocation2 + $0x1e0] ss:$24 sps:$4 sm:$0xff]   ;;  %v6345_v44 = vld [vmem:[#allocation2 + $0x214] ss:$24 sps:$4 sm:$0xff]  }
  0xc4   :  { %1995 = vmatpush1.bf16.msra.mxu0 %v6302_v15  ;;  %1955 = vmatprep.subr.bf16.mxu1 %v6303_v16  ;;  %v6344_v43 = vld [vmem:[#allocation2 + $0x4e0] ss:$24 sps:$4 sm:$0xff]   ;;  %v6347_v45 = vld [vmem:[#allocation2 + $0x514] ss:$24 sps:$4 sm:$0xff]   ;;  %v6349_v49 = vld [vmem:[#allocation2 + $0x210] ss:$24 sps:$4 sm:$0xff]  }
  0xc5   :  { %1996 = vmatprep.subr.bf16.mxu0 %v6305_v17  ;;  %v163_v46 = vld [vmem:[%s7875_s0] sm:$0xff]  ;;  %v164_v48 = vld [vmem:[%s7875_s0 + $0x8] sm:$0xff]  ;;  %v6390_v11 = vld [vmem:[#allocation2 + $0x3c] ss:$24 sps:$4 sm:$0xff]  }
  0xc6   :  { %v7717_v47 = vcombine.high %v163_v46, %v163_v46  ;;  %v6350_v50 = vld [vmem:[#allocation2 + $0x510] ss:$24 sps:$4 sm:$0xff]   ;;  %v7722_v51 = vcombine.high %v164_v48, %v164_v48  ;;  %v6351_v52 = vld [vmem:[#allocation2 + $0x244] ss:$24 sps:$4 sm:$0xff]   ;;  %v6355_v54 = vld [vmem:[#allocation2 + $0x240] ss:$24 sps:$4 sm:$0xff]   ;;  %v7726_v6 = vcombine.low %v163_v46, %v163_v46  ;;  %v7728_v7 = vcombine.low %v164_v48, %v164_v48 }
  0xc7   :  { %1956 = vmatpush1.bf16.msra.mxu1 %v6307_v18  ;;  %v6353_v53 = vld [vmem:[#allocation2 + $0x544] ss:$24 sps:$4 sm:$0xff]   ;;  %v6356_v55 = vld [vmem:[#allocation2 + $0x540] ss:$24 sps:$4 sm:$0xff]   ;;  %v6357_v56 = vld [vmem:[#allocation2 + $0x274] ss:$24 sps:$4 sm:$0xff]  }
  0xc8   :  { %1997 = vmatpush1.bf16.msra.mxu0 %v6308_v19  ;;  %1957 = vmatprep.subr.bf16.mxu1 %v6309_v20  ;;  %v6359_v57 = vld [vmem:[#allocation2 + $0x574] ss:$24 sps:$4 sm:$0xff]   ;;  %v6361_v58 = vld [vmem:[#allocation2 + $0x270] ss:$24 sps:$4 sm:$0xff]   ;;  %v6363_v60 = vld [vmem:[#allocation2 + $0x2a4] ss:$24 sps:$4 sm:$0xff]  }
  0xc9   :  { %1998 = vmatprep.subr.bf16.mxu0 %v6311_v21  ;;  %1979 = vmatprep.mubr.bf16.mxu1 %v7717_v47  ;;  %v6362_v59 = vld [vmem:[#allocation2 + $0x570] ss:$24 sps:$4 sm:$0xff]   ;;  %v6365_v61 = vld [vmem:[#allocation2 + $0x5a4] ss:$24 sps:$4 sm:$0xff]   ;;  %v6367_v62 = vld [vmem:[#allocation2 + $0x2a0] ss:$24 sps:$4 sm:$0xff]  }
  0xca   :  { %2020 = vmatprep.mubr.bf16.mxu0 %v7722_v51  ;;  %v6368_v63 = vld [vmem:[#allocation2 + $0x5a0] ss:$24 sps:$4 sm:$0xff]   ;;  %v6369_v0 = vld [vmem:[#allocation2 + $0x2d4] ss:$24 sps:$4 sm:$0xff]   ;;  %v6373_v2 = vld [vmem:[#allocation2 + $0x2d0] ss:$24 sps:$4 sm:$0xff]  }
  0xcb   :  { %1958 = vmatpush1.bf16.msra.mxu1 %v6313_v22  ;;  %v6371_v1 = vld [vmem:[#allocation2 + $0x5d4] ss:$24 sps:$4 sm:$0xff]   ;;  %v6374_v3 = vld [vmem:[#allocation2 + $0x5d0] ss:$24 sps:$4 sm:$0xff]   ;;  %v6379_v4 = vld [vmem:[#allocation2 + $0x604] ss:$24 sps:$4 sm:$0xff]  }
  0xcc   :  { %1999 = vmatpush1.bf16.msra.mxu0 %v6314_v23  ;;  %1959 = vmatprep.subr.bf16.mxu1 %v6315_v24  ;;  %v6382_v5 = vld [vmem:[#allocation2 + $0xc] ss:$24 sps:$4 sm:$0xff]   ;;  %v6377_v8 = vld [vmem:[#allocation2 + $0x600] ss:$24 sps:$4 sm:$0xff]   ;;  %v6385_v12 = vld [vmem:[#allocation2 + $0x630] ss:$24 sps:$4 sm:$0xff]  }
  0xcd   :  { %2000 = vmatprep.subr.bf16.mxu0 %v6317_v25  ;;  %v6380_v9 = vld [vmem:[#allocation2 + $0x8] ss:$24 sps:$4 sm:$0xff]   ;;  %v6387_v10 = vld [vmem:[#allocation2 + $0x634] ss:$24 sps:$4 sm:$0xff]   ;;  %v6388_v13 = vld [vmem:[#allocation2 + $0x38] ss:$24 sps:$4 sm:$0xff]  }
  0xce   :  { %v6393_v14 = vld [vmem:[#allocation2 + $0x664] ss:$24 sps:$4 sm:$0xff]   ;;  %v6391_v16 = vld [vmem:[#allocation2 + $0x660] ss:$24 sps:$4 sm:$0xff]   ;;  %v6399_v18 = vld [vmem:[#allocation2 + $0x694] ss:$24 sps:$4 sm:$0xff]  }
  0xcf   :  { %1960 = vmatpush1.bf16.msra.mxu1 %v6319_v26  ;;  %v6396_v15 = vld [vmem:[#allocation2 + $0x6c] ss:$24 sps:$4 sm:$0xff]   ;;  %v6394_v17 = vld [vmem:[#allocation2 + $0x68] ss:$24 sps:$4 sm:$0xff]   ;;  %v6402_v19 = vld [vmem:[#allocation2 + $0x9c] ss:$24 sps:$4 sm:$0xff]  }
  0xd0   :  { %2001 = vmatpush1.bf16.msra.mxu0 %v6320_v27  ;;  %1961 = vmatprep.subr.bf16.mxu1 %v6321_v28  ;;  %v6397_v20 = vld [vmem:[#allocation2 + $0x690] ss:$24 sps:$4 sm:$0xff]   ;;  %v6405_v22 = vld [vmem:[#allocation2 + $0x6c4] ss:$24 sps:$4 sm:$0xff]   ;;  %v6403_v24 = vld [vmem:[#allocation2 + $0x6c0] ss:$24 sps:$4 sm:$0xff]  }
  0xd1   :  { %2002 = vmatprep.subr.bf16.mxu0 %v6323_v29  ;;  %v6400_v21 = vld [vmem:[#allocation2 + $0x98] ss:$24 sps:$4 sm:$0xff]   ;;  %v6408_v23 = vld [vmem:[#allocation2 + $0xcc] ss:$24 sps:$4 sm:$0xff]   ;;  %v6406_v25 = vld [vmem:[#allocation2 + $0xc8] ss:$24 sps:$4 sm:$0xff]  }
  0xd2   :  { %v6411_v26 = vld [vmem:[#allocation2 + $0x6f4] ss:$24 sps:$4 sm:$0xff]   ;;  %v6409_v28 = vld [vmem:[#allocation2 + $0x6f0] ss:$24 sps:$4 sm:$0xff]  }
  0xd3   :  { %1962 = vmatpush1.bf16.msra.mxu1 %v6325_v30  ;;  %v6414_v27 = vld [vmem:[#allocation2 + $0xfc] ss:$24 sps:$4 sm:$0xff]   ;;  %v6412_v29 = vld [vmem:[#allocation2 + $0xf8] ss:$24 sps:$4 sm:$0xff]  }
  0xd4   :  { %2003 = vmatpush1.bf16.msra.mxu0 %v6326_v31  ;;  %1963 = vmatprep.subr.bf16.mxu1 %v6327_v32  ;;  %v6417_v30 = vld [vmem:[#allocation2 + $0x724] ss:$24 sps:$4 sm:$0xff]   ;;  %v7736_v32 = vld [vmem:[%s7875_s0 + $0x10] sm:$0xff] }
  0xd5   :  { %2004 = vmatprep.subr.bf16.mxu0 %v6329_v33  ;;  %v6420_v31 = vld [vmem:[#allocation2 + $0x12c] ss:$24 sps:$4 sm:$0xff]   ;;  %v6415_v33 = vld [vmem:[#allocation2 + $0x720] ss:$24 sps:$4 sm:$0xff]   ;;  %v6433_v46 = vld [vmem:[#allocation2 + $0x7b0] ss:$24 sps:$4 sm:$0xff]  }
  0xd6   :  { %v6436_v48 = vld [vmem:[#allocation2 + $0x1b8] ss:$24 sps:$4 sm:$0xff]  }
  0xd7   :  { %1964 = vmatpush1.bf16.msra.mxu1 %v6331_v34  ;;  %v7740_v34 = vcombine.high %v7736_v32, %v7736_v32 }
  0xd8   :  { %2005 = vmatpush1.bf16.msra.mxu0 %v6332_v35  ;;  %1965 = vmatprep.subr.bf16.mxu1 %v6333_v36  ;;  %v6418_v35 = vld [vmem:[#allocation2 + $0x128] ss:$24 sps:$4 sm:$0xff]   ;;  %v6423_v36 = vld [vmem:[#allocation2 + $0x754] ss:$24 sps:$4 sm:$0xff]  }
  0xd9   :  { %2006 = vmatprep.subr.bf16.mxu0 %v6335_v37  ;;  %v6426_v37 = vld [vmem:[#allocation2 + $0x15c] ss:$24 sps:$4 sm:$0xff]  }
  0xdb   :  { %1966 = vmatpush1.bf16.msra.mxu1 %v6337_v38  ;;  %v6421_v38 = vld [vmem:[#allocation2 + $0x750] ss:$24 sps:$4 sm:$0xff]  }
  0xdc   :  { %2007 = vmatpush1.bf16.msra.mxu0 %v6338_v39  ;;  %1967 = vmatprep.subr.bf16.mxu1 %v6339_v40  ;;  %v6424_v39 = vld [vmem:[#allocation2 + $0x158] ss:$24 sps:$4 sm:$0xff]   ;;  %v6429_v40 = vld [vmem:[#allocation2 + $0x784] ss:$24 sps:$4 sm:$0xff]  }
  0xdd   :  { %2008 = vmatprep.subr.bf16.mxu0 %v6341_v41  ;;  %v6432_v41 = vld [vmem:[#allocation2 + $0x18c] ss:$24 sps:$4 sm:$0xff]  }
  0xdf   :  { %1968 = vmatpush1.bf16.msra.mxu1 %v6343_v42  ;;  %v6427_v42 = vld [vmem:[#allocation2 + $0x780] ss:$24 sps:$4 sm:$0xff]  }
  0xe0   :  { %2009 = vmatpush1.bf16.msra.mxu0 %v6344_v43  ;;  %1969 = vmatprep.subr.bf16.mxu1 %v6345_v44  ;;  %v6430_v43 = vld [vmem:[#allocation2 + $0x188] ss:$24 sps:$4 sm:$0xff]   ;;  %v6435_v44 = vld [vmem:[#allocation2 + $0x7b4] ss:$24 sps:$4 sm:$0xff]  }
  0xe1   :  { %2010 = vmatprep.subr.bf16.mxu0 %v6347_v45  ;;  %v6438_v45 = vld [vmem:[#allocation2 + $0x1bc] ss:$24 sps:$4 sm:$0xff]  }
  0xe3   :  { %1970 = vmatpush1.bf16.msra.mxu1 %v6349_v49  ;;  %v6441_v49 = vld [vmem:[#allocation2 + $0x7e4] ss:$24 sps:$4 sm:$0xff]  }
  0xe4   :  { %2011 = vmatpush1.bf16.msra.mxu0 %v6350_v50  ;;  %1971 = vmatprep.subr.bf16.mxu1 %v6351_v52  ;;  %v6444_v50 = vld [vmem:[#allocation2 + $0x1ec] ss:$24 sps:$4 sm:$0xff]   ;;  %v6439_v52 = vld [vmem:[#allocation2 + $0x7e0] ss:$24 sps:$4 sm:$0xff]  }
  0xe5   :  { %2012 = vmatprep.subr.bf16.mxu0 %v6353_v53  ;;  %v6442_v53 = vld [vmem:[#allocation2 + $0x1e8] ss:$24 sps:$4 sm:$0xff]  }
  0xe7   :  { %1972 = vmatpush1.bf16.msra.mxu1 %v6355_v54  ;;  %v6447_v54 = vld [vmem:[#allocation2 + $0x814] ss:$24 sps:$4 sm:$0xff]  }
  0xe8   :  { %2013 = vmatpush1.bf16.msra.mxu0 %v6356_v55  ;;  %1973 = vmatprep.subr.bf16.mxu1 %v6357_v56  ;;  %v6450_v55 = vld [vmem:[#allocation2 + $0x21c] ss:$24 sps:$4 sm:$0xff]   ;;  %v6445_v56 = vld [vmem:[#allocation2 + $0x810] ss:$24 sps:$4 sm:$0xff]  }
  0xe9   :  { %2014 = vmatprep.subr.bf16.mxu0 %v6359_v57  ;;  %v6448_v57 = vld [vmem:[#allocation2 + $0x218] ss:$24 sps:$4 sm:$0xff]  }
  0xeb   :  { %1974 = vmatpush1.bf16.msra.mxu1 %v6361_v58  ;;  %v6453_v58 = vld [vmem:[#allocation2 + $0x844] ss:$24 sps:$4 sm:$0xff]  }
  0xec   :  { %2015 = vmatpush1.bf16.msra.mxu0 %v6362_v59  ;;  %1975 = vmatprep.subr.bf16.mxu1 %v6363_v60  ;;  %v6456_v59 = vld [vmem:[#allocation2 + $0x24c] ss:$24 sps:$4 sm:$0xff]   ;;  %v6451_v60 = vld [vmem:[#allocation2 + $0x840] ss:$24 sps:$4 sm:$0xff]  }
  0xed   :  { %2016 = vmatprep.subr.bf16.mxu0 %v6365_v61  ;;  %v6454_v61 = vld [vmem:[#allocation2 + $0x248] ss:$24 sps:$4 sm:$0xff]  }
  0xef   :  { %1976 = vmatpush1.bf16.msra.mxu1 %v6367_v62  ;;  %v6459_v62 = vld [vmem:[#allocation2 + $0x874] ss:$24 sps:$4 sm:$0xff]  }
  0xf0   :  { %2017 = vmatpush1.bf16.msra.mxu0 %v6368_v63  ;;  %1977 = vmatprep.subr.bf16.mxu1 %v6369_v0  ;;  %v6462_v63 = vld [vmem:[#allocation2 + $0x27c] ss:$24 sps:$4 sm:$0xff]   ;;  %v6457_v0 = vld [vmem:[#allocation2 + $0x870] ss:$24 sps:$4 sm:$0xff]  }
  0xf1   :  { %2018 = vmatprep.subr.bf16.mxu0 %v6371_v1  ;;  %v6460_v1 = vld [vmem:[#allocation2 + $0x278] ss:$24 sps:$4 sm:$0xff]  }
  0xf3   :  { %1978 = vmatpush1.bf16.msra.mxu1 %v6373_v2  ;;  %v6465_v2 = vld [vmem:[#allocation2 + $0x8a4] ss:$24 sps:$4 sm:$0xff]  }
  0xf4   :  { %2019 = vmatpush1.bf16.msra.mxu0 %v6374_v3  ;;  %2070 = vmatprep.subr.bf16.mxu1 %v6382_v5  ;;  %v6468_v3 = vld [vmem:[#allocation2 + $0x2ac] ss:$24 sps:$4 sm:$0xff]   ;;  %v6466_v5 = vld [vmem:[#allocation2 + $0x2a8] ss:$24 sps:$4 sm:$0xff]  }
  0xf5   :  { %2029 = vmatprep.subr.bf16.mxu0 %v6379_v4  ;;  %v6463_v4 = vld [vmem:[#allocation2 + $0x8a0] ss:$24 sps:$4 sm:$0xff]  }
  0xf6   :  { %1980 = vmatmul.mubr.bf16.vlgmr.msra.gmra.mrb[0].mxu1 %v7726_v6 }
  0xf7   :  { %2021 = vmatmul.mubr.bf16.vlgmr.msra.gmra.mrb[0].mxu0 %v7728_v7  ;;  %2071 = vmatpush1.bf16.msra.mxu1 %v6380_v9  ;;  %v6474_v9 = vld [vmem:[#allocation2 + $0x2dc] ss:$24 sps:$4 sm:$0xff]  }
  0xf8   :  { %2030 = vmatpush1.bf16.msra.mxu0 %v6377_v8  ;;  %2072 = vmatprep.subr.bf16.mxu1 %v6390_v11  ;;  %v6471_v8 = vld [vmem:[#allocation2 + $0x8d4] ss:$24 sps:$4 sm:$0xff]   ;;  %v6472_v11 = vld [vmem:[#allocation2 + $0x2d8] ss:$24 sps:$4 sm:$0xff]  }
  0xf9   :  { %2031 = vmatprep.subr.bf16.mxu0 %v6387_v10  ;;  %2102 = vmatprep.mubr.bf16.mxu1 %v7717_v47  ;;  %v6469_v10 = vld [vmem:[#allocation2 + $0x8d0] ss:$24 sps:$4 sm:$0xff]  }
  0xfa   :  { %2061 = vmatprep.mubr.bf16.mxu0 %v7740_v34 }
  0xfb   :  { %2073 = vmatpush1.bf16.msra.mxu1 %v6388_v13  ;;  %v6482_v13 = vld [vmem:[#allocation2 + $0x14] ss:$24 sps:$4 sm:$0xff]  }
  0xfc   :  { %2032 = vmatpush1.bf16.msra.mxu0 %v6385_v12  ;;  %2074 = vmatprep.subr.bf16.mxu1 %v6396_v15  ;;  %v6479_v12 = vld [vmem:[#allocation2 + $0x30c] ss:$24 sps:$4 sm:$0xff]   ;;  %v6477_v15 = vld [vmem:[#allocation2 + $0x308] ss:$24 sps:$4 sm:$0xff]  }
  0xfd   :  { %2033 = vmatprep.subr.bf16.mxu0 %v6393_v14  ;;  %v7745_v14 = vcombine.low %v7736_v32, %v7736_v32  ;;  %v6509_v32 = vld [vmem:[#allocation2 + $0x3fc] ss:$24 sps:$4 sm:$0xff]  }
  0xff   :  { %2075 = vmatpush1.bf16.msra.mxu1 %v6394_v17  ;;  %v6485_v17 = vld [vmem:[#allocation2 + $0x33c] ss:$24 sps:$4 sm:$0xff]  }
 0x100   :  { %2034 = vmatpush1.bf16.msra.mxu0 %v6391_v16  ;;  %2076 = vmatprep.subr.bf16.mxu1 %v6402_v19  ;;  %v6480_v16 = vld [vmem:[#allocation2 + $0x10] ss:$24 sps:$4 sm:$0xff]  }
 0x101   :  { %2035 = vmatprep.subr.bf16.mxu0 %v6399_v18  ;;  %v6488_v18 = vld [vmem:[#allocation2 + $0x44] ss:$24 sps:$4 sm:$0xff]   ;;  %v6483_v19 = vld [vmem:[#allocation2 + $0x338] ss:$24 sps:$4 sm:$0xff]  }
 0x103   :  { %2077 = vmatpush1.bf16.msra.mxu1 %v6400_v21  ;;  %v6491_v21 = vld [vmem:[#allocation2 + $0x36c] ss:$24 sps:$4 sm:$0xff]  }
 0x104   :  { %2036 = vmatpush1.bf16.msra.mxu0 %v6397_v20  ;;  %2078 = vmatprep.subr.bf16.mxu1 %v6408_v23  ;;  %v6486_v20 = vld [vmem:[#allocation2 + $0x40] ss:$24 sps:$4 sm:$0xff]  }
 0x105   :  { %2037 = vmatprep.subr.bf16.mxu0 %v6405_v22  ;;  %v6494_v22 = vld [vmem:[#allocation2 + $0x74] ss:$24 sps:$4 sm:$0xff]   ;;  %v6489_v23 = vld [vmem:[#allocation2 + $0x368] ss:$24 sps:$4 sm:$0xff]  }
 0x107   :  { %2079 = vmatpush1.bf16.msra.mxu1 %v6406_v25  ;;  %v6497_v25 = vld [vmem:[#allocation2 + $0x39c] ss:$24 sps:$4 sm:$0xff]  }
 0x108   :  { %2038 = vmatpush1.bf16.msra.mxu0 %v6403_v24  ;;  %2080 = vmatprep.subr.bf16.mxu1 %v6414_v27  ;;  %v6492_v24 = vld [vmem:[#allocation2 + $0x70] ss:$24 sps:$4 sm:$0xff]  }
 0x109   :  { %2039 = vmatprep.subr.bf16.mxu0 %v6411_v26  ;;  %v6500_v26 = vld [vmem:[#allocation2 + $0xa4] ss:$24 sps:$4 sm:$0xff]   ;;  %v6495_v27 = vld [vmem:[#allocation2 + $0x398] ss:$24 sps:$4 sm:$0xff]  }
 0x10b   :  { %2081 = vmatpush1.bf16.msra.mxu1 %v6412_v29  ;;  %v6503_v29 = vld [vmem:[#allocation2 + $0x3cc] ss:$24 sps:$4 sm:$0xff]  }
 0x10c   :  { %2040 = vmatpush1.bf16.msra.mxu0 %v6409_v28  ;;  %2082 = vmatprep.subr.bf16.mxu1 %v6420_v31  ;;  %v6498_v28 = vld [vmem:[#allocation2 + $0xa0] ss:$24 sps:$4 sm:$0xff]  }
 0x10d   :  { %2041 = vmatprep.subr.bf16.mxu0 %v6417_v30  ;;  %v6506_v30 = vld [vmem:[#allocation2 + $0xd4] ss:$24 sps:$4 sm:$0xff]   ;;  %v6501_v31 = vld [vmem:[#allocation2 + $0x3c8] ss:$24 sps:$4 sm:$0xff]  }
 0x10f   :  { %2083 = vmatpush1.bf16.msra.mxu1 %v6418_v35  ;;  %v6507_v35 = vld [vmem:[#allocation2 + $0x3f8] ss:$24 sps:$4 sm:$0xff]  }
 0x110   :  { %2042 = vmatpush1.bf16.msra.mxu0 %v6415_v33  ;;  %2084 = vmatprep.subr.bf16.mxu1 %v6426_v37  ;;  %v6512_v33 = vld [vmem:[#allocation2 + $0x104] ss:$24 sps:$4 sm:$0xff]  }
 0x111   :  { %2043 = vmatprep.subr.bf16.mxu0 %v6423_v36  ;;  %v6510_v36 = vld [vmem:[#allocation2 + $0x100] ss:$24 sps:$4 sm:$0xff]   ;;  %v6515_v37 = vld [vmem:[#allocation2 + $0x42c] ss:$24 sps:$4 sm:$0xff]  }
 0x113   :  { %2085 = vmatpush1.bf16.msra.mxu1 %v6424_v39  ;;  %v6513_v39 = vld [vmem:[#allocation2 + $0x428] ss:$24 sps:$4 sm:$0xff]  }
 0x114   :  { %2044 = vmatpush1.bf16.msra.mxu0 %v6421_v38  ;;  %2086 = vmatprep.subr.bf16.mxu1 %v6432_v41  ;;  %v6518_v38 = vld [vmem:[#allocation2 + $0x134] ss:$24 sps:$4 sm:$0xff]  }
 0x115   :  { %2045 = vmatprep.subr.bf16.mxu0 %v6429_v40  ;;  %v6516_v40 = vld [vmem:[#allocation2 + $0x130] ss:$24 sps:$4 sm:$0xff]   ;;  %v6521_v41 = vld [vmem:[#allocation2 + $0x45c] ss:$24 sps:$4 sm:$0xff]  }
 0x117   :  { %2087 = vmatpush1.bf16.msra.mxu1 %v6430_v43  ;;  %v6519_v43 = vld [vmem:[#allocation2 + $0x458] ss:$24 sps:$4 sm:$0xff]  }
 0x118   :  { %2046 = vmatpush1.bf16.msra.mxu0 %v6427_v42  ;;  %2088 = vmatprep.subr.bf16.mxu1 %v6438_v45  ;;  %v6524_v42 = vld [vmem:[#allocation2 + $0x164] ss:$24 sps:$4 sm:$0xff]  }
 0x119   :  { %2047 = vmatprep.subr.bf16.mxu0 %v6435_v44  ;;  %v6522_v44 = vld [vmem:[#allocation2 + $0x160] ss:$24 sps:$4 sm:$0xff]   ;;  %v6527_v45 = vld [vmem:[#allocation2 + $0x48c] ss:$24 sps:$4 sm:$0xff]  }
 0x11b   :  { %2089 = vmatpush1.bf16.msra.mxu1 %v6436_v48  ;;  %v6525_v48 = vld [vmem:[#allocation2 + $0x488] ss:$24 sps:$4 sm:$0xff]  }
 0x11c   :  { %2048 = vmatpush1.bf16.msra.mxu0 %v6433_v46  ;;  %2090 = vmatprep.subr.bf16.mxu1 %v6444_v50  ;;  %v6530_v46 = vld [vmem:[#allocation2 + $0x194] ss:$24 sps:$4 sm:$0xff]  }
 0x11d   :  { %2049 = vmatprep.subr.bf16.mxu0 %v6441_v49  ;;  %v6528_v49 = vld [vmem:[#allocation2 + $0x190] ss:$24 sps:$4 sm:$0xff]   ;;  %v6533_v50 = vld [vmem:[#allocation2 + $0x4bc] ss:$24 sps:$4 sm:$0xff]  }
 0x11f   :  { %2091 = vmatpush1.bf16.msra.mxu1 %v6442_v53  ;;  %v6531_v53 = vld [vmem:[#allocation2 + $0x4b8] ss:$24 sps:$4 sm:$0xff]  }
 0x120   :  { %2050 = vmatpush1.bf16.msra.mxu0 %v6439_v52  ;;  %2092 = vmatprep.subr.bf16.mxu1 %v6450_v55  ;;  %v6536_v52 = vld [vmem:[#allocation2 + $0x1c4] ss:$24 sps:$4 sm:$0xff]  }
 0x121   :  { %2051 = vmatprep.subr.bf16.mxu0 %v6447_v54  ;;  %v6534_v54 = vld [vmem:[#allocation2 + $0x1c0] ss:$24 sps:$4 sm:$0xff]   ;;  %v6539_v55 = vld [vmem:[#allocation2 + $0x4ec] ss:$24 sps:$4 sm:$0xff]  }
 0x123   :  { %2093 = vmatpush1.bf16.msra.mxu1 %v6448_v57  ;;  %v6537_v57 = vld [vmem:[#allocation2 + $0x4e8] ss:$24 sps:$4 sm:$0xff]  }
 0x124   :  { %2052 = vmatpush1.bf16.msra.mxu0 %v6445_v56  ;;  %2094 = vmatprep.subr.bf16.mxu1 %v6456_v59  ;;  %v6542_v56 = vld [vmem:[#allocation2 + $0x1f4] ss:$24 sps:$4 sm:$0xff]  }
 0x125   :  { %2053 = vmatprep.subr.bf16.mxu0 %v6453_v58  ;;  %v6540_v58 = vld [vmem:[#allocation2 + $0x1f0] ss:$24 sps:$4 sm:$0xff]   ;;  %v6545_v59 = vld [vmem:[#allocation2 + $0x51c] ss:$24 sps:$4 sm:$0xff]  }
 0x127   :  { %2095 = vmatpush1.bf16.msra.mxu1 %v6454_v61  ;;  %v6543_v61 = vld [vmem:[#allocation2 + $0x518] ss:$24 sps:$4 sm:$0xff]  }
 0x128   :  { %2054 = vmatpush1.bf16.msra.mxu0 %v6451_v60  ;;  %2096 = vmatprep.subr.bf16.mxu1 %v6462_v63  ;;  %v6548_v60 = vld [vmem:[#allocation2 + $0x224] ss:$24 sps:$4 sm:$0xff]  }
 0x129   :  { %2055 = vmatprep.subr.bf16.mxu0 %v6459_v62  ;;  %v6546_v62 = vld [vmem:[#allocation2 + $0x220] ss:$24 sps:$4 sm:$0xff]   ;;  %v6551_v63 = vld [vmem:[#allocation2 + $0x54c] ss:$24 sps:$4 sm:$0xff]  }
 0x12b   :  { %2097 = vmatpush1.bf16.msra.mxu1 %v6460_v1  ;;  %v6549_v1 = vld [vmem:[#allocation2 + $0x548] ss:$24 sps:$4 sm:$0xff]  }
 0x12c   :  { %2056 = vmatpush1.bf16.msra.mxu0 %v6457_v0  ;;  %2098 = vmatprep.subr.bf16.mxu1 %v6468_v3  ;;  %v6554_v0 = vld [vmem:[#allocation2 + $0x254] ss:$24 sps:$4 sm:$0xff]  }
 0x12d   :  { %2057 = vmatprep.subr.bf16.mxu0 %v6465_v2  ;;  %v6552_v2 = vld [vmem:[#allocation2 + $0x250] ss:$24 sps:$4 sm:$0xff]   ;;  %v6557_v3 = vld [vmem:[#allocation2 + $0x57c] ss:$24 sps:$4 sm:$0xff]  }
 0x12f   :  { %2099 = vmatpush1.bf16.msra.mxu1 %v6466_v5  ;;  %v6555_v5 = vld [vmem:[#allocation2 + $0x578] ss:$24 sps:$4 sm:$0xff]  }
 0x130   :  { %2058 = vmatpush1.bf16.msra.mxu0 %v6463_v4  ;;  %2100 = vmatprep.subr.bf16.mxu1 %v6474_v9  ;;  %v6560_v4 = vld [vmem:[#allocation2 + $0x284] ss:$24 sps:$4 sm:$0xff]  }
 0x131   :  { %2059 = vmatprep.subr.bf16.mxu0 %v6471_v8  ;;  %v6558_v8 = vld [vmem:[#allocation2 + $0x280] ss:$24 sps:$4 sm:$0xff]   ;;  %v6563_v9 = vld [vmem:[#allocation2 + $0x5ac] ss:$24 sps:$4 sm:$0xff]  }
 0x133   :  { %2101 = vmatpush1.bf16.msra.mxu1 %v6472_v11  ;;  %v6561_v11 = vld [vmem:[#allocation2 + $0x5a8] ss:$24 sps:$4 sm:$0xff]  }
 0x134   :  { %2060 = vmatpush1.bf16.msra.mxu0 %v6469_v10  ;;  %2111 = vmatprep.subr.bf16.mxu1 %v6479_v12  ;;  %v6566_v10 = vld [vmem:[#allocation2 + $0x2b4] ss:$24 sps:$4 sm:$0xff]   ;;  %v6564_v12 = vld [vmem:[#allocation2 + $0x2b0] ss:$24 sps:$4 sm:$0xff]  }
 0x135   :  { %2193 = vmatprep.subr.bf16.mxu0 %v6482_v13  ;;  %v6569_v13 = vld [vmem:[#allocation2 + $0x5dc] ss:$24 sps:$4 sm:$0xff]  }
 0x136   :  { %2103 = vmatmul.mubr.bf16.vlgmr.msra.gmra.mrb[4].mxu1 %v7726_v6 }
 0x137   :  { %2062 = vmatmul.mubr.bf16.vlgmr.msra.gmra.mrb[0].mxu0 %v7745_v14  ;;  %2112 = vmatpush1.bf16.msra.mxu1 %v6477_v15  ;;  %v6572_v15 = vld [vmem:[#allocation2 + $0x2e4] ss:$24 sps:$4 sm:$0xff]  }
 0x138   :  { %2194 = vmatpush1.bf16.msra.mxu0 %v6480_v16  ;;  %2113 = vmatprep.subr.bf16.mxu1 %v6485_v17  ;;  %v6567_v16 = vld [vmem:[#allocation2 + $0x5d8] ss:$24 sps:$4 sm:$0xff]  }
 0x139   :  { %2195 = vmatprep.subr.bf16.mxu0 %v6488_v18  ;;  %2143 = vmatprep.mubr.bf16.mxu1 %v7722_v51  ;;  %v6570_v17 = vld [vmem:[#allocation2 + $0x2e0] ss:$24 sps:$4 sm:$0xff]   ;;  %v6575_v18 = vld [vmem:[#allocation2 + $0x60c] ss:$24 sps:$4 sm:$0xff]  }
 0x13a   :  { %2225 = vmatprep.mubr.bf16.mxu0 %v7717_v47  ;;  %v6504_v47 = vld [vmem:[#allocation2 + $0xd0] ss:$24 sps:$4 sm:$0xff]  }
 0x13b   :  { %2114 = vmatpush1.bf16.msra.mxu1 %v6483_v19  ;;  %v6578_v19 = vld [vmem:[#allocation2 + $0x314] ss:$24 sps:$4 sm:$0xff]  }
 0x13c   :  { %2196 = vmatpush1.bf16.msra.mxu0 %v6486_v20  ;;  %2115 = vmatprep.subr.bf16.mxu1 %v6491_v21  ;;  %v6573_v20 = vld [vmem:[#allocation2 + $0x608] ss:$24 sps:$4 sm:$0xff]  }
 0x13d   :  { %2197 = vmatprep.subr.bf16.mxu0 %v6494_v22  ;;  %v6576_v21 = vld [vmem:[#allocation2 + $0x310] ss:$24 sps:$4 sm:$0xff]   ;;  %v6581_v22 = vld [vmem:[#allocation2 + $0x63c] ss:$24 sps:$4 sm:$0xff]  }
 0x13f   :  { %2116 = vmatpush1.bf16.msra.mxu1 %v6489_v23  ;;  %v6584_v23 = vld [vmem:[#allocation2 + $0x344] ss:$24 sps:$4 sm:$0xff]  }
 0x140   :  { %2198 = vmatpush1.bf16.msra.mxu0 %v6492_v24  ;;  %2117 = vmatprep.subr.bf16.mxu1 %v6497_v25  ;;  %v6579_v24 = vld [vmem:[#allocation2 + $0x638] ss:$24 sps:$4 sm:$0xff]  }
 0x141   :  { %2199 = vmatprep.subr.bf16.mxu0 %v6500_v26  ;;  %v6582_v25 = vld [vmem:[#allocation2 + $0x340] ss:$24 sps:$4 sm:$0xff]   ;;  %v6587_v26 = vld [vmem:[#allocation2 + $0x66c] ss:$24 sps:$4 sm:$0xff]  }
 0x143   :  { %2118 = vmatpush1.bf16.msra.mxu1 %v6495_v27  ;;  %v6590_v27 = vld [vmem:[#allocation2 + $0x374] ss:$24 sps:$4 sm:$0xff]  }
 0x144   :  { %2200 = vmatpush1.bf16.msra.mxu0 %v6498_v28  ;;  %2119 = vmatprep.subr.bf16.mxu1 %v6503_v29  ;;  %v6585_v28 = vld [vmem:[#allocation2 + $0x668] ss:$24 sps:$4 sm:$0xff]  }
 0x145   :  { %2201 = vmatprep.subr.bf16.mxu0 %v6506_v30  ;;  %v6588_v29 = vld [vmem:[#allocation2 + $0x370] ss:$24 sps:$4 sm:$0xff]   ;;  %v6593_v30 = vld [vmem:[#allocation2 + $0x69c] ss:$24 sps:$4 sm:$0xff]  }
 0x147   :  { %2120 = vmatpush1.bf16.msra.mxu1 %v6501_v31  ;;  %v6596_v31 = vld [vmem:[#allocation2 + $0x3a4] ss:$24 sps:$4 sm:$0xff]  }
 0x148   :  { %2202 = vmatpush1.bf16.msra.mxu0 %v6504_v47  ;;  %2121 = vmatprep.subr.bf16.mxu1 %v6509_v32  ;;  %v6594_v47 = vld [vmem:[#allocation2 + $0x3a0] ss:$24 sps:$4 sm:$0xff]   ;;  %v6599_v32 = vld [vmem:[#allocation2 + $0x6cc] ss:$24 sps:$4 sm:$0xff]  }
 0x149   :  { %2203 = vmatprep.subr.bf16.mxu0 %v6512_v33  ;;  %v6602_v33 = vld [vmem:[#allocation2 + $0x3d4] ss:$24 sps:$4 sm:$0xff]  }
 0x14b   :  { %2122 = vmatpush1.bf16.msra.mxu1 %v6507_v35  ;;  %v6597_v35 = vld [vmem:[#allocation2 + $0x6c8] ss:$24 sps:$4 sm:$0xff]  }
 0x14c   :  { %2204 = vmatpush1.bf16.msra.mxu0 %v6510_v36  ;;  %2123 = vmatprep.subr.bf16.mxu1 %v6515_v37  ;;  %v6600_v36 = vld [vmem:[#allocation2 + $0x3d0] ss:$24 sps:$4 sm:$0xff]   ;;  %v6605_v37 = vld [vmem:[#allocation2 + $0x6fc] ss:$24 sps:$4 sm:$0xff]  }
 0x14d   :  { %2205 = vmatprep.subr.bf16.mxu0 %v6518_v38  ;;  %v6608_v38 = vld [vmem:[#allocation2 + $0x404] ss:$24 sps:$4 sm:$0xff]  }
 0x14f   :  { %2124 = vmatpush1.bf16.msra.mxu1 %v6513_v39  ;;  %v6606_v39 = vld [vmem:[#allocation2 + $0x400] ss:$24 sps:$4 sm:$0xff]  }
 0x150   :  { %2206 = vmatpush1.bf16.msra.mxu0 %v6516_v40  ;;  %2125 = vmatprep.subr.bf16.mxu1 %v6521_v41  ;;  %v6611_v40 = vld [vmem:[#allocation2 + $0x72c] ss:$24 sps:$4 sm:$0xff]  }
 0x151   :  { %2207 = vmatprep.subr.bf16.mxu0 %v6524_v42  ;;  %v6614_v41 = vld [vmem:[#allocation2 + $0x434] ss:$24 sps:$4 sm:$0xff]   ;;  %v6609_v42 = vld [vmem:[#allocation2 + $0x728] ss:$24 sps:$4 sm:$0xff]  }
 0x153   :  { %2126 = vmatpush1.bf16.msra.mxu1 %v6519_v43  ;;  %v6612_v43 = vld [vmem:[#allocation2 + $0x430] ss:$24 sps:$4 sm:$0xff]  }
 0x154   :  { %2208 = vmatpush1.bf16.msra.mxu0 %v6522_v44  ;;  %2127 = vmatprep.subr.bf16.mxu1 %v6527_v45  ;;  %v6617_v44 = vld [vmem:[#allocation2 + $0x75c] ss:$24 sps:$4 sm:$0xff]  }
 0x155   :  { %2209 = vmatprep.subr.bf16.mxu0 %v6530_v46  ;;  %v6620_v45 = vld [vmem:[#allocation2 + $0x464] ss:$24 sps:$4 sm:$0xff]   ;;  %v6615_v46 = vld [vmem:[#allocation2 + $0x758] ss:$24 sps:$4 sm:$0xff]  }
 0x157   :  { %2128 = vmatpush1.bf16.msra.mxu1 %v6525_v48  ;;  %v6618_v48 = vld [vmem:[#allocation2 + $0x460] ss:$24 sps:$4 sm:$0xff]  }
 0x158   :  { %2210 = vmatpush1.bf16.msra.mxu0 %v6528_v49  ;;  %2129 = vmatprep.subr.bf16.mxu1 %v6533_v50  ;;  %v6623_v49 = vld [vmem:[#allocation2 + $0x78c] ss:$24 sps:$4 sm:$0xff]  }
 0x159   :  { %2211 = vmatprep.subr.bf16.mxu0 %v6536_v52  ;;  %v6626_v50 = vld [vmem:[#allocation2 + $0x494] ss:$24 sps:$4 sm:$0xff]   ;;  %v6621_v52 = vld [vmem:[#allocation2 + $0x788] ss:$24 sps:$4 sm:$0xff]  }
 0x15b   :  { %2130 = vmatpush1.bf16.msra.mxu1 %v6531_v53  ;;  %v6624_v53 = vld [vmem:[#allocation2 + $0x490] ss:$24 sps:$4 sm:$0xff]  }
 0x15c   :  { %2212 = vmatpush1.bf16.msra.mxu0 %v6534_v54  ;;  %2131 = vmatprep.subr.bf16.mxu1 %v6539_v55  ;;  %v6629_v54 = vld [vmem:[#allocation2 + $0x7bc] ss:$24 sps:$4 sm:$0xff]  }
 0x15d   :  { %2213 = vmatprep.subr.bf16.mxu0 %v6542_v56  ;;  %v6632_v55 = vld [vmem:[#allocation2 + $0x4c4] ss:$24 sps:$4 sm:$0xff]   ;;  %v6627_v56 = vld [vmem:[#allocation2 + $0x7b8] ss:$24 sps:$4 sm:$0xff]  }
 0x15f   :  { %2132 = vmatpush1.bf16.msra.mxu1 %v6537_v57  ;;  %v6630_v57 = vld [vmem:[#allocation2 + $0x4c0] ss:$24 sps:$4 sm:$0xff]  }
 0x160   :  { %2214 = vmatpush1.bf16.msra.mxu0 %v6540_v58  ;;  %2133 = vmatprep.subr.bf16.mxu1 %v6545_v59  ;;  %v6635_v58 = vld [vmem:[#allocation2 + $0x7ec] ss:$24 sps:$4 sm:$0xff]  }
 0x161   :  { %2215 = vmatprep.subr.bf16.mxu0 %v6548_v60  ;;  %v6638_v59 = vld [vmem:[#allocation2 + $0x4f4] ss:$24 sps:$4 sm:$0xff]   ;;  %v6633_v60 = vld [vmem:[#allocation2 + $0x7e8] ss:$24 sps:$4 sm:$0xff]  }
 0x163   :  { %2134 = vmatpush1.bf16.msra.mxu1 %v6543_v61  ;;  %v6636_v61 = vld [vmem:[#allocation2 + $0x4f0] ss:$24 sps:$4 sm:$0xff]  }
 0x164   :  { %2216 = vmatpush1.bf16.msra.mxu0 %v6546_v62  ;;  %2135 = vmatprep.subr.bf16.mxu1 %v6551_v63  ;;  %v6641_v62 = vld [vmem:[#allocation2 + $0x81c] ss:$24 sps:$4 sm:$0xff]  }
 0x165   :  { %2217 = vmatprep.subr.bf16.mxu0 %v6554_v0  ;;  %v6644_v63 = vld [vmem:[#allocation2 + $0x524] ss:$24 sps:$4 sm:$0xff]   ;;  %v6639_v0 = vld [vmem:[#allocation2 + $0x818] ss:$24 sps:$4 sm:$0xff]  }
 0x167   :  { %2136 = vmatpush1.bf16.msra.mxu1 %v6549_v1  ;;  %v6642_v1 = vld [vmem:[#allocation2 + $0x520] ss:$24 sps:$4 sm:$0xff]  }
 0x168   :  { %2218 = vmatpush1.bf16.msra.mxu0 %v6552_v2  ;;  %2137 = vmatprep.subr.bf16.mxu1 %v6557_v3  ;;  %v6647_v2 = vld [vmem:[#allocation2 + $0x84c] ss:$24 sps:$4 sm:$0xff]  }
 0x169   :  { %2219 = vmatprep.subr.bf16.mxu0 %v6560_v4  ;;  %v6650_v3 = vld [vmem:[#allocation2 + $0x554] ss:$24 sps:$4 sm:$0xff]   ;;  %v6645_v4 = vld [vmem:[#allocation2 + $0x848] ss:$24 sps:$4 sm:$0xff]  }
 0x16b   :  { %2138 = vmatpush1.bf16.msra.mxu1 %v6555_v5  ;;  %v6648_v5 = vld [vmem:[#allocation2 + $0x550] ss:$24 sps:$4 sm:$0xff]  }
 0x16c   :  { %2220 = vmatpush1.bf16.msra.mxu0 %v6558_v8  ;;  %2139 = vmatprep.subr.bf16.mxu1 %v6563_v9  ;;  %v6653_v8 = vld [vmem:[#allocation2 + $0x87c] ss:$24 sps:$4 sm:$0xff]  }
 0x16d   :  { %2221 = vmatprep.subr.bf16.mxu0 %v6566_v10  ;;  %v6656_v9 = vld [vmem:[#allocation2 + $0x584] ss:$24 sps:$4 sm:$0xff]   ;;  %v6651_v10 = vld [vmem:[#allocation2 + $0x878] ss:$24 sps:$4 sm:$0xff]  }
 0x16f   :  { %2140 = vmatpush1.bf16.msra.mxu1 %v6561_v11  ;;  %v6654_v11 = vld [vmem:[#allocation2 + $0x580] ss:$24 sps:$4 sm:$0xff]  }
 0x170   :  { %2222 = vmatpush1.bf16.msra.mxu0 %v6564_v12  ;;  %2141 = vmatprep.subr.bf16.mxu1 %v6569_v13  ;;  %v6659_v12 = vld [vmem:[#allocation2 + $0x8ac] ss:$24 sps:$4 sm:$0xff]  }
 0x171   :  { %2223 = vmatprep.subr.bf16.mxu0 %v6572_v15  ;;  %v6662_v13 = vld [vmem:[#allocation2 + $0x5b4] ss:$24 sps:$4 sm:$0xff]   ;;  %v6657_v15 = vld [vmem:[#allocation2 + $0x8a8] ss:$24 sps:$4 sm:$0xff]  }
 0x173   :  { %2142 = vmatpush1.bf16.msra.mxu1 %v6567_v16  ;;  %v6660_v16 = vld [vmem:[#allocation2 + $0x5b0] ss:$24 sps:$4 sm:$0xff]  }
 0x174   :  { %2224 = vmatpush1.bf16.msra.mxu0 %v6570_v17  ;;  %2152 = vmatprep.subr.bf16.mxu1 %v6575_v18  ;;  %v6665_v17 = vld [vmem:[#allocation2 + $0x8dc] ss:$24 sps:$4 sm:$0xff]  }
 0x175   :  { %2234 = vmatprep.subr.bf16.mxu0 %v6578_v19  ;;  %v6668_v18 = vld [vmem:[#allocation2 + $0x5e4] ss:$24 sps:$4 sm:$0xff]   ;;  %v6663_v19 = vld [vmem:[#allocation2 + $0x8d8] ss:$24 sps:$4 sm:$0xff]  }
 0x176   :  { %2144 = vmatmul.mubr.bf16.vlgmr.msra.gmra.mrb[4].mxu1 %v7728_v7 }
 0x177   :  { %2226 = vmatmul.mubr.bf16.vlgmr.msra.gmra.mrb[4].mxu0 %v7726_v6  ;;  %2153 = vmatpush1.bf16.msra.mxu1 %v6573_v20  ;;  %v6591_v6 = vld [vmem:[#allocation2 + $0x698] ss:$24 sps:$4 sm:$0xff]  }
 0x178   :  { %2235 = vmatpush1.bf16.msra.mxu0 %v6576_v21  ;;  %2154 = vmatprep.subr.bf16.mxu1 %v6581_v22  ;;  %v6666_v20 = vld [vmem:[#allocation2 + $0x5e0] ss:$24 sps:$4 sm:$0xff]   ;;  %v6671_v21 = vld [vmem:[#allocation2 + $0x614] ss:$24 sps:$4 sm:$0xff]  }
 0x179   :  { %2236 = vmatprep.subr.bf16.mxu0 %v6584_v23  ;;  %2184 = vmatprep.mubr.bf16.mxu1 %v7740_v34  ;;  %v6717_v22 = vld [vmem:[#allocation6 + $0x40] sm:$0xff]  }
 0x17a   :  { %2266 = vmatprep.mubr.bf16.mxu0 %v7722_v51  ;;  %v6603_v51 = vld [vmem:[#allocation2 + $0x6f8] ss:$24 sps:$4 sm:$0xff]  }
 0x17b   :  { %2155 = vmatpush1.bf16.msra.mxu1 %v6579_v24  ;;  %v6669_v23 = vld [vmem:[#allocation2 + $0x610] ss:$24 sps:$4 sm:$0xff]  }
 0x17c   :  { %2237 = vmatpush1.bf16.msra.mxu0 %v6582_v25  ;;  %2156 = vmatprep.subr.bf16.mxu1 %v6587_v26  ;;  %v6718_v24 = vld [vmem:[#allocation6] sm:$0xff]   ;;  %v6719_v26 = vld [vmem:[#allocation6 + $0x48] sm:$0xff]  }
 0x17d   :  { %2238 = vmatprep.subr.bf16.mxu0 %v6590_v27  ;;  %v6674_v25 = vld [vmem:[#allocation2 + $0x644] ss:$24 sps:$4 sm:$0xff]   ;;  %v6672_v27 = vld [vmem:[#allocation2 + $0x640] ss:$24 sps:$4 sm:$0xff]  }
 0x17f   :  { %2157 = vmatpush1.bf16.msra.mxu1 %v6585_v28  ;;  %v6720_v28 = vld [vmem:[#allocation6 + $0x8] sm:$0xff]  }
 0x180   :  { %2239 = vmatpush1.bf16.msra.mxu0 %v6588_v29  ;;  %2158 = vmatprep.subr.bf16.mxu1 %v6593_v30  ;;  %v6677_v29 = vld [vmem:[#allocation2 + $0x674] ss:$24 sps:$4 sm:$0xff]  }
 0x181   :  { %2240 = vmatprep.subr.bf16.mxu0 %v6596_v31  ;;  %v6721_v30 = vld [vmem:[#allocation6 + $0x50] sm:$0xff]   ;;  %v6675_v31 = vld [vmem:[#allocation2 + $0x670] ss:$24 sps:$4 sm:$0xff]  }
 0x183   :  { %2159 = vmatpush1.bf16.msra.mxu1 %v6591_v6  ;;  %v6722_v6 = vld [vmem:[#allocation6 + $0x10] sm:$0xff]  }
 0x184   :  { %2241 = vmatpush1.bf16.msra.mxu0 %v6594_v47  ;;  %2160 = vmatprep.subr.bf16.mxu1 %v6599_v32  ;;  %v6680_v47 = vld [vmem:[#allocation2 + $0x6a4] ss:$24 sps:$4 sm:$0xff]  }
 0x185   :  { %2242 = vmatprep.subr.bf16.mxu0 %v6602_v33  ;;  %v6723_v32 = vld [vmem:[#allocation6 + $0x58] sm:$0xff]  }
 0x186   :  { %v6678_v33 = vld [vmem:[#allocation2 + $0x6a0] ss:$24 sps:$4 sm:$0xff]  }
 0x187   :  { %2161 = vmatpush1.bf16.msra.mxu1 %v6597_v35  ;;  %v6724_v35 = vld [vmem:[#allocation6 + $0x18] sm:$0xff]  }
 0x188   :  { %2243 = vmatpush1.bf16.msra.mxu0 %v6600_v36  ;;  %2162 = vmatprep.subr.bf16.mxu1 %v6605_v37  ;;  %v6683_v36 = vld [vmem:[#allocation2 + $0x6d4] ss:$24 sps:$4 sm:$0xff]   ;;  %v6681_v37 = vld [vmem:[#allocation2 + $0x6d0] ss:$24 sps:$4 sm:$0xff]  }
 0x189   :  { %2244 = vmatprep.subr.bf16.mxu0 %v6608_v38  ;;  %v6726_v38 = vld [vmem:[#allocation6 + $0x20] sm:$0xff]  }
 0x18b   :  { %2163 = vmatpush1.bf16.msra.mxu1 %v6603_v51  ;;  %v6727_v51 = vld [vmem:[#allocation6 + $0x68] sm:$0xff]  }
 0x18c   :  { %2245 = vmatpush1.bf16.msra.mxu0 %v6606_v39  ;;  %2164 = vmatprep.subr.bf16.mxu1 %v6611_v40  ;;  %v6684_v39 = vld [vmem:[#allocation2 + $0x700] ss:$24 sps:$4 sm:$0xff]   ;;  %v6728_v40 = vld [vmem:[#allocation6 + $0x28] sm:$0xff]  }
 0x18d   :  { %2246 = vmatprep.subr.bf16.mxu0 %v6614_v41  ;;  %v6689_v41 = vld [vmem:[#allocation2 + $0x734] ss:$24 sps:$4 sm:$0xff]  }
 0x18f   :  { %2165 = vmatpush1.bf16.msra.mxu1 %v6609_v42  ;;  %v6729_v42 = vld [vmem:[#allocation6 + $0x70] sm:$0xff]  }
 0x190   :  { %2247 = vmatpush1.bf16.msra.mxu0 %v6612_v43  ;;  %2166 = vmatprep.subr.bf16.mxu1 %v6617_v44  ;;  %v6687_v43 = vld [vmem:[#allocation2 + $0x730] ss:$24 sps:$4 sm:$0xff]  }
 0x191   :  { %2248 = vmatprep.subr.bf16.mxu0 %v6620_v45  ;;  %v6730_v45 = vld [vmem:[#allocation6 + $0x30] sm:$0xff]  }
 0x193   :  { %2167 = vmatpush1.bf16.msra.mxu1 %v6615_v46  ;;  %v6692_v46 = vld [vmem:[#allocation2 + $0x764] ss:$24 sps:$4 sm:$0xff]  }
 0x194   :  { %2249 = vmatpush1.bf16.msra.mxu0 %v6618_v48  ;;  %2168 = vmatprep.subr.bf16.mxu1 %v6623_v49  ;;  %v6731_v49 = vld [vmem:[#allocation6 + $0x78] sm:$0xff]  }
 0x195   :  { %2250 = vmatprep.subr.bf16.mxu0 %v6626_v50 }
 0x197   :  { %2169 = vmatpush1.bf16.msra.mxu1 %v6621_v52 }
 0x198   :  { %2251 = vmatpush1.bf16.msra.mxu0 %v6624_v53  ;;  %2170 = vmatprep.subr.bf16.mxu1 %v6629_v54  ;;  %v6690_v53 = vld [vmem:[#allocation2 + $0x760] ss:$24 sps:$4 sm:$0xff]  }
 0x199   :  { %2252 = vmatprep.subr.bf16.mxu0 %v6632_v55  ;;  %v6732_v54 = vld [vmem:[#allocation6 + $0x38] sm:$0xff]   ;;  %v6695_v55 = vld [vmem:[#allocation2 + $0x794] ss:$24 sps:$4 sm:$0xff]  }
 0x19b   :  { %2171 = vmatpush1.bf16.msra.mxu1 %v6627_v56  ;;  %v6733_v56 = vld [vmem:[#allocation6 + $0xc0] sm:$0xff]  }
 0x19c   :  { %2253 = vmatpush1.bf16.msra.mxu0 %v6630_v57  ;;  %2172 = vmatprep.subr.bf16.mxu1 %v6635_v58  ;;  %v6693_v57 = vld [vmem:[#allocation2 + $0x790] ss:$24 sps:$4 sm:$0xff]   ;;  %v6698_v58 = vld [vmem:[#allocation2 + $0x7c4] ss:$24 sps:$4 sm:$0xff]  }
 0x19d   :  { %2254 = vmatprep.subr.bf16.mxu0 %v6638_v59  ;;  %v6696_v59 = vld [vmem:[#allocation2 + $0x7c0] ss:$24 sps:$4 sm:$0xff]  }
 0x19f   :  { %2173 = vmatpush1.bf16.msra.mxu1 %v6633_v60  ;;  %v6701_v60 = vld [vmem:[#allocation2 + $0x7f4] ss:$24 sps:$4 sm:$0xff]  }
 0x1a0   :  { %2255 = vmatpush1.bf16.msra.mxu0 %v6636_v61  ;;  %2174 = vmatprep.subr.bf16.mxu1 %v6641_v62  ;;  %v6699_v61 = vld [vmem:[#allocation2 + $0x7f0] ss:$24 sps:$4 sm:$0xff]   ;;  %v6704_v62 = vld [vmem:[#allocation2 + $0x824] ss:$24 sps:$4 sm:$0xff]  }
 0x1a1   :  { %2256 = vmatprep.subr.bf16.mxu0 %v6644_v63  ;;  %v6702_v63 = vld [vmem:[#allocation2 + $0x820] ss:$24 sps:$4 sm:$0xff]  }
 0x1a3   :  { %2175 = vmatpush1.bf16.msra.mxu1 %v6639_v0  ;;  %v6707_v0 = vld [vmem:[#allocation2 + $0x854] ss:$24 sps:$4 sm:$0xff]  }
 0x1a4   :  { %2257 = vmatpush1.bf16.msra.mxu0 %v6642_v1  ;;  %2176 = vmatprep.subr.bf16.mxu1 %v6647_v2  ;;  %v6705_v1 = vld [vmem:[#allocation2 + $0x850] ss:$24 sps:$4 sm:$0xff]   ;;  %v6710_v2 = vld [vmem:[#allocation2 + $0x884] ss:$24 sps:$4 sm:$0xff]  }
 0x1a5   :  { %2258 = vmatprep.subr.bf16.mxu0 %v6650_v3  ;;  %v6708_v3 = vld [vmem:[#allocation2 + $0x880] ss:$24 sps:$4 sm:$0xff]  }
 0x1a7   :  { %2177 = vmatpush1.bf16.msra.mxu1 %v6645_v4  ;;  %v6713_v4 = vld [vmem:[#allocation2 + $0x8b4] ss:$24 sps:$4 sm:$0xff]  }
 0x1a8   :  { %2259 = vmatpush1.bf16.msra.mxu0 %v6648_v5  ;;  %2178 = vmatprep.subr.bf16.mxu1 %v6653_v8  ;;  %v6711_v5 = vld [vmem:[#allocation2 + $0x8b0] ss:$24 sps:$4 sm:$0xff]   ;;  %v6716_v8 = vld [vmem:[#allocation2 + $0x8e4] ss:$24 sps:$4 sm:$0xff]  }
 0x1a9   :  { %2260 = vmatprep.subr.bf16.mxu0 %v6656_v9  ;;  %v6714_v9 = vld [vmem:[#allocation2 + $0x8e0] ss:$24 sps:$4 sm:$0xff]  }
 0x1ab   :  { %2179 = vmatpush1.bf16.msra.mxu1 %v6651_v10  ;;  %v456_v10 = vlaneseq }
 0x1ac   :  { %2261 = vmatpush1.bf16.msra.mxu0 %v6654_v11  ;;  %2180 = vmatprep.subr.bf16.mxu1 %v6659_v12  ;;  %v7761_v12 = vld [vmem:[#allocation4] sm:$0x3f] }
 0x1ad   :  { %2262 = vmatprep.subr.bf16.mxu0 %v6662_v13  ;;  %v7759_v11 = vshrl.u32 %v456_v10, 7 }
 0x1af   :  { %2181 = vmatpush1.bf16.msra.mxu1 %v6657_v15  ;;  %v7764_v13 = vsub.s32 0, %v7759_v11  ;;  %v7767_v15 = vsub.s32 1, %v7759_v11  ;;  %v7784_v10 = vsub.s32 4, %v7759_v11 }
 0x1b0   :  { %2263 = vmatpush1.bf16.msra.mxu0 %v6660_v16  ;;  %2182 = vmatprep.subr.bf16.mxu1 %v6665_v17 }
 0x1b1   :  { %2264 = vmatprep.subr.bf16.mxu0 %v6668_v18  ;;  %v459_v16 = vrot.slane %v7761_v12, %v7764_v13  ;;  %v463_v17 = vrot.slane %v7761_v12, %v7767_v15 }
 0x1b3   :  { %2183 = vmatpush1.bf16.msra.mxu1 %v6663_v19 }
 0x1b4   :  { %2265 = vmatpush1.bf16.msra.mxu0 %v6666_v20  ;;  %6139 = vmatprep.subr.bf16.mxu1 %v6717_v22 }
 0x1b5   :  { %2275 = vmatprep.subr.bf16.mxu0 %v6671_v21 }
 0x1b6   :  { %2185 = vmatmul.mubr.bf16.vlgmr.msra.gmra.mrb[4].mxu1 %v7745_v14 }
 0x1b7   :  { %2267 = vmatmul.mubr.bf16.vlgmr.msra.gmra.mrb[4].mxu0 %v7728_v7  ;;  %6140 = vmatpush3.bf16.msra.mxu1 %v6718_v24  ;;  %v6725_v7 = vld [vmem:[#allocation6 + $0x60] sm:$0xff]  }
 0x1b8   :  { %2276 = vmatpush1.bf16.msra.mxu0 %v6669_v23  ;;  %2307 = vmatprep.mubr.bf16.mxu0 %v7740_v34  ;;  %v6686_v34 = vld [vmem:[#allocation2 + $0x704] ss:$24 sps:$4 sm:$0xff]  }
 0x1b9   :  { %2277 = vmatprep.subr.bf16.mxu0 %v6674_v25  ;;  %6141 = vmatprep.subr.bf16.mxu1 %v6719_v26 }
 0x1bb   :  { %6142 = vmatpush3.bf16.msra.mxu1 %v6720_v28  ;;  %v6734_v28 = vld [vmem:[#allocation6 + $0x80] sm:$0xff]  }
 0x1bc   :  { %2278 = vmatpush1.bf16.msra.mxu0 %v6672_v27  ;;  %6143 = vmatprep.subr.bf16.mxu1 %v6721_v30  ;;  %v6735_v30 = vld [vmem:[#allocation6 + $0xc8] sm:$0xff]  }
 0x1bd   :  { %2279 = vmatprep.subr.bf16.mxu0 %v6677_v29 }
 0x1bf   :  { %6144 = vmatpush3.bf16.msra.mxu1 %v6722_v6  ;;  %v6737_v6 = vld [vmem:[#allocation6 + $0xd0] sm:$0xff]  }
 0x1c0   :  { %2280 = vmatpush1.bf16.msra.mxu0 %v6675_v31  ;;  %6145 = vmatprep.subr.bf16.mxu1 %v6723_v32  ;;  %v6736_v31 = vld [vmem:[#allocation6 + $0x88] sm:$0xff]   ;;  %v6739_v32 = vld [vmem:[#allocation6 + $0xd8] sm:$0xff]  }
 0x1c1   :  { %2281 = vmatprep.subr.bf16.mxu0 %v6680_v47  ;;  %v6738_v47 = vld [vmem:[#allocation6 + $0x90] sm:$0xff]  }
 0x1c3   :  { %6146 = vmatpush3.bf16.msra.mxu1 %v6724_v35  ;;  %v6741_v35 = vld [vmem:[#allocation6 + $0xe0] sm:$0xff]  }
 0x1c4   :  { %2282 = vmatpush1.bf16.msra.mxu0 %v6678_v33  ;;  %6147 = vmatprep.subr.bf16.mxu1 %v6725_v7  ;;  %v6740_v33 = vld [vmem:[#allocation6 + $0x98] sm:$0xff]   ;;  %v6743_v7 = vld [vmem:[#allocation6 + $0xe8] sm:$0xff]  }
 0x1c5   :  { %2283 = vmatprep.subr.bf16.mxu0 %v6683_v36  ;;  %v6742_v36 = vld [vmem:[#allocation6 + $0xa0] sm:$0xff]  }
 0x1c7   :  { %6148 = vmatpush3.bf16.msra.mxu1 %v6726_v38  ;;  %v6745_v38 = vld [vmem:[#allocation6 + $0xf0] sm:$0xff]  }
 0x1c8   :  { %2284 = vmatpush1.bf16.msra.mxu0 %v6681_v37  ;;  %6149 = vmatprep.subr.bf16.mxu1 %v6727_v51  ;;  %v6744_v37 = vld [vmem:[#allocation6 + $0xa8] sm:$0xff]   ;;  %v6747_v51 = vld [vmem:[#allocation6 + $0xf8] sm:$0xff]  }
 0x1c9   :  { %2285 = vmatprep.subr.bf16.mxu0 %v6686_v34  ;;  %v1981_v44 = vpop.f32.mrb[0].mxu1  ;;  %v6746_v34 = vld [vmem:[#allocation6 + $0xb0] sm:$0xff]  }
 0x1ca   :  { %v1983_v48 = vpop.f32.mrb[1].mxu1  ;;  %v1982_v18 = vadd.f32 %v1981_v44, %v459_v16  ;;  %v7787_v16 = vsub.s32 5, %v7759_v11 }
 0x1cb   :  { %v1985_v50 = vpop.f32.mrb[2].mxu1  ;;  %6150 = vmatpush3.bf16.msra.mxu1 %v6728_v40  ;;  %v1984_v19 = vadd.f32 %v1983_v48, %v463_v17  ;;  %v6749_v40 = vld [vmem:[#allocation6 + $0x140] sm:$0xff]   ;;  %v475_v17 = vrot.slane %v7761_v12, %v7784_v10 }
 0x1cc   :  { %2286 = vmatpush1.bf16.msra.mxu0 %v6684_v39  ;;  %v1986_v52 = vpop.f32.mrb[3].mxu1  ;;  %6151 = vmatprep.subr.bf16.mxu1 %v6729_v42  ;;  %v6748_v39 = vld [vmem:[#allocation6 + $0xb8] sm:$0xff]   ;;  %v7777_v42 = vsub.s32 3, %v7759_v11 }
 0x1cd   :  { %2287 = vmatprep.subr.bf16.mxu0 %v6689_v41  ;;  %v7774_v41 = vsub.s32 2, %v7759_v11 }
 0x1ce   :  { %v471_v44 = vrot.slane %v7761_v12, %v7777_v42 }
 0x1cf   :  { %6152 = vmatpush3.bf16.msra.mxu1 %v6730_v45 }
 0x1d0   :  { %2288 = vmatpush1.bf16.msra.mxu0 %v6687_v43  ;;  %6153 = vmatprep.subr.bf16.mxu1 %v6731_v49  ;;  %v467_v43 = vrot.slane %v7761_v12, %v7774_v41 }
 0x1d1   :  { %2289 = vmatprep.subr.bf16.mxu0 %v6692_v46 }
 0x1d3   :  { %6154 = vmatpush3.bf16.msra.mxu1 %v6732_v54 }
 0x1d4   :  { %2290 = vmatpush1.bf16.msra.mxu0 %v6690_v53  ;;  %6161 = vmatprep.subr.bf16.mxu1 %v6733_v56  ;;  %v6750_v56 = vld [vmem:[#allocation6 + $0x100] sm:$0xff]  }
 0x1d5   :  { %2291 = vmatprep.subr.bf16.mxu0 %v6695_v55 }
 0x1d8   :  { %2292 = vmatpush1.bf16.msra.mxu0 %v6693_v57 }
 0x1d9   :  { %2293 = vmatprep.subr.bf16.mxu0 %v6698_v58  ;;  %v6751_v58 = vld [vmem:[#allocation6 + $0x148] sm:$0xff]  }
 0x1dc   :  { %2294 = vmatpush1.bf16.msra.mxu0 %v6696_v59  ;;  %v6752_v59 = vld [vmem:[#allocation6 + $0x108] sm:$0xff]  }
 0x1dd   :  { %2295 = vmatprep.subr.bf16.mxu0 %v6701_v60  ;;  %v6753_v60 = vld [vmem:[#allocation6 + $0x150] sm:$0xff]  }
 0x1e0   :  { %2296 = vmatpush1.bf16.msra.mxu0 %v6699_v61  ;;  %v6754_v61 = vld [vmem:[#allocation6 + $0x110] sm:$0xff]  }
 0x1e1   :  { %2297 = vmatprep.subr.bf16.mxu0 %v6704_v62  ;;  %v6755_v62 = vld [vmem:[#allocation6 + $0x158] sm:$0xff]  }
 0x1e4   :  { %2298 = vmatpush1.bf16.msra.mxu0 %v6702_v63  ;;  %v6756_v63 = vld [vmem:[#allocation6 + $0x118] sm:$0xff]  }
 0x1e5   :  { %2299 = vmatprep.subr.bf16.mxu0 %v6707_v0  ;;  %v6757_v0 = vld [vmem:[#allocation6 + $0x160] sm:$0xff]  }
 0x1e8   :  { %2300 = vmatpush1.bf16.msra.mxu0 %v6705_v1  ;;  %v6758_v1 = vld [vmem:[#allocation6 + $0x120] sm:$0xff]  }
 0x1e9   :  { %2301 = vmatprep.subr.bf16.mxu0 %v6710_v2  ;;  %v6759_v2 = vld [vmem:[#allocation6 + $0x168] sm:$0xff]  }
 0x1ec   :  { %2302 = vmatpush1.bf16.msra.mxu0 %v6708_v3  ;;  %v6760_v3 = vld [vmem:[#allocation6 + $0x128] sm:$0xff]  }
 0x1ed   :  { %2303 = vmatprep.subr.bf16.mxu0 %v6713_v4  ;;  %v6761_v4 = vld [vmem:[#allocation6 + $0x170] sm:$0xff]  }
 0x1f0   :  { %2304 = vmatpush1.bf16.msra.mxu0 %v6711_v5  ;;  %v6762_v5 = vld [vmem:[#allocation6 + $0x130] sm:$0xff]  }
 0x1f1   :  { %2305 = vmatprep.subr.bf16.mxu0 %v6716_v8  ;;  %v6763_v8 = vld [vmem:[#allocation6 + $0x178] sm:$0xff]  }
 0x1f4   :  { %2306 = vmatpush1.bf16.msra.mxu0 %v6714_v9  ;;  %v6764_v9 = vld [vmem:[#allocation6 + $0x138] sm:$0xff]  }
 0x1f7   :  { %2308 = vmatmul.mubr.bf16.vlgmr.msra.gmra.mrb[4].mxu0 %v7745_v14 }
 0x20a   :  { %v2063_v14 = vpop.f32.mrb[0].mxu0 }
 0x20b   :  { %v6206_v20 = vadd.f32 %v2063_v14, %v1982_v18  ;;  %v2065_v21 = vpop.f32.mrb[1].mxu0  ;;  %v479_v18 = vrot.slane %v7761_v12, %v7787_v16  ;;  %v6770_v12 = vld [vmem:[#allocation12 + $0x34] ss:$24 sps:$4 sm:$0xff]  }
 0x20c   :  { %v6208_v22 = vadd.f32 %v2065_v21, %v1984_v19  ;;  %v2067_v23 = vpop.f32.mrb[2].mxu0 }
 0x20d   :  { %v2316_v24 = vmax.f32 %v6206_v20, 0.0  ;;  %v2068_v25 = vpop.f32.mrb[3].mxu0 }
 0x20e   :  { %v2317_v26 = vmax.f32 %v6208_v22, 0.0 }
 0x20f   :  { %v2322_v29 = vpack.c.bf16 %v2316_v24, %v2316_v24 }
 0x210   :  { %v2323_v27 = vpack.c.bf16 %v2317_v26, %v2317_v26 }
 0x212   :  { %2751 = vmatprep.mubr.bf16.mxu1 %v2323_v27 }
 0x213   :  { %2752 = vmatmul.mubr.bf16.vlgmr.msra.gmra.mrb[8].mxu1 %v2322_v29 }
 0x214   :  { %6162 = vmatpush3.bf16.msra.mxu1 %v6734_v28 }
 0x215   :  { %6163 = vmatprep.subr.bf16.mxu1 %v6735_v30 }
 0x218   :  { %6164 = vmatpush3.bf16.msra.mxu1 %v6736_v31 }
 0x219   :  { %6165 = vmatprep.subr.bf16.mxu1 %v6737_v6  ;;  %v6765_v6 = vld [vmem:[#allocation12] ss:$24 sps:$4 sm:$0xff]  }
 0x21c   :  { %6166 = vmatpush3.bf16.msra.mxu1 %v6738_v47  ;;  %v6767_v47 = vld [vmem:[#allocation12 + $0x4] ss:$24 sps:$4 sm:$0xff]  }
 0x21d   :  { %6167 = vmatprep.subr.bf16.mxu1 %v6739_v32  ;;  %v6768_v32 = vld [vmem:[#allocation12 + $0x30] ss:$24 sps:$4 sm:$0xff]  }
 0x220   :  { %6168 = vmatpush3.bf16.msra.mxu1 %v6740_v33  ;;  %v6773_v33 = vld [vmem:[#allocation12 + $0x64] ss:$24 sps:$4 sm:$0xff]  }
 0x221   :  { %6169 = vmatprep.subr.bf16.mxu1 %v6741_v35  ;;  %v6771_v35 = vld [vmem:[#allocation12 + $0x60] ss:$24 sps:$4 sm:$0xff]  }
 0x224   :  { %6170 = vmatpush3.bf16.msra.mxu1 %v6742_v36  ;;  %v6776_v36 = vld [vmem:[#allocation12 + $0x94] ss:$24 sps:$4 sm:$0xff]  }
 0x225   :  { %6171 = vmatprep.subr.bf16.mxu1 %v6743_v7  ;;  %v6774_v7 = vld [vmem:[#allocation12 + $0x90] ss:$24 sps:$4 sm:$0xff]  }
 0x228   :  { %6172 = vmatpush3.bf16.msra.mxu1 %v6744_v37  ;;  %v6777_v37 = vld [vmem:[#allocation12 + $0xc0] ss:$24 sps:$4 sm:$0xff]  }
 0x229   :  { %6173 = vmatprep.subr.bf16.mxu1 %v6745_v38  ;;  %v6779_v38 = vld [vmem:[#allocation12 + $0xc4] ss:$24 sps:$4 sm:$0xff]  }
 0x22c   :  { %6174 = vmatpush3.bf16.msra.mxu1 %v6746_v34  ;;  %v6782_v34 = vld [vmem:[#allocation12 + $0xf4] ss:$24 sps:$4 sm:$0xff]  }
 0x22d   :  { %6175 = vmatprep.subr.bf16.mxu1 %v6747_v51  ;;  %v6780_v51 = vld [vmem:[#allocation12 + $0xf0] ss:$24 sps:$4 sm:$0xff]  }
 0x230   :  { %6176 = vmatpush3.bf16.msra.mxu1 %v6748_v39  ;;  %v7517_v39 = vmov 0  }
 0x231   :  { %6183 = vmatprep.subr.bf16.mxu1 %v6749_v40  ;;  %v6785_v40 = vld [vmem:[#allocation12 + $0x124] ss:$24 sps:$4 sm:$0xff]  }
 0x289   :  { %v2186_v45 = vpop.f32.mrb[4].mxu1 }
 0x28a   :  { %v6209_v46 = vadd.f32 %v2186_v45, %v467_v43  ;;  %v2188_v48 = vpop.f32.mrb[5].mxu1  ;;  %v6783_v43 = vld [vmem:[#allocation12 + $0x120] ss:$24 sps:$4 sm:$0xff]   ;;  %v6786_v45 = vld [vmem:[#allocation12 + $0x150] ss:$24 sps:$4 sm:$0xff]  }
 0x28b   :  { %v6210_v49 = vadd.f32 %v2188_v48, %v471_v44  ;;  %v2190_v50 = vpop.f32.mrb[6].mxu1  ;;  %v6788_v44 = vld [vmem:[#allocation12 + $0x154] ss:$24 sps:$4 sm:$0xff]   ;;  %v5752_v48 = vld [vmem:[#allocation7] ss:$0 sm:$0xff] }
 0x28c   :  { %v2318_v52 = vmax.f32 %v6209_v46, 0.0  ;;  %v2191_v53 = vpop.f32.mrb[7].mxu1  ;;  %v6791_v46 = vld [vmem:[#allocation12 + $0xc] ss:$24 sps:$4 sm:$0xff]  }
 0x28d   :  { %v2319_v54 = vmax.f32 %v6210_v49, 0.0 }
 0x28e   :  { %v2324_v57 = vpack.c.bf16 %v2318_v52, %v2318_v52 }
 0x28f   :  { %v2325_v55 = vpack.c.bf16 %v2319_v54, %v2319_v54 }
 0x291   :  { %2791 = vmatprep.mubr.bf16.mxu1 %v2325_v55 }
 0x292   :  { %2792 = vmatmul.mubr.bf16.vlgmr.msra.gmra.mrb[12].mxu1 %v2324_v57  ;;  %v6837_v57 = vld [vmem:[#allocation15] ss:$24 sps:$4 sm:$0xff]  }
 0x293   :  { %6184 = vmatpush3.bf16.msra.mxu1 %v6750_v56 }
 0x294   :  { %6185 = vmatprep.subr.bf16.mxu1 %v6751_v58  ;;  %v6839_v58 = vld [vmem:[#allocation15 + $0x4] ss:$24 sps:$4 sm:$0xff]  }
 0x295   :  { %5073 = vmatprep.subr.bf16.mxu0 %v6839_v58  ;;  %v6818_v58 = vld [vmem:[#allocation12 + $0x44] ss:$24 sps:$4 sm:$0xff]  }
 0x296   :  { %5074 = vmatpush1.bf16.msra.mxu0 %v6837_v57  ;;  %v6813_v57 = vld [vmem:[#allocation12 + $0x10] ss:$24 sps:$4 sm:$0xff]  }
 0x297   :  { %6186 = vmatpush3.bf16.msra.mxu1 %v6752_v59  ;;  %v6845_v59 = vld [vmem:[#allocation15 + $0x34] ss:$24 sps:$4 sm:$0xff]  }
 0x298   :  { %6187 = vmatprep.subr.bf16.mxu1 %v6753_v60  ;;  %v6843_v60 = vld [vmem:[#allocation15 + $0x30] ss:$24 sps:$4 sm:$0xff]   ;;  %5075 = vmatprep.subr.bf16.mxu0 %v6845_v59 }
 0x299   :  { %v6816_v59 = vld [vmem:[#allocation12 + $0x40] ss:$24 sps:$4 sm:$0xff]  }
 0x29a   :  { %5076 = vmatpush1.bf16.msra.mxu0 %v6843_v60  ;;  %v6821_v60 = vld [vmem:[#allocation12 + $0x74] ss:$24 sps:$4 sm:$0xff]  }
 0x29b   :  { %6188 = vmatpush3.bf16.msra.mxu1 %v6754_v61  ;;  %v6851_v61 = vld [vmem:[#allocation15 + $0x64] ss:$24 sps:$4 sm:$0xff]  }
 0x29c   :  { %6189 = vmatprep.subr.bf16.mxu1 %v6755_v62  ;;  %v6849_v62 = vld [vmem:[#allocation15 + $0x60] ss:$24 sps:$4 sm:$0xff]   ;;  %5077 = vmatprep.subr.bf16.mxu0 %v6851_v61 }
 0x29d   :  { %v6819_v61 = vld [vmem:[#allocation12 + $0x70] ss:$24 sps:$4 sm:$0xff]  }
 0x29e   :  { %5078 = vmatpush1.bf16.msra.mxu0 %v6849_v62  ;;  %v6824_v62 = vld [vmem:[#allocation12 + $0xa4] ss:$24 sps:$4 sm:$0xff]  }
 0x29f   :  { %6190 = vmatpush3.bf16.msra.mxu1 %v6756_v63  ;;  %v6857_v63 = vld [vmem:[#allocation15 + $0x94] ss:$24 sps:$4 sm:$0xff]  }
 0x2a0   :  { %6191 = vmatprep.subr.bf16.mxu1 %v6757_v0  ;;  %v6855_v0 = vld [vmem:[#allocation15 + $0x90] ss:$24 sps:$4 sm:$0xff]   ;;  %5079 = vmatprep.subr.bf16.mxu0 %v6857_v63 }
 0x2a1   :  { %v6822_v63 = vld [vmem:[#allocation12 + $0xa0] ss:$24 sps:$4 sm:$0xff]  }
 0x2a2   :  { %5080 = vmatpush1.bf16.msra.mxu0 %v6855_v0  ;;  %v6827_v0 = vld [vmem:[#allocation12 + $0xd4] ss:$24 sps:$4 sm:$0xff]  }
 0x2a3   :  { %6192 = vmatpush3.bf16.msra.mxu1 %v6758_v1  ;;  %v6863_v1 = vld [vmem:[#allocation15 + $0xc4] ss:$24 sps:$4 sm:$0xff]  }
 0x2a4   :  { %6193 = vmatprep.subr.bf16.mxu1 %v6759_v2  ;;  %v6861_v2 = vld [vmem:[#allocation15 + $0xc0] ss:$24 sps:$4 sm:$0xff]   ;;  %5081 = vmatprep.subr.bf16.mxu0 %v6863_v1 }
 0x2a5   :  { %v6825_v1 = vld [vmem:[#allocation12 + $0xd0] ss:$24 sps:$4 sm:$0xff]  }
 0x2a6   :  { %5082 = vmatpush1.bf16.msra.mxu0 %v6861_v2  ;;  %v6830_v2 = vld [vmem:[#allocation12 + $0x104] ss:$24 sps:$4 sm:$0xff]  }
 0x2a7   :  { %6194 = vmatpush3.bf16.msra.mxu1 %v6760_v3  ;;  %v6869_v3 = vld [vmem:[#allocation15 + $0xf4] ss:$24 sps:$4 sm:$0xff]  }
 0x2a8   :  { %6195 = vmatprep.subr.bf16.mxu1 %v6761_v4  ;;  %v6867_v4 = vld [vmem:[#allocation15 + $0xf0] ss:$24 sps:$4 sm:$0xff]   ;;  %5083 = vmatprep.subr.bf16.mxu0 %v6869_v3 }
 0x2a9   :  { %v6828_v3 = vld [vmem:[#allocation12 + $0x100] ss:$24 sps:$4 sm:$0xff]  }
 0x2aa   :  { %5084 = vmatpush1.bf16.msra.mxu0 %v6867_v4  ;;  %v6833_v4 = vld [vmem:[#allocation12 + $0x134] ss:$24 sps:$4 sm:$0xff]  }
 0x2ab   :  { %6196 = vmatpush3.bf16.msra.mxu1 %v6762_v5  ;;  %v6875_v5 = vld [vmem:[#allocation15 + $0x124] ss:$24 sps:$4 sm:$0xff]  }
 0x2ac   :  { %6197 = vmatprep.subr.bf16.mxu1 %v6763_v8  ;;  %v6873_v8 = vld [vmem:[#allocation15 + $0x120] ss:$24 sps:$4 sm:$0xff]   ;;  %5085 = vmatprep.subr.bf16.mxu0 %v6875_v5 }
 0x2ad   :  { %v6836_v5 = vld [vmem:[#allocation12 + $0x164] ss:$24 sps:$4 sm:$0xff]  }
 0x2ae   :  { %5086 = vmatpush1.bf16.msra.mxu0 %v6873_v8  ;;  %v6834_v8 = vld [vmem:[#allocation12 + $0x160] ss:$24 sps:$4 sm:$0xff]  }
 0x2af   :  { %6198 = vmatpush3.bf16.msra.mxu1 %v6764_v9  ;;  %v6881_v9 = vld [vmem:[#allocation15 + $0x154] ss:$24 sps:$4 sm:$0xff]  }
 0x2b0   :  { %3178 = vmatprep.subr.bf16.mxu1 %v6767_v47  ;;  %5087 = vmatprep.subr.bf16.mxu0 %v6881_v9  ;;  %v6915_v47 = vld [vmem:[#allocation15 + $0x270] ss:$24 sps:$4 sm:$0xff]   ;;  %v6842_v9 = vld [vmem:[#allocation15 + $0xc] ss:$24 sps:$4 sm:$0xff]  }
 0x2ca   :  { %v2309_v19 = vpop.f32.mrb[4].mxu0 }
 0x2cb   :  { %v6211_v14 = vadd.f32 %v2309_v19, %v475_v17  ;;  %v2311_v20 = vpop.f32.mrb[5].mxu0  ;;  %v6879_v17 = vld [vmem:[#allocation15 + $0x150] ss:$24 sps:$4 sm:$0xff]   ;;  %v6885_v19 = vld [vmem:[#allocation15 + $0x180] ss:$24 sps:$4 sm:$0xff]  }
 0x2cc   :  { %v6212_v21 = vadd.f32 %v2311_v20, %v479_v18  ;;  %v2313_v22 = vpop.f32.mrb[6].mxu0  ;;  %v6887_v18 = vld [vmem:[#allocation15 + $0x184] ss:$24 sps:$4 sm:$0xff]   ;;  %5088 = vmatpush1.bf16.msra.mxu0 %v6879_v17  ;;  %v6891_v20 = vld [vmem:[#allocation15 + $0x1b0] ss:$24 sps:$4 sm:$0xff]  }
 0x2cd   :  { %v2320_v23 = vmax.f32 %v6211_v14, 0.0  ;;  %v2314_v24 = vpop.f32.mrb[7].mxu0  ;;  %5089 = vmatprep.subr.bf16.mxu0 %v6887_v18  ;;  %v6893_v14 = vld [vmem:[#allocation15 + $0x1b4] ss:$24 sps:$4 sm:$0xff]   ;;  %v6840_v17 = vld [vmem:[#allocation15 + $0x8] ss:$24 sps:$4 sm:$0xff]  }
 0x2ce   :  { %v2321_v25 = vmax.f32 %v6212_v21, 0.0  ;;  %v6899_v21 = vld [vmem:[#allocation15 + $0x1e4] ss:$24 sps:$4 sm:$0xff]  }
 0x2cf   :  { %v2326_v27 = vpack.c.bf16 %v2320_v23, %v2320_v23  ;;  %v6897_v23 = vld [vmem:[#allocation15 + $0x1e0] ss:$24 sps:$4 sm:$0xff]   ;;  %v6848_v18 = vld [vmem:[#allocation15 + $0x3c] ss:$24 sps:$4 sm:$0xff]  }
 0x2d0   :  { %v2327_v26 = vpack.c.bf16 %v2321_v25, %v2321_v25  ;;  %5090 = vmatpush1.bf16.msra.mxu0 %v6885_v19  ;;  %v6846_v19 = vld [vmem:[#allocation15 + $0x38] ss:$24 sps:$4 sm:$0xff]  }
 0x2d1   :  { %5091 = vmatprep.subr.bf16.mxu0 %v6893_v14  ;;  %v6854_v14 = vld [vmem:[#allocation15 + $0x6c] ss:$24 sps:$4 sm:$0xff]  }
 0x2d2   :  { %2831 = vmatprep.mubr.bf16.mxu1 %v2327_v26 }
 0x2d3   :  { %2832 = vmatmul.mubr.bf16.vlgmr.msra.gmra.mrb[16].mxu1 %v2326_v27  ;;  %v6905_v27 = vld [vmem:[#allocation15 + $0x214] ss:$24 sps:$4 sm:$0xff]  }
 0x2d4   :  { %3179 = vmatpush1.bf16.msra.mxu1 %v6765_v6  ;;  %3210 = vmatprep.mubr.bf16.mxu1 %v7517_v39  ;;  %v6917_v6 = vld [vmem:[#allocation15 + $0x274] ss:$24 sps:$4 sm:$0xff]  }
 0x2d5   :  { %3180 = vmatprep.subr.bf16.mxu1 %v6770_v12  ;;  %5092 = vmatpush1.bf16.msra.mxu0 %v6891_v20  ;;  %v5801_v12 = vld [vmem:[#allocation9] ss:$0 sm:$0xff]  ;;  %v6852_v20 = vld [vmem:[#allocation15 + $0x68] ss:$24 sps:$4 sm:$0xff]  }
 0x2d6   :  { %5093 = vmatprep.subr.bf16.mxu0 %v6899_v21  ;;  %v6860_v21 = vld [vmem:[#allocation15 + $0x9c] ss:$24 sps:$4 sm:$0xff]  }
 0x2d8   :  { %3181 = vmatpush1.bf16.msra.mxu1 %v6768_v32 }
 0x2d9   :  { %3182 = vmatprep.subr.bf16.mxu1 %v6773_v33  ;;  %5094 = vmatpush1.bf16.msra.mxu0 %v6897_v23  ;;  %v5802_v33 = vld [vmem:[#allocation10] ss:$0 sm:$0xff]  ;;  %v6866_v23 = vld [vmem:[#allocation15 + $0xcc] ss:$24 sps:$4 sm:$0xff]  }
 0x2da   :  { %5095 = vmatprep.subr.bf16.mxu0 %v6905_v27  ;;  %v6878_v27 = vld [vmem:[#allocation15 + $0x12c] ss:$24 sps:$4 sm:$0xff]  }
 0x2dc   :  { %3183 = vmatpush1.bf16.msra.mxu1 %v6771_v35 }
 0x2dd   :  { %3184 = vmatprep.subr.bf16.mxu1 %v6776_v36 }
 0x2e0   :  { %3185 = vmatpush1.bf16.msra.mxu1 %v6774_v7 }
 0x2e1   :  { %3186 = vmatprep.subr.bf16.mxu1 %v6779_v38 }
 0x2e4   :  { %3187 = vmatpush1.bf16.msra.mxu1 %v6777_v37  ;;  %v6789_v37 = vld [vmem:[#allocation12 + $0x8] ss:$24 sps:$4 sm:$0xff]  }
 0x2e5   :  { %3188 = vmatprep.subr.bf16.mxu1 %v6782_v34  ;;  %v6794_v34 = vld [vmem:[#allocation12 + $0x3c] ss:$24 sps:$4 sm:$0xff]  }
 0x2e6   :  { %v6155_v11 = vpop.f32.mrb[8].mxu1 }
 0x2e7   :  { %v6156_v28 = vpop.f32.mrb[9].mxu1 }
 0x2e8   :  { %v6157_v29 = vadd.f32 %v6156_v28, %v6155_v11  ;;  %v6158_v30 = vpop.f32.mrb[10].mxu1  ;;  %3189 = vmatpush1.bf16.msra.mxu1 %v6780_v51  ;;  %v6792_v51 = vld [vmem:[#allocation12 + $0x38] ss:$24 sps:$4 sm:$0xff]  }
 0x2e9   :  { %v6159_v31 = vpop.f32.mrb[11].mxu1  ;;  %3190 = vmatprep.subr.bf16.mxu1 %v6785_v40  ;;  %v6911_v30 = vld [vmem:[#allocation15 + $0x244] ss:$24 sps:$4 sm:$0xff]  }
 0x2ea   :  { %v2754_v52 = vadd.f32 %v6157_v29, %v5752_v48  ;;  %v6903_v29 = vld [vmem:[#allocation15 + $0x210] ss:$24 sps:$4 sm:$0xff]   ;;  %v6909_v31 = vld [vmem:[#allocation15 + $0x240] ss:$24 sps:$4 sm:$0xff]  }
 0x2eb   :  { %5096 = vmatpush1.bf16.msra.mxu0 %v6903_v29  ;;  %v6797_v40 = vld [vmem:[#allocation12 + $0x6c] ss:$24 sps:$4 sm:$0xff]   ;;  %v6801_v48 = vld [vmem:[#allocation12 + $0xc8] ss:$24 sps:$4 sm:$0xff]  }
 0x2ec   :  { %3191 = vmatpush1.bf16.msra.mxu1 %v6783_v43  ;;  %5097 = vmatprep.subr.bf16.mxu0 %v6911_v30  ;;  %v6795_v43 = vld [vmem:[#allocation12 + $0x68] ss:$24 sps:$4 sm:$0xff]  }
 0x2ed   :  { %3192 = vmatprep.subr.bf16.mxu1 %v6788_v44  ;;  %v6800_v44 = vld [vmem:[#allocation12 + $0x9c] ss:$24 sps:$4 sm:$0xff]   ;;  %v6876_v29 = vld [vmem:[#allocation15 + $0x128] ss:$24 sps:$4 sm:$0xff]  }
 0x2ee   :  { %v6884_v30 = vld [vmem:[#allocation15 + $0x15c] ss:$24 sps:$4 sm:$0xff]  }
 0x2ef   :  { %5098 = vmatpush1.bf16.msra.mxu0 %v6909_v31  ;;  %v6929_v31 = vld [vmem:[#allocation15 + $0x2d4] ss:$24 sps:$4 sm:$0xff]  }
 0x2f0   :  { %3193 = vmatpush1.bf16.msra.mxu1 %v6786_v45  ;;  %5099 = vmatprep.subr.bf16.mxu0 %v6917_v6  ;;  %v6798_v45 = vld [vmem:[#allocation12 + $0x98] ss:$24 sps:$4 sm:$0xff]  }
 0x2f1   :  { %3219 = vmatprep.subr.bf16.mxu1 %v6791_v46  ;;  %v6803_v46 = vld [vmem:[#allocation12 + $0xcc] ss:$24 sps:$4 sm:$0xff]  }
 0x2f2   :  { %v6927_v6 = vld [vmem:[#allocation15 + $0x2d0] ss:$24 sps:$4 sm:$0xff]  }
 0x2f3   :  { %5100 = vmatpush1.bf16.msra.mxu0 %v6915_v47  ;;  %v6882_v47 = vld [vmem:[#allocation15 + $0x158] ss:$24 sps:$4 sm:$0xff]  }
 0x365   :  { %v6177_v49 = vpop.f32.mrb[12].mxu1 }
 0x366   :  { %v6178_v50 = vpop.f32.mrb[13].mxu1 }
 0x367   :  { %v6179_v53 = vadd.f32 %v6178_v50, %v6177_v49  ;;  %v6180_v54 = vpop.f32.mrb[14].mxu1  ;;  %v6806_v49 = vld [vmem:[#allocation12 + $0xfc] ss:$24 sps:$4 sm:$0xff]   ;;  %v6804_v50 = vld [vmem:[#allocation12 + $0xf8] ss:$24 sps:$4 sm:$0xff]  }
 0x368   :  { %v6181_v55 = vpop.f32.mrb[15].mxu1  ;;  %v6812_v54 = vld [vmem:[#allocation12 + $0x15c] ss:$24 sps:$4 sm:$0xff]  }
 0x369   :  { %v2794_v56 = vadd.f32 %v6179_v53, %v2754_v52  ;;  %v6809_v52 = vld [vmem:[#allocation12 + $0x12c] ss:$24 sps:$4 sm:$0xff]   ;;  %v6807_v53 = vld [vmem:[#allocation12 + $0x128] ss:$24 sps:$4 sm:$0xff]   ;;  %v6810_v55 = vld [vmem:[#allocation12 + $0x158] ss:$24 sps:$4 sm:$0xff]  }
 0x3a6   :  { %v6199_v22 = vpop.f32.mrb[16].mxu1 }
 0x3a7   :  { %v6200_v24 = vpop.f32.mrb[17].mxu1 }
 0x3a8   :  { %v6201_v25 = vadd.f32 %v6200_v24, %v6199_v22  ;;  %v6202_v26 = vpop.f32.mrb[18].mxu1  ;;  %v6858_v22 = vld [vmem:[#allocation15 + $0x98] ss:$24 sps:$4 sm:$0xff]   ;;  %v6864_v24 = vld [vmem:[#allocation15 + $0xc8] ss:$24 sps:$4 sm:$0xff]  }
 0x3a9   :  { %v6203_v11 = vpop.f32.mrb[19].mxu1  ;;  %v6870_v26 = vld [vmem:[#allocation15 + $0xf8] ss:$24 sps:$4 sm:$0xff]  }
 0x3aa   :  { %v2834_v28 = vadd.f32 %v6201_v25, %v2794_v56  ;;  %v6815_v56 = vld [vmem:[#allocation12 + $0x14] ss:$24 sps:$4 sm:$0xff]   ;;  %v6872_v25 = vld [vmem:[#allocation15 + $0xfc] ss:$24 sps:$4 sm:$0xff]  }
 0x3ab   :  { %v6923_v11 = vld [vmem:[#allocation15 + $0x2a4] ss:$24 sps:$4 sm:$0xff]  }
 0x3ac   :  { %7269 = vtanh.f32 %v2834_v28  ;;  %v6921_v28 = vld [vmem:[#allocation15 + $0x2a0] ss:$24 sps:$4 sm:$0xff]   ;;  %5101 = vmatprep.subr.bf16.mxu0 %v6923_v11  ;;  %v6963_v11 = vld [vmem:[#allocation15 + $0x3f0] ss:$24 sps:$4 sm:$0xff]  }
 0x3ad   :  { %5102 = vmatpush1.bf16.msra.mxu0 %v6921_v28  ;;  %v6966_v28 = vld [vmem:[#allocation15 + $0x3f8] ss:$24 sps:$4 sm:$0xff]  }
 0x3ae   :  { %5103 = vmatprep.subr.bf16.mxu0 %v6929_v31 }
 0x3b1   :  { %5104 = vmatpush1.bf16.msra.mxu0 %v6927_v6  ;;  %v6969_v6 = vld [vmem:[#allocation15 + $0x420] ss:$24 sps:$4 sm:$0xff]  }
 0x3b6   :  { %v7270_v32 = vpop.eup %7269 }
 0x3b7   :  { %v2847_v35 = vmul.f32 %v7270_v32, %v5801_v12  ;;  %v6890_v12 = vld [vmem:[#allocation15 + $0x18c] ss:$24 sps:$4 sm:$0xff]  }
 0x3b8   :  { %v6935_v32 = vld [vmem:[#allocation15 + $0x304] ss:$24 sps:$4 sm:$0xff]  }
 0x3b9   :  { %v2855_v36 = vsub.f32 %v2847_v35, %v5802_v33  ;;  %5114 = vmatprep.subr.bf16.mxu0 %v6935_v32  ;;  %v6888_v33 = vld [vmem:[#allocation15 + $0x188] ss:$24 sps:$4 sm:$0xff]   ;;  %v6896_v35 = vld [vmem:[#allocation15 + $0x1bc] ss:$24 sps:$4 sm:$0xff]  }
 0x3ba   :  { %v6980_v32 = vld [vmem:[#allocation15 + $0x45c] ss:$24 sps:$4 sm:$0xff]  }
 0x3bb   :  { %v6263_v7 = vround.rtne.f32 %v2855_v36  ;;  %v6894_v36 = vld [vmem:[#allocation15 + $0x1b8] ss:$24 sps:$4 sm:$0xff]  }
 0x3bd   :  { %v7794_v38 = vpack.c.bf16 %v6263_v7, %v6263_v7  ;;  %v6902_v7 = vld [vmem:[#allocation15 + $0x1ec] ss:$24 sps:$4 sm:$0xff]  }
 0x3bf   :  { %3211 = vmatmul.mubr.bf16.vlgmr.msra.gmra.mrb[20].mxu1 %v7794_v38 }
 0x3c0   :  { %3220 = vmatpush1.bf16.msra.mxu1 %v6789_v37  ;;  %3251 = vmatprep.mubr.bf16.mxu1 %v7517_v39  ;;  %v6900_v37 = vld [vmem:[#allocation15 + $0x1e8] ss:$24 sps:$4 sm:$0xff]  }
 0x3c1   :  { %3221 = vmatprep.subr.bf16.mxu1 %v6794_v34  ;;  %v6906_v34 = vld [vmem:[#allocation15 + $0x218] ss:$24 sps:$4 sm:$0xff]  }
 0x3c4   :  { %3222 = vmatpush1.bf16.msra.mxu1 %v6792_v51  ;;  %v6914_v51 = vld [vmem:[#allocation15 + $0x24c] ss:$24 sps:$4 sm:$0xff]  }
 0x3c5   :  { %3223 = vmatprep.subr.bf16.mxu1 %v6797_v40  ;;  %v6912_v40 = vld [vmem:[#allocation15 + $0x248] ss:$24 sps:$4 sm:$0xff]  }
 0x3c8   :  { %3224 = vmatpush1.bf16.msra.mxu1 %v6795_v43  ;;  %v6920_v43 = vld [vmem:[#allocation15 + $0x27c] ss:$24 sps:$4 sm:$0xff]  }
 0x3c9   :  { %3225 = vmatprep.subr.bf16.mxu1 %v6800_v44  ;;  %v6918_v44 = vld [vmem:[#allocation15 + $0x278] ss:$24 sps:$4 sm:$0xff]  }
 0x3cc   :  { %3226 = vmatpush1.bf16.msra.mxu1 %v6798_v45  ;;  %v6926_v45 = vld [vmem:[#allocation15 + $0x2ac] ss:$24 sps:$4 sm:$0xff]  }
 0x3cd   :  { %3227 = vmatprep.subr.bf16.mxu1 %v6803_v46  ;;  %v6924_v46 = vld [vmem:[#allocation15 + $0x2a8] ss:$24 sps:$4 sm:$0xff]  }
 0x3d0   :  { %3228 = vmatpush1.bf16.msra.mxu1 %v6801_v48  ;;  %v6932_v48 = vld [vmem:[#allocation15 + $0x2dc] ss:$24 sps:$4 sm:$0xff]  }
 0x3d1   :  { %3229 = vmatprep.subr.bf16.mxu1 %v6806_v49  ;;  %v6930_v49 = vld [vmem:[#allocation15 + $0x2d8] ss:$24 sps:$4 sm:$0xff]  }
 0x3d4   :  { %3230 = vmatpush1.bf16.msra.mxu1 %v6804_v50  ;;  %v6938_v50 = vld [vmem:[#allocation15 + $0x30c] ss:$24 sps:$4 sm:$0xff]  }
 0x3d5   :  { %3231 = vmatprep.subr.bf16.mxu1 %v6809_v52  ;;  %v7801_v52 = vld [vmem:[#allocation13] sm:$0x3f] }
 0x3d6   :  { %v2923_v31 = vrot.slane %v7801_v52, %v7777_v42 }
 0x3d8   :  { %3232 = vmatpush1.bf16.msra.mxu1 %v6807_v53  ;;  %v2911_v53 = vrot.slane %v7801_v52, %v7764_v13 }
 0x3d9   :  { %3233 = vmatprep.subr.bf16.mxu1 %v6812_v54  ;;  %v2915_v54 = vrot.slane %v7801_v52, %v7767_v15 }
 0x3dc   :  { %3234 = vmatpush1.bf16.msra.mxu1 %v6810_v55 }
 0x3dd   :  { %3260 = vmatprep.subr.bf16.mxu1 %v6815_v56 }
 0x3df   :  { %3252 = vmatmul.mubr.bf16.vlgmr.msra.gmra.mrb[24].mxu1 %v7794_v38 }
 0x3e0   :  { %3261 = vmatpush1.bf16.msra.mxu1 %v6813_v57  ;;  %3292 = vmatprep.mubr.bf16.mxu1 %v7517_v39  ;;  %v6831_v39 = vld [vmem:[#allocation12 + $0x130] ss:$24 sps:$4 sm:$0xff]  }
 0x3e1   :  { %3262 = vmatprep.subr.bf16.mxu1 %v6818_v58 }
 0x3e4   :  { %3263 = vmatpush1.bf16.msra.mxu1 %v6816_v59 }
 0x3e5   :  { %3264 = vmatprep.subr.bf16.mxu1 %v6821_v60 }
 0x3e8   :  { %3265 = vmatpush1.bf16.msra.mxu1 %v6819_v61 }
 0x3e9   :  { %3266 = vmatprep.subr.bf16.mxu1 %v6824_v62 }
 0x3ec   :  { %3267 = vmatpush1.bf16.msra.mxu1 %v6822_v63 }
 0x3ed   :  { %3268 = vmatprep.subr.bf16.mxu1 %v6827_v0  ;;  %v6933_v0 = vld [vmem:[#allocation15 + $0x300] ss:$24 sps:$4 sm:$0xff]  }
 0x3f0   :  { %3269 = vmatpush1.bf16.msra.mxu1 %v6825_v1  ;;  %v6936_v1 = vld [vmem:[#allocation15 + $0x308] ss:$24 sps:$4 sm:$0xff]  }
 0x3f1   :  { %3270 = vmatprep.subr.bf16.mxu1 %v6830_v2 }
 0x3f4   :  { %3271 = vmatpush1.bf16.msra.mxu1 %v6828_v3  ;;  %v6941_v3 = vld [vmem:[#allocation15 + $0x334] ss:$24 sps:$4 sm:$0xff]  }
 0x3f5   :  { %3272 = vmatprep.subr.bf16.mxu1 %v6833_v4  ;;  %v6944_v4 = vld [vmem:[#allocation15 + $0x33c] ss:$24 sps:$4 sm:$0xff]  }
 0x3f8   :  { %3273 = vmatpush1.bf16.msra.mxu1 %v6831_v39  ;;  %v6939_v39 = vld [vmem:[#allocation15 + $0x330] ss:$24 sps:$4 sm:$0xff]  }
 0x3f9   :  { %3274 = vmatprep.subr.bf16.mxu1 %v6836_v5  ;;  %v6942_v5 = vld [vmem:[#allocation15 + $0x338] ss:$24 sps:$4 sm:$0xff]  }
 0x3fc   :  { %3275 = vmatpush1.bf16.msra.mxu1 %v6834_v8  ;;  %v6947_v8 = vld [vmem:[#allocation15 + $0x364] ss:$24 sps:$4 sm:$0xff]  }
 0x3fd   :  { %5196 = vmatprep.subr.bf16.mxu1 %v6842_v9  ;;  %v6950_v9 = vld [vmem:[#allocation15 + $0x36c] ss:$24 sps:$4 sm:$0xff]  }
 0x3ff   :  { %3293 = vmatmul.mubr.bf16.vlgmr.msra.gmra.mrb[28].mxu1 %v7794_v38  ;;  %v6908_v38 = vld [vmem:[#allocation15 + $0x21c] ss:$24 sps:$4 sm:$0xff]  }
 0x400   :  { %5197 = vmatpush1.bf16.msra.mxu1 %v6840_v17  ;;  %v6945_v17 = vld [vmem:[#allocation15 + $0x360] ss:$24 sps:$4 sm:$0xff]  }
 0x401   :  { %5198 = vmatprep.subr.bf16.mxu1 %v6848_v18  ;;  %v6948_v18 = vld [vmem:[#allocation15 + $0x368] ss:$24 sps:$4 sm:$0xff]  }
 0x404   :  { %5199 = vmatpush1.bf16.msra.mxu1 %v6846_v19  ;;  %v6953_v19 = vld [vmem:[#allocation15 + $0x394] ss:$24 sps:$4 sm:$0xff]  }
 0x405   :  { %5200 = vmatprep.subr.bf16.mxu1 %v6854_v14  ;;  %v6956_v14 = vld [vmem:[#allocation15 + $0x39c] ss:$24 sps:$4 sm:$0xff]  }
 0x408   :  { %5201 = vmatpush1.bf16.msra.mxu1 %v6852_v20  ;;  %v6951_v20 = vld [vmem:[#allocation15 + $0x390] ss:$24 sps:$4 sm:$0xff]  }
 0x409   :  { %5202 = vmatprep.subr.bf16.mxu1 %v6860_v21  ;;  %v6954_v21 = vld [vmem:[#allocation15 + $0x398] ss:$24 sps:$4 sm:$0xff]  }
 0x40c   :  { %5203 = vmatpush1.bf16.msra.mxu1 %v6858_v22  ;;  %v6959_v22 = vld [vmem:[#allocation15 + $0x3c4] ss:$24 sps:$4 sm:$0xff]  }
 0x40d   :  { %5204 = vmatprep.subr.bf16.mxu1 %v6866_v23  ;;  %v6962_v23 = vld [vmem:[#allocation15 + $0x3cc] ss:$24 sps:$4 sm:$0xff]  }
 0x410   :  { %5205 = vmatpush1.bf16.msra.mxu1 %v6864_v24  ;;  %v6957_v24 = vld [vmem:[#allocation15 + $0x3c0] ss:$24 sps:$4 sm:$0xff]  }
 0x411   :  { %5206 = vmatprep.subr.bf16.mxu1 %v6872_v25  ;;  %v6960_v25 = vld [vmem:[#allocation15 + $0x3c8] ss:$24 sps:$4 sm:$0xff]  }
 0x414   :  { %5207 = vmatpush1.bf16.msra.mxu1 %v6870_v26  ;;  %v6965_v26 = vld [vmem:[#allocation15 + $0x3f4] ss:$24 sps:$4 sm:$0xff]  }
 0x415   :  { %5208 = vmatprep.subr.bf16.mxu1 %v6878_v27  ;;  %v6968_v27 = vld [vmem:[#allocation15 + $0x3fc] ss:$24 sps:$4 sm:$0xff]  }
 0x418   :  { %5209 = vmatpush1.bf16.msra.mxu1 %v6876_v29  ;;  %v6971_v29 = vld [vmem:[#allocation15 + $0x424] ss:$24 sps:$4 sm:$0xff]  }
 0x419   :  { %5210 = vmatprep.subr.bf16.mxu1 %v6884_v30  ;;  %v6974_v30 = vld [vmem:[#allocation15 + $0x42c] ss:$24 sps:$4 sm:$0xff]  }
 0x41c   :  { %5211 = vmatpush1.bf16.msra.mxu1 %v6882_v47  ;;  %v6972_v47 = vld [vmem:[#allocation15 + $0x428] ss:$24 sps:$4 sm:$0xff]  }
 0x41d   :  { %5212 = vmatprep.subr.bf16.mxu1 %v6890_v12  ;;  %v6977_v12 = vld [vmem:[#allocation15 + $0x454] ss:$24 sps:$4 sm:$0xff]  }
 0x420   :  { %5213 = vmatpush1.bf16.msra.mxu1 %v6888_v33 }
 0x421   :  { %5214 = vmatprep.subr.bf16.mxu1 %v6896_v35 }
 0x424   :  { %5215 = vmatpush1.bf16.msra.mxu1 %v6894_v36 }
 0x425   :  { %5216 = vmatprep.subr.bf16.mxu1 %v6902_v7 }
 0x428   :  { %5217 = vmatpush1.bf16.msra.mxu1 %v6900_v37  ;;  %v6975_v37 = vld [vmem:[#allocation15 + $0x450] ss:$24 sps:$4 sm:$0xff]  }
 0x429   :  { %5218 = vmatprep.subr.bf16.mxu1 %v6908_v38  ;;  %v6978_v38 = vld [vmem:[#allocation15 + $0x458] ss:$24 sps:$4 sm:$0xff]  }
 0x42c   :  { %5219 = vmatpush1.bf16.msra.mxu1 %v6906_v34 }
 0x42d   :  { %5220 = vmatprep.subr.bf16.mxu1 %v6914_v51  ;;  %v6983_v51 = vld [vmem:[#allocation15 + $0x484] ss:$24 sps:$4 sm:$0xff]  }
 0x430   :  { %5221 = vmatpush1.bf16.msra.mxu1 %v6912_v40  ;;  %v6986_v40 = vld [vmem:[#allocation15 + $0x48c] ss:$24 sps:$4 sm:$0xff]  }
 0x431   :  { %5222 = vmatprep.subr.bf16.mxu1 %v6920_v43 }
 0x434   :  { %5223 = vmatpush1.bf16.msra.mxu1 %v6918_v44 }
 0x435   :  { %5224 = vmatprep.subr.bf16.mxu1 %v6926_v45  ;;  %v6981_v45 = vld [vmem:[#allocation15 + $0x480] ss:$24 sps:$4 sm:$0xff]  }
 0x438   :  { %5225 = vmatpush1.bf16.msra.mxu1 %v6924_v46  ;;  %v6984_v46 = vld [vmem:[#allocation15 + $0x488] ss:$24 sps:$4 sm:$0xff]  }
 0x439   :  { %5226 = vmatprep.subr.bf16.mxu1 %v6932_v48  ;;  %v6989_v48 = vld [vmem:[#allocation15 + $0x4b4] ss:$24 sps:$4 sm:$0xff]  }
 0x43c   :  { %5227 = vmatpush1.bf16.msra.mxu1 %v6930_v49  ;;  %v6992_v49 = vld [vmem:[#allocation15 + $0x4bc] ss:$24 sps:$4 sm:$0xff]  }
 0x43d   :  { %5237 = vmatprep.subr.bf16.mxu1 %v6938_v50  ;;  %v6987_v50 = vld [vmem:[#allocation15 + $0x4b0] ss:$24 sps:$4 sm:$0xff]  }
 0x492   :  { %v3212_v55 = vpop.f32.mrb[20].mxu1 }
 0x493   :  { %v3213_v56 = vadd.f32 %v3212_v55, %v2911_v53  ;;  %v3214_v57 = vpop.f32.mrb[21].mxu1  ;;  %v6990_v53 = vld [vmem:[#allocation15 + $0x4b8] ss:$24 sps:$4 sm:$0xff]   ;;  %v6998_v55 = vld [vmem:[#allocation15 + $0x4ec] ss:$24 sps:$4 sm:$0xff]  }
 0x494   :  { %v3215_v58 = vadd.f32 %v3214_v57, %v2915_v54  ;;  %v3216_v59 = vpop.f32.mrb[22].mxu1  ;;  %v6995_v54 = vld [vmem:[#allocation15 + $0x4e4] ss:$24 sps:$4 sm:$0xff]   ;;  %v6996_v57 = vld [vmem:[#allocation15 + $0x4e8] ss:$24 sps:$4 sm:$0xff]  }
 0x495   :  { %v3301_v60 = vmax.f32 %v3213_v56, 0.0  ;;  %v3217_v61 = vpop.f32.mrb[23].mxu1  ;;  %v6993_v56 = vld [vmem:[#allocation15 + $0x4e0] ss:$24 sps:$4 sm:$0xff]   ;;  %v7004_v59 = vld [vmem:[#allocation15 + $0x51c] ss:$24 sps:$4 sm:$0xff]  }
 0x496   :  { %v3302_v62 = vmax.f32 %v3215_v58, 0.0  ;;  %v7001_v58 = vld [vmem:[#allocation15 + $0x514] ss:$24 sps:$4 sm:$0xff]   ;;  %v7002_v61 = vld [vmem:[#allocation15 + $0x518] ss:$24 sps:$4 sm:$0xff]  }
 0x497   :  { %v7809_v2 = vpack.c.bf16 %v3301_v60, %v3301_v60  ;;  %v6999_v60 = vld [vmem:[#allocation15 + $0x510] ss:$24 sps:$4 sm:$0xff]  }
 0x498   :  { %v7807_v63 = vpack.c.bf16 %v3302_v62, %v3302_v62  ;;  %v7007_v62 = vld [vmem:[#allocation15 + $0x544] ss:$24 sps:$4 sm:$0xff]  }
 0x49a   :  { %5105 = vmatprep.mubr.bf16.mxu0 %v7807_v63  ;;  %5228 = vmatprep.mubr.bf16.mxu1 %v7807_v63 }
 0x49b   :  { %5106 = vmatmul.mubr.bf16.vlgmr.msra.gmra.mrb[8].mxu0 %v7809_v2  ;;  %5229 = vmatmul.mubr.bf16.vlgmr.msra.gmra.mrb[32].mxu1 %v7809_v2 }
 0x49c   :  { %5115 = vmatpush1.bf16.msra.mxu0 %v6933_v0  ;;  %5238 = vmatpush1.bf16.msra.mxu1 %v6936_v1  ;;  %v7010_v0 = vld [vmem:[#allocation15 + $0x54c] ss:$24 sps:$4 sm:$0xff]   ;;  %v7005_v1 = vld [vmem:[#allocation15 + $0x540] ss:$24 sps:$4 sm:$0xff]  }
 0x49d   :  { %5116 = vmatprep.subr.bf16.mxu0 %v6941_v3  ;;  %5239 = vmatprep.subr.bf16.mxu1 %v6944_v4  ;;  %v7008_v3 = vld [vmem:[#allocation15 + $0x548] ss:$24 sps:$4 sm:$0xff]   ;;  %v7013_v4 = vld [vmem:[#allocation15 + $0x574] ss:$24 sps:$4 sm:$0xff]  }
 0x4a0   :  { %5117 = vmatpush1.bf16.msra.mxu0 %v6939_v39  ;;  %5240 = vmatpush1.bf16.msra.mxu1 %v6942_v5  ;;  %v7016_v39 = vld [vmem:[#allocation15 + $0x57c] ss:$24 sps:$4 sm:$0xff]   ;;  %v7011_v5 = vld [vmem:[#allocation15 + $0x570] ss:$24 sps:$4 sm:$0xff]  }
 0x4a1   :  { %5118 = vmatprep.subr.bf16.mxu0 %v6947_v8  ;;  %5241 = vmatprep.subr.bf16.mxu1 %v6950_v9  ;;  %v7014_v8 = vld [vmem:[#allocation15 + $0x578] ss:$24 sps:$4 sm:$0xff]   ;;  %v2919_v9 = vrot.slane %v7801_v52, %v7774_v41 }
 0x4a4   :  { %5119 = vmatpush1.bf16.msra.mxu0 %v6945_v17  ;;  %5242 = vmatpush1.bf16.msra.mxu1 %v6948_v18  ;;  %v7019_v17 = vld [vmem:[#allocation15 + $0x5a4] ss:$24 sps:$4 sm:$0xff]  }
 0x4a5   :  { %5120 = vmatprep.subr.bf16.mxu0 %v6953_v19  ;;  %5243 = vmatprep.subr.bf16.mxu1 %v6956_v14  ;;  %v7022_v18 = vld [vmem:[#allocation15 + $0x5ac] ss:$24 sps:$4 sm:$0xff]   ;;  %v2931_v19 = vrot.slane %v7801_v52, %v7787_v16  ;;  %v7017_v14 = vld [vmem:[#allocation15 + $0x5a0] ss:$24 sps:$4 sm:$0xff]  }
 0x4a8   :  { %5121 = vmatpush1.bf16.msra.mxu0 %v6951_v20  ;;  %5244 = vmatpush1.bf16.msra.mxu1 %v6954_v21  ;;  %v7020_v20 = vld [vmem:[#allocation15 + $0x5a8] ss:$24 sps:$4 sm:$0xff]  }
 0x4a9   :  { %5122 = vmatprep.subr.bf16.mxu0 %v6959_v22  ;;  %5245 = vmatprep.subr.bf16.mxu1 %v6962_v23  ;;  %v7025_v22 = vld [vmem:[#allocation15 + $0x5d4] ss:$24 sps:$4 sm:$0xff]  }
 0x4aa   :  { %v7028_v23 = vld [vmem:[#allocation15 + $0x5dc] ss:$24 sps:$4 sm:$0xff]  }
 0x4ac   :  { %5123 = vmatpush1.bf16.msra.mxu0 %v6957_v24  ;;  %5246 = vmatpush1.bf16.msra.mxu1 %v6960_v25 }
 0x4ad   :  { %5124 = vmatprep.subr.bf16.mxu0 %v6965_v26  ;;  %5247 = vmatprep.subr.bf16.mxu1 %v6968_v27 }
 0x4b0   :  { %5125 = vmatpush1.bf16.msra.mxu0 %v6963_v11  ;;  %5248 = vmatpush1.bf16.msra.mxu1 %v6966_v28  ;;  %v7023_v11 = vld [vmem:[#allocation15 + $0x5d0] ss:$24 sps:$4 sm:$0xff]  }
 0x4b1   :  { %5126 = vmatprep.subr.bf16.mxu0 %v6971_v29  ;;  %5249 = vmatprep.subr.bf16.mxu1 %v6974_v30  ;;  %v7026_v28 = vld [vmem:[#allocation15 + $0x5d8] ss:$24 sps:$4 sm:$0xff]  }
 0x4b2   :  { %v7817_v33 = vpop.f32.mrb[24].mxu1 }
 0x4b3   :  { %v3255_v35 = vpop.f32.mrb[25].mxu1  ;;  %v3254_v21 = vadd.f32 %v7817_v33, %v2919_v9  ;;  %v7032_v33 = vld [vmem:[#allocation15 + $0x608] ss:$24 sps:$4 sm:$0xff]  }
 0x4b4   :  { %v3256_v36 = vadd.f32 %v3255_v35, %v2923_v31  ;;  %v3257_v7 = vpop.f32.mrb[26].mxu1  ;;  %5127 = vmatpush1.bf16.msra.mxu0 %v6969_v6  ;;  %5250 = vmatpush1.bf16.msra.mxu1 %v6972_v47  ;;  %v7031_v31 = vld [vmem:[#allocation15 + $0x604] ss:$24 sps:$4 sm:$0xff]   ;;  %v7077_v9 = vld [vmem:[#allocation15 + $0x780] ss:$24 sps:$4 sm:$0xff]  }
 0x4b5   :  { %v3258_v34 = vpop.f32.mrb[27].mxu1  ;;  %5128 = vmatprep.subr.bf16.mxu0 %v6977_v12  ;;  %5251 = vmatprep.subr.bf16.mxu1 %v6980_v32  ;;  %v3303_v29 = vmax.f32 %v3254_v21, 0.0  ;;  %v7034_v6 = vld [vmem:[#allocation15 + $0x60c] ss:$24 sps:$4 sm:$0xff]   ;;  %v7029_v12 = vld [vmem:[#allocation15 + $0x600] ss:$24 sps:$4 sm:$0xff]  }
 0x4b6   :  { %v3304_v43 = vmax.f32 %v3256_v36, 0.0  ;;  %v7037_v36 = vld [vmem:[#allocation15 + $0x634] ss:$24 sps:$4 sm:$0xff]   ;;  %v7043_v34 = vld [vmem:[#allocation15 + $0x664] ss:$24 sps:$4 sm:$0xff]  }
 0x4b7   :  { %v7830_v32 = vpack.c.bf16 %v3303_v29, %v3303_v29  ;;  %v7040_v7 = vld [vmem:[#allocation15 + $0x63c] ss:$24 sps:$4 sm:$0xff]  }
 0x4b8   :  { %v7819_v44 = vpack.c.bf16 %v3304_v43, %v3304_v43  ;;  %5129 = vmatpush1.bf16.msra.mxu0 %v6975_v37  ;;  %5252 = vmatpush1.bf16.msra.mxu1 %v6978_v38  ;;  %v7035_v37 = vld [vmem:[#allocation15 + $0x630] ss:$24 sps:$4 sm:$0xff]   ;;  %v7091_v21 = vld [vmem:[#allocation15 + $0x7e4] ss:$24 sps:$4 sm:$0xff]  }
 0x4b9   :  { %5130 = vmatprep.subr.bf16.mxu0 %v6983_v51  ;;  %5253 = vmatprep.subr.bf16.mxu1 %v6986_v40  ;;  %v7038_v38 = vld [vmem:[#allocation15 + $0x638] ss:$24 sps:$4 sm:$0xff]   ;;  %v7046_v51 = vld [vmem:[#allocation15 + $0x66c] ss:$24 sps:$4 sm:$0xff]   ;;  %v7044_v43 = vld [vmem:[#allocation15 + $0x668] ss:$24 sps:$4 sm:$0xff]  }
 0x4ba   :  { %5146 = vmatprep.mubr.bf16.mxu0 %v7819_v44  ;;  %5269 = vmatprep.mubr.bf16.mxu1 %v7819_v44  ;;  %v7041_v40 = vld [vmem:[#allocation15 + $0x660] ss:$24 sps:$4 sm:$0xff]   ;;  %v7103_v29 = vld [vmem:[#allocation15 + $0x844] ss:$24 sps:$4 sm:$0xff]  }
 0x4bc   :  { %5131 = vmatpush1.bf16.msra.mxu0 %v6981_v45  ;;  %5254 = vmatpush1.bf16.msra.mxu1 %v6984_v46  ;;  %v7049_v45 = vld [vmem:[#allocation15 + $0x694] ss:$24 sps:$4 sm:$0xff]  }
 0x4bd   :  { %5132 = vmatprep.subr.bf16.mxu0 %v6989_v48  ;;  %5255 = vmatprep.subr.bf16.mxu1 %v6992_v49  ;;  %v7052_v46 = vld [vmem:[#allocation15 + $0x69c] ss:$24 sps:$4 sm:$0xff]   ;;  %v7047_v48 = vld [vmem:[#allocation15 + $0x690] ss:$24 sps:$4 sm:$0xff]  }
 0x4be   :  { %v7050_v49 = vld [vmem:[#allocation15 + $0x698] ss:$24 sps:$4 sm:$0xff]  }
 0x4c0   :  { %5133 = vmatpush1.bf16.msra.mxu0 %v6987_v50  ;;  %5256 = vmatpush1.bf16.msra.mxu1 %v6990_v53  ;;  %v7055_v50 = vld [vmem:[#allocation15 + $0x6c4] ss:$24 sps:$4 sm:$0xff]  }
 0x4c1   :  { %5134 = vmatprep.subr.bf16.mxu0 %v6995_v54  ;;  %5257 = vmatprep.subr.bf16.mxu1 %v6998_v55  ;;  %v7058_v53 = vld [vmem:[#allocation15 + $0x6cc] ss:$24 sps:$4 sm:$0xff]   ;;  %v7053_v54 = vld [vmem:[#allocation15 + $0x6c0] ss:$24 sps:$4 sm:$0xff]  }
 0x4c2   :  { %v7056_v55 = vld [vmem:[#allocation15 + $0x6c8] ss:$24 sps:$4 sm:$0xff]  }
 0x4c4   :  { %5135 = vmatpush1.bf16.msra.mxu0 %v6993_v56  ;;  %5258 = vmatpush1.bf16.msra.mxu1 %v6996_v57  ;;  %v7061_v56 = vld [vmem:[#allocation15 + $0x6f4] ss:$24 sps:$4 sm:$0xff]  }
 0x4c5   :  { %5136 = vmatprep.subr.bf16.mxu0 %v7001_v58  ;;  %5259 = vmatprep.subr.bf16.mxu1 %v7004_v59  ;;  %v7064_v57 = vld [vmem:[#allocation15 + $0x6fc] ss:$24 sps:$4 sm:$0xff]   ;;  %v7059_v58 = vld [vmem:[#allocation15 + $0x6f0] ss:$24 sps:$4 sm:$0xff]  }
 0x4c6   :  { %v7062_v59 = vld [vmem:[#allocation15 + $0x6f8] ss:$24 sps:$4 sm:$0xff]  }
 0x4c8   :  { %5137 = vmatpush1.bf16.msra.mxu0 %v6999_v60  ;;  %5260 = vmatpush1.bf16.msra.mxu1 %v7002_v61  ;;  %v7067_v60 = vld [vmem:[#allocation15 + $0x724] ss:$24 sps:$4 sm:$0xff]  }
 0x4c9   :  { %5138 = vmatprep.subr.bf16.mxu0 %v7007_v62  ;;  %5261 = vmatprep.subr.bf16.mxu1 %v7010_v0  ;;  %v7070_v61 = vld [vmem:[#allocation15 + $0x72c] ss:$24 sps:$4 sm:$0xff]   ;;  %v7065_v62 = vld [vmem:[#allocation15 + $0x720] ss:$24 sps:$4 sm:$0xff]  }
 0x4ca   :  { %v7068_v0 = vld [vmem:[#allocation15 + $0x728] ss:$24 sps:$4 sm:$0xff]  }
 0x4cc   :  { %5139 = vmatpush1.bf16.msra.mxu0 %v7005_v1  ;;  %5262 = vmatpush1.bf16.msra.mxu1 %v7008_v3  ;;  %v7073_v1 = vld [vmem:[#allocation15 + $0x754] ss:$24 sps:$4 sm:$0xff]  }
 0x4cd   :  { %5140 = vmatprep.subr.bf16.mxu0 %v7013_v4  ;;  %5263 = vmatprep.subr.bf16.mxu1 %v7016_v39  ;;  %v7076_v3 = vld [vmem:[#allocation15 + $0x75c] ss:$24 sps:$4 sm:$0xff]   ;;  %v7071_v4 = vld [vmem:[#allocation15 + $0x750] ss:$24 sps:$4 sm:$0xff]  }
 0x4ce   :  { %v7074_v39 = vld [vmem:[#allocation15 + $0x758] ss:$24 sps:$4 sm:$0xff]  }
 0x4d0   :  { %5141 = vmatpush1.bf16.msra.mxu0 %v7011_v5  ;;  %5264 = vmatpush1.bf16.msra.mxu1 %v7014_v8  ;;  %v7079_v5 = vld [vmem:[#allocation15 + $0x784] ss:$24 sps:$4 sm:$0xff]  }
 0x4d1   :  { %5142 = vmatprep.subr.bf16.mxu0 %v7019_v17  ;;  %5265 = vmatprep.subr.bf16.mxu1 %v7022_v18  ;;  %v7082_v8 = vld [vmem:[#allocation15 + $0x78c] ss:$24 sps:$4 sm:$0xff]   ;;  %v7080_v17 = vld [vmem:[#allocation15 + $0x788] ss:$24 sps:$4 sm:$0xff]  }
 0x4d2   :  { %v7828_v24 = vpop.f32.mrb[28].mxu1  ;;  %v7085_v18 = vld [vmem:[#allocation15 + $0x7b4] ss:$24 sps:$4 sm:$0xff]  }
 0x4d3   :  { %v3296_v25 = vpop.f32.mrb[29].mxu1 }
 0x4d4   :  { %v3297_v26 = vadd.f32 %v3296_v25, %v2931_v19  ;;  %v3298_v27 = vpop.f32.mrb[30].mxu1  ;;  %5143 = vmatpush1.bf16.msra.mxu0 %v7017_v14  ;;  %5266 = vmatpush1.bf16.msra.mxu1 %v7020_v20  ;;  %v7088_v19 = vld [vmem:[#allocation15 + $0x7bc] ss:$24 sps:$4 sm:$0xff]   ;;  %v7083_v14 = vld [vmem:[#allocation15 + $0x7b0] ss:$24 sps:$4 sm:$0xff]  }
 0x4d5   :  { %v3299_v30 = vpop.f32.mrb[31].mxu1  ;;  %5144 = vmatprep.subr.bf16.mxu0 %v7025_v22  ;;  %5267 = vmatprep.subr.bf16.mxu1 %v7028_v23  ;;  %v7086_v20 = vld [vmem:[#allocation15 + $0x7b8] ss:$24 sps:$4 sm:$0xff]   ;;  %v7094_v22 = vld [vmem:[#allocation15 + $0x7ec] ss:$24 sps:$4 sm:$0xff]  }
 0x4d6   :  { %v3306_v47 = vmax.f32 %v3297_v26, 0.0  ;;  %v7089_v23 = vld [vmem:[#allocation15 + $0x7e0] ss:$24 sps:$4 sm:$0xff]   ;;  %v7097_v26 = vld [vmem:[#allocation15 + $0x814] ss:$24 sps:$4 sm:$0xff]  }
 0x4d7   :  { %v7092_v25 = vld [vmem:[#allocation15 + $0x7e8] ss:$24 sps:$4 sm:$0xff]   ;;  %v7100_v27 = vld [vmem:[#allocation15 + $0x81c] ss:$24 sps:$4 sm:$0xff]   ;;  %v7106_v30 = vld [vmem:[#allocation15 + $0x84c] ss:$24 sps:$4 sm:$0xff]  }
 0x4d8   :  { %5145 = vmatpush1.bf16.msra.mxu0 %v7023_v11  ;;  %5268 = vmatpush1.bf16.msra.mxu1 %v7026_v28  ;;  %v7832_v35 = vpack.c.bf16 %v3306_v47, %v3306_v47  ;;  %v7095_v11 = vld [vmem:[#allocation15 + $0x810] ss:$24 sps:$4 sm:$0xff]   ;;  %v7109_v47 = vld [vmem:[#allocation15 + $0x874] ss:$24 sps:$4 sm:$0xff]  }
 0x4d9   :  { %5155 = vmatprep.subr.bf16.mxu0 %v7031_v31  ;;  %5278 = vmatprep.subr.bf16.mxu1 %v7034_v6  ;;  %v7098_v28 = vld [vmem:[#allocation15 + $0x818] ss:$24 sps:$4 sm:$0xff]   ;;  %v7104_v6 = vld [vmem:[#allocation15 + $0x848] ss:$24 sps:$4 sm:$0xff]  }
 0x4da   :  { %v7101_v31 = vld [vmem:[#allocation15 + $0x840] ss:$24 sps:$4 sm:$0xff]  }
 0x4db   :  { %5147 = vmatmul.mubr.bf16.vlgmr.msra.gmra.mrb[8].mxu0 %v7830_v32  ;;  %5270 = vmatmul.mubr.bf16.vlgmr.msra.gmra.mrb[32].mxu1 %v7830_v32 }
 0x4dc   :  { %5156 = vmatpush1.bf16.msra.mxu0 %v7029_v12  ;;  %5187 = vmatprep.mubr.bf16.mxu0 %v7832_v35  ;;  %v7112_v12 = vld [vmem:[#allocation15 + $0x87c] ss:$24 sps:$4 sm:$0xff]  }
 0x4dd   :  { %5279 = vmatpush1.bf16.msra.mxu1 %v7032_v33  ;;  %5310 = vmatprep.mubr.bf16.mxu1 %v7832_v35  ;;  %v7107_v33 = vld [vmem:[#allocation15 + $0x870] ss:$24 sps:$4 sm:$0xff]  }
 0x4de   :  { %5157 = vmatprep.subr.bf16.mxu0 %v7037_v36  ;;  %5280 = vmatprep.subr.bf16.mxu1 %v7040_v7  ;;  %v2927_v36 = vrot.slane %v7801_v52, %v7784_v10  ;;  %v7110_v7 = vld [vmem:[#allocation15 + $0x878] ss:$24 sps:$4 sm:$0xff]  }
 0x4df   :  { %v7122_v52 = vld [vmem:[#allocation15 + $0x8d8] ss:$24 sps:$4 sm:$0xff]  }
 0x4e0   :  { %5158 = vmatpush1.bf16.msra.mxu0 %v7035_v37  ;;  %v7115_v37 = vld [vmem:[#allocation15 + $0x8a4] ss:$24 sps:$4 sm:$0xff]  }
 0x4e1   :  { %5281 = vmatpush1.bf16.msra.mxu1 %v7038_v38  ;;  %5159 = vmatprep.subr.bf16.mxu0 %v7043_v34  ;;  %v7118_v38 = vld [vmem:[#allocation15 + $0x8ac] ss:$24 sps:$4 sm:$0xff]   ;;  %v7113_v34 = vld [vmem:[#allocation15 + $0x8a0] ss:$24 sps:$4 sm:$0xff]  }
 0x4e2   :  { %5282 = vmatprep.subr.bf16.mxu1 %v7046_v51  ;;  %v3295_v51 = vadd.f32 %v7828_v24, %v2927_v36  ;;  %v7130_v24 = vld [vmem:[#allocation15 + $0x44] ss:$24 sps:$4 sm:$0xff]   ;;  %v7185_v36 = vld [vmem:[#allocation15 + $0x3d0] ss:$24 sps:$4 sm:$0xff]  }
 0x4e4   :  { %5160 = vmatpush1.bf16.msra.mxu0 %v7041_v40  ;;  %v7116_v40 = vld [vmem:[#allocation15 + $0x8a8] ss:$24 sps:$4 sm:$0xff]  }
 0x4e5   :  { %5283 = vmatpush1.bf16.msra.mxu1 %v7044_v43  ;;  %5161 = vmatprep.subr.bf16.mxu0 %v7049_v45  ;;  %v7121_v43 = vld [vmem:[#allocation15 + $0x8d4] ss:$24 sps:$4 sm:$0xff]  }
 0x4e6   :  { %5284 = vmatprep.subr.bf16.mxu1 %v7052_v46  ;;  %v7124_v45 = vld [vmem:[#allocation15 + $0x8dc] ss:$24 sps:$4 sm:$0xff]   ;;  %v7119_v46 = vld [vmem:[#allocation15 + $0x8d0] ss:$24 sps:$4 sm:$0xff]  }
 0x4e8   :  { %5162 = vmatpush1.bf16.msra.mxu0 %v7047_v48  ;;  %v3305_v48 = vmax.f32 %v3295_v51, 0.0  ;;  %v7199_v51 = vld [vmem:[#allocation15 + $0x494] ss:$24 sps:$4 sm:$0xff]  }
 0x4e9   :  { %5285 = vmatpush1.bf16.msra.mxu1 %v7050_v49  ;;  %5163 = vmatprep.subr.bf16.mxu0 %v7055_v50  ;;  %v7127_v49 = vld [vmem:[#allocation15 + $0x14] ss:$24 sps:$4 sm:$0xff]   ;;  %v7125_v50 = vld [vmem:[#allocation15 + $0x10] ss:$24 sps:$4 sm:$0xff]  }
 0x4ea   :  { %5286 = vmatprep.subr.bf16.mxu1 %v7058_v53  ;;  %v7841_v53 = vpack.c.bf16 %v3305_v48, %v3305_v48  ;;  %v7203_v48 = vld [vmem:[#allocation15 + $0x4f0] ss:$24 sps:$4 sm:$0xff]  }
 0x4ec   :  { %5164 = vmatpush1.bf16.msra.mxu0 %v7053_v54  ;;  %v7128_v54 = vld [vmem:[#allocation15 + $0x40] ss:$24 sps:$4 sm:$0xff]  }
 0x4ed   :  { %5287 = vmatpush1.bf16.msra.mxu1 %v7056_v55  ;;  %5165 = vmatprep.subr.bf16.mxu0 %v7061_v56  ;;  %v7133_v55 = vld [vmem:[#allocation15 + $0x74] ss:$24 sps:$4 sm:$0xff]   ;;  %v7131_v56 = vld [vmem:[#allocation15 + $0x70] ss:$24 sps:$4 sm:$0xff]  }
 0x4ee   :  { %5288 = vmatprep.subr.bf16.mxu1 %v7064_v57  ;;  %v7136_v57 = vld [vmem:[#allocation15 + $0xa4] ss:$24 sps:$4 sm:$0xff]  }
 0x4f0   :  { %5166 = vmatpush1.bf16.msra.mxu0 %v7059_v58  ;;  %v7134_v58 = vld [vmem:[#allocation15 + $0xa0] ss:$24 sps:$4 sm:$0xff]  }
 0x4f1   :  { %5289 = vmatpush1.bf16.msra.mxu1 %v7062_v59  ;;  %5167 = vmatprep.subr.bf16.mxu0 %v7067_v60  ;;  %v7139_v59 = vld [vmem:[#allocation15 + $0xd4] ss:$24 sps:$4 sm:$0xff]   ;;  %v7137_v60 = vld [vmem:[#allocation15 + $0xd0] ss:$24 sps:$4 sm:$0xff]  }
 0x4f2   :  { %5290 = vmatprep.subr.bf16.mxu1 %v7070_v61  ;;  %v7142_v61 = vld [vmem:[#allocation15 + $0x104] ss:$24 sps:$4 sm:$0xff]  }
 0x4f4   :  { %5168 = vmatpush1.bf16.msra.mxu0 %v7065_v62  ;;  %v7140_v62 = vld [vmem:[#allocation15 + $0x100] ss:$24 sps:$4 sm:$0xff]  }
 0x4f5   :  { %5291 = vmatpush1.bf16.msra.mxu1 %v7068_v0  ;;  %5169 = vmatprep.subr.bf16.mxu0 %v7073_v1  ;;  %v7145_v0 = vld [vmem:[#allocation15 + $0x134] ss:$24 sps:$4 sm:$0xff]   ;;  %v7148_v1 = vld [vmem:[#allocation15 + $0x164] ss:$24 sps:$4 sm:$0xff]  }
 0x4f6   :  { %5292 = vmatprep.subr.bf16.mxu1 %v7076_v3  ;;  %v7146_v3 = vld [vmem:[#allocation15 + $0x160] ss:$24 sps:$4 sm:$0xff]  }
 0x4f8   :  { %5170 = vmatpush1.bf16.msra.mxu0 %v7071_v4  ;;  %v7151_v4 = vld [vmem:[#allocation15 + $0x194] ss:$24 sps:$4 sm:$0xff]  }
 0x4f9   :  { %5293 = vmatpush1.bf16.msra.mxu1 %v7074_v39  ;;  %5171 = vmatprep.subr.bf16.mxu0 %v7079_v5  ;;  %v7149_v39 = vld [vmem:[#allocation15 + $0x190] ss:$24 sps:$4 sm:$0xff]   ;;  %v7154_v5 = vld [vmem:[#allocation15 + $0x1c4] ss:$24 sps:$4 sm:$0xff]  }
 0x4fa   :  { %5294 = vmatprep.subr.bf16.mxu1 %v7082_v8  ;;  %v7152_v8 = vld [vmem:[#allocation15 + $0x1c0] ss:$24 sps:$4 sm:$0xff]  }
 0x4fc   :  { %5172 = vmatpush1.bf16.msra.mxu0 %v7077_v9  ;;  %v7157_v9 = vld [vmem:[#allocation15 + $0x1f4] ss:$24 sps:$4 sm:$0xff]  }
 0x4fd   :  { %5295 = vmatpush1.bf16.msra.mxu1 %v7080_v17  ;;  %5173 = vmatprep.subr.bf16.mxu0 %v7085_v18  ;;  %v7155_v17 = vld [vmem:[#allocation15 + $0x1f0] ss:$24 sps:$4 sm:$0xff]   ;;  %v7160_v18 = vld [vmem:[#allocation15 + $0x224] ss:$24 sps:$4 sm:$0xff]  }
 0x4fe   :  { %5296 = vmatprep.subr.bf16.mxu1 %v7088_v19  ;;  %v7158_v19 = vld [vmem:[#allocation15 + $0x220] ss:$24 sps:$4 sm:$0xff]  }
 0x500   :  { %5174 = vmatpush1.bf16.msra.mxu0 %v7083_v14  ;;  %v7163_v14 = vld [vmem:[#allocation15 + $0x254] ss:$24 sps:$4 sm:$0xff]  }
 0x501   :  { %5297 = vmatpush1.bf16.msra.mxu1 %v7086_v20  ;;  %5175 = vmatprep.subr.bf16.mxu0 %v7091_v21  ;;  %v7161_v20 = vld [vmem:[#allocation15 + $0x250] ss:$24 sps:$4 sm:$0xff]   ;;  %v7166_v21 = vld [vmem:[#allocation15 + $0x284] ss:$24 sps:$4 sm:$0xff]  }
 0x502   :  { %5298 = vmatprep.subr.bf16.mxu1 %v7094_v22  ;;  %v7164_v22 = vld [vmem:[#allocation15 + $0x280] ss:$24 sps:$4 sm:$0xff]  }
 0x504   :  { %5176 = vmatpush1.bf16.msra.mxu0 %v7089_v23  ;;  %v7169_v23 = vld [vmem:[#allocation15 + $0x2b4] ss:$24 sps:$4 sm:$0xff]  }
 0x505   :  { %5299 = vmatpush1.bf16.msra.mxu1 %v7092_v25  ;;  %5177 = vmatprep.subr.bf16.mxu0 %v7097_v26  ;;  %v7167_v25 = vld [vmem:[#allocation15 + $0x2b0] ss:$24 sps:$4 sm:$0xff]   ;;  %v7172_v26 = vld [vmem:[#allocation15 + $0x2e4] ss:$24 sps:$4 sm:$0xff]  }
 0x506   :  { %5300 = vmatprep.subr.bf16.mxu1 %v7100_v27  ;;  %v7170_v27 = vld [vmem:[#allocation15 + $0x2e0] ss:$24 sps:$4 sm:$0xff]  }
 0x508   :  { %5178 = vmatpush1.bf16.msra.mxu0 %v7095_v11  ;;  %v7175_v11 = vld [vmem:[#allocation15 + $0x314] ss:$24 sps:$4 sm:$0xff]  }
 0x509   :  { %5301 = vmatpush1.bf16.msra.mxu1 %v7098_v28  ;;  %5179 = vmatprep.subr.bf16.mxu0 %v7103_v29  ;;  %v7173_v28 = vld [vmem:[#allocation15 + $0x310] ss:$24 sps:$4 sm:$0xff]   ;;  %v7178_v29 = vld [vmem:[#allocation15 + $0x344] ss:$24 sps:$4 sm:$0xff]  }
 0x50a   :  { %5302 = vmatprep.subr.bf16.mxu1 %v7106_v30  ;;  %v7176_v30 = vld [vmem:[#allocation15 + $0x340] ss:$24 sps:$4 sm:$0xff]  }
 0x50c   :  { %5180 = vmatpush1.bf16.msra.mxu0 %v7101_v31  ;;  %v7181_v31 = vld [vmem:[#allocation15 + $0x374] ss:$24 sps:$4 sm:$0xff]  }
 0x50d   :  { %5303 = vmatpush1.bf16.msra.mxu1 %v7104_v6  ;;  %5181 = vmatprep.subr.bf16.mxu0 %v7109_v47  ;;  %v7179_v6 = vld [vmem:[#allocation15 + $0x370] ss:$24 sps:$4 sm:$0xff]   ;;  %v7184_v47 = vld [vmem:[#allocation15 + $0x3a4] ss:$24 sps:$4 sm:$0xff]  }
 0x50e   :  { %5304 = vmatprep.subr.bf16.mxu1 %v7112_v12  ;;  %v7182_v12 = vld [vmem:[#allocation15 + $0x3a0] ss:$24 sps:$4 sm:$0xff]  }
 0x510   :  { %5182 = vmatpush1.bf16.msra.mxu0 %v7107_v33  ;;  %v7187_v33 = vld [vmem:[#allocation15 + $0x3d4] ss:$24 sps:$4 sm:$0xff]  }
 0x511   :  { %5305 = vmatpush1.bf16.msra.mxu1 %v7110_v7  ;;  %5183 = vmatprep.subr.bf16.mxu0 %v7115_v37  ;;  %v7190_v7 = vld [vmem:[#allocation15 + $0x404] ss:$24 sps:$4 sm:$0xff]   ;;  %v7193_v37 = vld [vmem:[#allocation15 + $0x434] ss:$24 sps:$4 sm:$0xff]  }
 0x512   :  { %5306 = vmatprep.subr.bf16.mxu1 %v7118_v38  ;;  %v7196_v38 = vld [vmem:[#allocation15 + $0x464] ss:$24 sps:$4 sm:$0xff]  }
 0x514   :  { %5184 = vmatpush1.bf16.msra.mxu0 %v7113_v34  ;;  %v7194_v34 = vld [vmem:[#allocation15 + $0x460] ss:$24 sps:$4 sm:$0xff]  }
 0x515   :  { %5307 = vmatpush1.bf16.msra.mxu1 %v7116_v40  ;;  %5185 = vmatprep.subr.bf16.mxu0 %v7121_v43  ;;  %v7197_v40 = vld [vmem:[#allocation15 + $0x490] ss:$24 sps:$4 sm:$0xff]   ;;  %v7202_v43 = vld [vmem:[#allocation15 + $0x4c4] ss:$24 sps:$4 sm:$0xff]  }
 0x516   :  { %5308 = vmatprep.subr.bf16.mxu1 %v7124_v45  ;;  %v7200_v45 = vld [vmem:[#allocation15 + $0x4c0] ss:$24 sps:$4 sm:$0xff]  }
 0x518   :  { %5186 = vmatpush1.bf16.msra.mxu0 %v7119_v46  ;;  %v7205_v46 = vld [vmem:[#allocation15 + $0x4f4] ss:$24 sps:$4 sm:$0xff]  }
 0x519   :  { %5309 = vmatpush1.bf16.msra.mxu1 %v7122_v52  ;;  %5319 = vmatprep.subr.bf16.mxu0 %v7127_v49  ;;  %v7208_v52 = vld [vmem:[#allocation15 + $0x524] ss:$24 sps:$4 sm:$0xff]   ;;  %v7206_v49 = vld [vmem:[#allocation15 + $0x520] ss:$24 sps:$4 sm:$0xff]  }
 0x51b   :  { %5188 = vmatmul.mubr.bf16.vlgmr.msra.gmra.mrb[8].mxu0 %v7841_v53 }
 0x51c   :  { %5311 = vmatmul.mubr.bf16.vlgmr.msra.gmra.mrb[32].mxu1 %v7841_v53  ;;  %5320 = vmatpush1.bf16.msra.mxu0 %v7125_v50  ;;  %v7211_v50 = vld [vmem:[#allocation15 + $0x554] ss:$24 sps:$4 sm:$0xff]  }
 0x51d   :  { %5351 = vmatprep.mubr.bf16.mxu0 %v7807_v63  ;;  %5321 = vmatprep.subr.bf16.mxu0 %v7130_v24  ;;  %v7143_v63 = vld [vmem:[#allocation15 + $0x130] ss:$24 sps:$4 sm:$0xff]  }
 0x51e   :  { %v7209_v24 = vld [vmem:[#allocation15 + $0x550] ss:$24 sps:$4 sm:$0xff]  }
 0x520   :  { %5322 = vmatpush1.bf16.msra.mxu0 %v7128_v54  ;;  %v7214_v54 = vld [vmem:[#allocation15 + $0x584] ss:$24 sps:$4 sm:$0xff]  }
 0x521   :  { %5323 = vmatprep.subr.bf16.mxu0 %v7133_v55  ;;  %v7212_v55 = vld [vmem:[#allocation15 + $0x580] ss:$24 sps:$4 sm:$0xff]  }
 0x524   :  { %5324 = vmatpush1.bf16.msra.mxu0 %v7131_v56  ;;  %v7217_v56 = vld [vmem:[#allocation15 + $0x5b4] ss:$24 sps:$4 sm:$0xff]  }
 0x525   :  { %5325 = vmatprep.subr.bf16.mxu0 %v7136_v57  ;;  %v7215_v57 = vld [vmem:[#allocation15 + $0x5b0] ss:$24 sps:$4 sm:$0xff]  }
 0x528   :  { %5326 = vmatpush1.bf16.msra.mxu0 %v7134_v58  ;;  %v7220_v58 = vld [vmem:[#allocation15 + $0x5e4] ss:$24 sps:$4 sm:$0xff]  }
 0x529   :  { %5327 = vmatprep.subr.bf16.mxu0 %v7139_v59  ;;  %v7218_v59 = vld [vmem:[#allocation15 + $0x5e0] ss:$24 sps:$4 sm:$0xff]  }
 0x52c   :  { %5328 = vmatpush1.bf16.msra.mxu0 %v7137_v60  ;;  %v7223_v60 = vld [vmem:[#allocation15 + $0x614] ss:$24 sps:$4 sm:$0xff]  }
 0x52d   :  { %5329 = vmatprep.subr.bf16.mxu0 %v7142_v61  ;;  %v7221_v61 = vld [vmem:[#allocation15 + $0x610] ss:$24 sps:$4 sm:$0xff]  }
 0x530   :  { %5330 = vmatpush1.bf16.msra.mxu0 %v7140_v62  ;;  %v7226_v62 = vld [vmem:[#allocation15 + $0x644] ss:$24 sps:$4 sm:$0xff]  }
 0x531   :  { %5331 = vmatprep.subr.bf16.mxu0 %v7145_v0  ;;  %v7224_v0 = vld [vmem:[#allocation15 + $0x640] ss:$24 sps:$4 sm:$0xff]  }
 0x534   :  { %5332 = vmatpush1.bf16.msra.mxu0 %v7143_v63  ;;  %v7229_v63 = vld [vmem:[#allocation15 + $0x674] ss:$24 sps:$4 sm:$0xff]  }
 0x535   :  { %5333 = vmatprep.subr.bf16.mxu0 %v7148_v1  ;;  %v7227_v1 = vld [vmem:[#allocation15 + $0x670] ss:$24 sps:$4 sm:$0xff]  }
 0x538   :  { %5334 = vmatpush1.bf16.msra.mxu0 %v7146_v3  ;;  %v7232_v3 = vld [vmem:[#allocation15 + $0x6a4] ss:$24 sps:$4 sm:$0xff]  }
 0x539   :  { %5335 = vmatprep.subr.bf16.mxu0 %v7151_v4  ;;  %v7230_v4 = vld [vmem:[#allocation15 + $0x6a0] ss:$24 sps:$4 sm:$0xff]  }
 0x53c   :  { %5336 = vmatpush1.bf16.msra.mxu0 %v7149_v39  ;;  %v7235_v39 = vld [vmem:[#allocation15 + $0x6d4] ss:$24 sps:$4 sm:$0xff]  }
 0x53d   :  { %5337 = vmatprep.subr.bf16.mxu0 %v7154_v5  ;;  %v7233_v5 = vld [vmem:[#allocation15 + $0x6d0] ss:$24 sps:$4 sm:$0xff]  }
 0x540   :  { %5338 = vmatpush1.bf16.msra.mxu0 %v7152_v8  ;;  %v7238_v8 = vld [vmem:[#allocation15 + $0x704] ss:$24 sps:$4 sm:$0xff]  }
 0x541   :  { %5339 = vmatprep.subr.bf16.mxu0 %v7157_v9  ;;  %v7241_v9 = vld [vmem:[#allocation15 + $0x734] ss:$24 sps:$4 sm:$0xff]  }
 0x544   :  { %5340 = vmatpush1.bf16.msra.mxu0 %v7155_v17  ;;  %v7244_v17 = vld [vmem:[#allocation15 + $0x764] ss:$24 sps:$4 sm:$0xff]  }
 0x545   :  { %5341 = vmatprep.subr.bf16.mxu0 %v7160_v18  ;;  %v7242_v18 = vld [vmem:[#allocation15 + $0x760] ss:$24 sps:$4 sm:$0xff]  }
 0x548   :  { %5342 = vmatpush1.bf16.msra.mxu0 %v7158_v19  ;;  %v7247_v19 = vld [vmem:[#allocation15 + $0x794] ss:$24 sps:$4 sm:$0xff]  }
 0x549   :  { %5343 = vmatprep.subr.bf16.mxu0 %v7163_v14  ;;  %v7245_v14 = vld [vmem:[#allocation15 + $0x790] ss:$24 sps:$4 sm:$0xff]  }
 0x54c   :  { %5344 = vmatpush1.bf16.msra.mxu0 %v7161_v20  ;;  %v7250_v20 = vld [vmem:[#allocation15 + $0x7c4] ss:$24 sps:$4 sm:$0xff]  }
 0x54d   :  { %5345 = vmatprep.subr.bf16.mxu0 %v7166_v21  ;;  %v7248_v21 = vld [vmem:[#allocation15 + $0x7c0] ss:$24 sps:$4 sm:$0xff]  }
 0x550   :  { %5346 = vmatpush1.bf16.msra.mxu0 %v7164_v22  ;;  %v7253_v22 = vld [vmem:[#allocation15 + $0x7f4] ss:$24 sps:$4 sm:$0xff]  }
 0x551   :  { %5347 = vmatprep.subr.bf16.mxu0 %v7169_v23  ;;  %v7251_v23 = vld [vmem:[#allocation15 + $0x7f0] ss:$24 sps:$4 sm:$0xff]  }
 0x554   :  { %5348 = vmatpush1.bf16.msra.mxu0 %v7167_v25  ;;  %v7256_v25 = vld [vmem:[#allocation15 + $0x824] ss:$24 sps:$4 sm:$0xff]  }
 0x555   :  { %5349 = vmatprep.subr.bf16.mxu0 %v7172_v26  ;;  %v7254_v26 = vld [vmem:[#allocation15 + $0x820] ss:$24 sps:$4 sm:$0xff]  }
 0x558   :  { %5350 = vmatpush1.bf16.msra.mxu0 %v7170_v27  ;;  %v7259_v27 = vld [vmem:[#allocation15 + $0x854] ss:$24 sps:$4 sm:$0xff]  }
 0x559   :  { %5360 = vmatprep.subr.bf16.mxu0 %v7175_v11  ;;  %v7257_v11 = vld [vmem:[#allocation15 + $0x850] ss:$24 sps:$4 sm:$0xff]  }
 0x55b   :  { %5352 = vmatmul.mubr.bf16.vlgmr.msra.gmra.mrb[12].mxu0 %v7809_v2  ;;  %v7188_v2 = vld [vmem:[#allocation15 + $0x400] ss:$24 sps:$4 sm:$0xff]  }
 0x55c   :  { %5361 = vmatpush1.bf16.msra.mxu0 %v7173_v28  ;;  %5392 = vmatprep.mubr.bf16.mxu0 %v7819_v44  ;;  %v7191_v44 = vld [vmem:[#allocation15 + $0x430] ss:$24 sps:$4 sm:$0xff]   ;;  %v7262_v28 = vld [vmem:[#allocation15 + $0x884] ss:$24 sps:$4 sm:$0xff]  }
 0x55d   :  { %5362 = vmatprep.subr.bf16.mxu0 %v7178_v29  ;;  %v7260_v29 = vld [vmem:[#allocation15 + $0x880] ss:$24 sps:$4 sm:$0xff]  }
 0x560   :  { %5363 = vmatpush1.bf16.msra.mxu0 %v7176_v30  ;;  %v7265_v30 = vld [vmem:[#allocation15 + $0x8b4] ss:$24 sps:$4 sm:$0xff]  }
 0x561   :  { %5364 = vmatprep.subr.bf16.mxu0 %v7181_v31  ;;  %v7263_v31 = vld [vmem:[#allocation15 + $0x8b0] ss:$24 sps:$4 sm:$0xff]  }
 0x564   :  { %5365 = vmatpush1.bf16.msra.mxu0 %v7179_v6  ;;  %v7268_v6 = vld [vmem:[#allocation15 + $0x8e4] ss:$24 sps:$4 sm:$0xff]  }
 0x565   :  { %5366 = vmatprep.subr.bf16.mxu0 %v7184_v47  ;;  %v7266_v47 = vld [vmem:[#allocation15 + $0x8e0] ss:$24 sps:$4 sm:$0xff]  }
 0x568   :  { %5367 = vmatpush1.bf16.msra.mxu0 %v7182_v12  ;;  %v3601_v12 = vld [vmem:[#allocation16] sm:$0x3f] }
 0x569   :  { %5368 = vmatprep.subr.bf16.mxu0 %v7187_v33  ;;  %v3606_v33 = vrot.slane %v3601_v12, %v7764_v13 }
 0x56c   :  { %5369 = vmatpush1.bf16.msra.mxu0 %v7185_v36  ;;  %v3614_v36 = vrot.slane %v3601_v12, %v7774_v41  ;;  %v3622_v41 = vrot.slane %v3601_v12, %v7784_v10 }
 0x56d   :  { %5370 = vmatprep.subr.bf16.mxu0 %v7190_v7  ;;  %v3610_v7 = vrot.slane %v3601_v12, %v7767_v15 }
 0x570   :  { %5371 = vmatpush1.bf16.msra.mxu0 %v7188_v2  ;;  %v3618_v2 = vrot.slane %v3601_v12, %v7777_v42  ;;  %v3626_v42 = vrot.slane %v3601_v12, %v7787_v16 }
 0x571   :  { %5372 = vmatprep.subr.bf16.mxu0 %v7193_v37 }
 0x574   :  { %5373 = vmatpush1.bf16.msra.mxu0 %v7191_v44 }
 0x575   :  { %5374 = vmatprep.subr.bf16.mxu0 %v7196_v38 }
 0x578   :  { %5375 = vmatpush1.bf16.msra.mxu0 %v7194_v34 }
 0x579   :  { %5376 = vmatprep.subr.bf16.mxu0 %v7199_v51 }
 0x57c   :  { %5377 = vmatpush1.bf16.msra.mxu0 %v7197_v40 }
 0x57d   :  { %5378 = vmatprep.subr.bf16.mxu0 %v7202_v43 }
 0x580   :  { %5379 = vmatpush1.bf16.msra.mxu0 %v7200_v45 }
 0x581   :  { %5380 = vmatprep.subr.bf16.mxu0 %v7205_v46 }
 0x584   :  { %5381 = vmatpush1.bf16.msra.mxu0 %v7203_v48 }
 0x585   :  { %5382 = vmatprep.subr.bf16.mxu0 %v7208_v52 }
 0x588   :  { %5383 = vmatpush1.bf16.msra.mxu0 %v7206_v49 }
 0x589   :  { %5384 = vmatprep.subr.bf16.mxu0 %v7211_v50 }
 0x58c   :  { %5385 = vmatpush1.bf16.msra.mxu0 %v7209_v24 }
 0x58d   :  { %5386 = vmatprep.subr.bf16.mxu0 %v7214_v54 }
 0x590   :  { %5387 = vmatpush1.bf16.msra.mxu0 %v7212_v55 }
 0x591   :  { %5388 = vmatprep.subr.bf16.mxu0 %v7217_v56 }
 0x594   :  { %5389 = vmatpush1.bf16.msra.mxu0 %v7215_v57 }
 0x595   :  { %5390 = vmatprep.subr.bf16.mxu0 %v7220_v58 }
 0x598   :  { %5391 = vmatpush1.bf16.msra.mxu0 %v7218_v59 }
 0x599   :  { %5401 = vmatprep.subr.bf16.mxu0 %v7223_v60 }
 0x59b   :  { %5393 = vmatmul.mubr.bf16.vlgmr.msra.gmra.mrb[12].mxu0 %v7830_v32  ;;  %v7236_v32 = vld [vmem:[#allocation15 + $0x700] ss:$24 sps:$4 sm:$0xff]  }
 0x59c   :  { %5402 = vmatpush1.bf16.msra.mxu0 %v7221_v61  ;;  %5433 = vmatprep.mubr.bf16.mxu0 %v7832_v35  ;;  %v7239_v35 = vld [vmem:[#allocation15 + $0x730] ss:$24 sps:$4 sm:$0xff]  }
 0x59d   :  { %5403 = vmatprep.subr.bf16.mxu0 %v7226_v62 }
 0x5a0   :  { %5404 = vmatpush1.bf16.msra.mxu0 %v7224_v0 }
 0x5a1   :  { %5405 = vmatprep.subr.bf16.mxu0 %v7229_v63 }
 0x5a4   :  { %5406 = vmatpush1.bf16.msra.mxu0 %v7227_v1 }
 0x5a5   :  { %5407 = vmatprep.subr.bf16.mxu0 %v7232_v3 }
 0x5a8   :  { %5408 = vmatpush1.bf16.msra.mxu0 %v7230_v4 }
 0x5a9   :  { %5409 = vmatprep.subr.bf16.mxu0 %v7235_v39 }
 0x5ac   :  { %5410 = vmatpush1.bf16.msra.mxu0 %v7233_v5 }
 0x5ad   :  { %5411 = vmatprep.subr.bf16.mxu0 %v7238_v8 }
 0x5b0   :  { %5412 = vmatpush1.bf16.msra.mxu0 %v7236_v32 }
 0x5b1   :  { %5413 = vmatprep.subr.bf16.mxu0 %v7241_v9 }
 0x5b4   :  { %5414 = vmatpush1.bf16.msra.mxu0 %v7239_v35 }
 0x5b5   :  { %5415 = vmatprep.subr.bf16.mxu0 %v7244_v17 }
 0x5b8   :  { %5416 = vmatpush1.bf16.msra.mxu0 %v7242_v18 }
 0x5b9   :  { %5417 = vmatprep.subr.bf16.mxu0 %v7247_v19 }
 0x5bc   :  { %5418 = vmatpush1.bf16.msra.mxu0 %v7245_v14 }
 0x5bd   :  { %5419 = vmatprep.subr.bf16.mxu0 %v7250_v20 }
 0x5c0   :  { %5420 = vmatpush1.bf16.msra.mxu0 %v7248_v21 }
 0x5c1   :  { %5421 = vmatprep.subr.bf16.mxu0 %v7253_v22 }
 0x5c4   :  { %5422 = vmatpush1.bf16.msra.mxu0 %v7251_v23 }
 0x5c5   :  { %5423 = vmatprep.subr.bf16.mxu0 %v7256_v25 }
 0x5c8   :  { %5424 = vmatpush1.bf16.msra.mxu0 %v7254_v26 }
 0x5c9   :  { %5425 = vmatprep.subr.bf16.mxu0 %v7259_v27 }
 0x5cc   :  { %5426 = vmatpush1.bf16.msra.mxu0 %v7257_v11 }
 0x5cd   :  { %5427 = vmatprep.subr.bf16.mxu0 %v7262_v28 }
 0x5d0   :  { %5428 = vmatpush1.bf16.msra.mxu0 %v7260_v29 }
 0x5d1   :  { %5429 = vmatprep.subr.bf16.mxu0 %v7265_v30 }
 0x5d4   :  { %5430 = vmatpush1.bf16.msra.mxu0 %v7263_v31 }
 0x5d5   :  { %5431 = vmatprep.subr.bf16.mxu0 %v7268_v6 }
 0x5d8   :  { %5432 = vmatpush1.bf16.msra.mxu0 %v7266_v47 }
 0x5db   :  { %5434 = vmatmul.mubr.bf16.vlgmr.msra.gmra.mrb[12].mxu0 %v7841_v53 }
 0x5ee   :  { %v5189_v37 = vpop.f32.mrb[8].mxu0 }
 0x5ef   :  { %v6213_v44 = vadd.f32 %v5189_v37, %v3606_v33  ;;  %v5312_v38 = vpop.f32.mrb[32].mxu1  ;;  %v5191_v34 = vpop.f32.mrb[9].mxu0 }
 0x5f0   :  { %v6215_v51 = vadd.f32 %v5312_v38, %v3614_v36  ;;  %v6214_v40 = vadd.f32 %v5191_v34, %v3610_v7  ;;  %v5314_v43 = vpop.f32.mrb[33].mxu1  ;;  %v5193_v45 = vpop.f32.mrb[10].mxu0 }
 0x5f1   :  { %5442 = vst [vmem:[%s7886_s11] sm:$0xff] %v6213_v44  ;;  %v6216_v53 = vadd.f32 %v5314_v43, %v3618_v2  ;;  %v5316_v13 = vpop.f32.mrb[34].mxu1  ;;  %v5194_v46 = vpop.f32.mrb[11].mxu0 }
 0x5f2   :  { %5444 = vst [vmem:[%s7886_s11 + $0x10] sm:$0xff] %v6215_v51  ;;  %5443 = vst [vmem:[%s7886_s11 + $0x8] sm:$0xff] %v6214_v40  ;;  %v5317_v15 = vpop.f32.mrb[35].mxu1 }
 0x5f3   :  { %5445 = vst [vmem:[%s7886_s11 + $0x18] sm:$0xff] %v6216_v53 }
 0x6ae   :  { %v5435_v48 = vpop.f32.mrb[12].mxu0 }
 0x6af   :  { %v6217_v52 = vadd.f32 %v5435_v48, %v3622_v41  ;;  %v5437_v49 = vpop.f32.mrb[13].mxu0 }
 0x6b0   :  { %v6218_v50 = vadd.f32 %v5437_v49, %v3626_v42  ;;  %v5439_v24 = vpop.f32.mrb[14].mxu0 }
 0x6b1   :  { %5446 = vst [vmem:[%s7886_s11 + $0x20] sm:$0xff] %v6217_v52  ;;  %v5440_v54 = vpop.f32.mrb[15].mxu0 }
 0x6b2   :  { %5447 = vst [vmem:[%s7886_s11 + $0x28] sm:$0xff] %v6218_v50 }
 0x6b3   :  { %5452 = vsyncpa [#allocation3], 1 }
 0x6b4   :  { %5453 = vsyncpa [#allocation5], 1 }
 0x6b5   :  { %5454 = vsyncpa [#allocation8], 1 }
 0x6b6   :  { %5455 = vsyncpa [#allocation11], 1 }
 0x6b7   :  { %5456 = vsyncpa [#allocation14], 1 }
 0x6b8   :  { %5457 = vsyncpa [#allocation17], 1 }

</bundles_post_ra>
